<compile_context>
chip_gen: v5e
topology: v5e:2x2
jax: 0.10.0
libtpu: 0.0.40
codegen_flags: <defaults>
</compile_context>

<pallas_src>
import math

import jax
import jax.numpy as jnp
from jax import lax
from jax.experimental import pallas as pl
from jax.experimental.pallas import tpu as pltpu  # noqa: F401  (TPU backend)

# ----------------------------- model config ---------------------------------
B = 2            # batch
L_SRC = 8        # source length
L_TGT = 8        # target length (after tgt[:, :-1] slicing)
D_MODEL = 32
D_INNER = 64
N_HEAD = 2
D_K = 16
D_V = 16
N_LAYERS = 2
N_VOCAB = 11
VOCAB_PAD = 128  # lane-dense padded vocab projection width
LN_EPS = 1e-3

HDK = N_HEAD * D_K   # 32
HDV = N_HEAD * D_V   # 32

N_MHA = N_LAYERS + 2 * N_LAYERS   # enc slf + dec (slf + enc) = 6
N_FFN = 2 * N_LAYERS              # 4


# ----------------------------- in-kernel math --------------------------------
def _layernorm_torchstyle(z, gamma, beta):
    """(z - mean) / (unbiased_std + eps) * gamma + beta  (matches torch.std)."""
    d = z.shape[-1]
    mu = jnp.mean(z, axis=-1, keepdims=True)
    var = jnp.sum((z - mu) ** 2, axis=-1, keepdims=True) * (1.0 / (d - 1))
    inv = pl.reciprocal(jnp.sqrt(var) + LN_EPS, approx=False)
    return (z - mu) * inv * gamma + beta


def _softmax_lastdim(s):
    e = jnp.exp(s - jnp.max(s, axis=-1, keepdims=True))
    return e * pl.reciprocal(jnp.sum(e, axis=-1, keepdims=True), approx=False)


def _mha(q_in, kv_in, lq, lk, mi, wqkv_ref, wproj_ref, vec_ref):
    """Multi-head attention + out-proj + residual + layernorm for MHA index mi.

    q_in: (B*lq, D), kv_in: (B*lk, D).
    wqkv_ref:  (N_MHA*3*N_HEAD, D, d_k)  ordered [q_h0, q_h1, k_h0, k_h1, v_h0, v_h1]
               per MHA; 1/sqrt(d_model) pre-folded into the Q blocks.
    wproj_ref: (N_MHA*N_HEAD, d_v, D)    per-head rows of the torch (H*d_v, D) proj.
    vec_ref:   (N_MHA, 3, D)             rows: b_proj, ln_gamma, ln_beta.
    """
    vec = vec_ref[mi]                                   # (3, D)
    b_proj, ln_g, ln_b = vec[0:1, :], vec[1:2, :], vec[2:3, :]

    base = mi * 3 * N_HEAD
    acc = [None] * B                                    # per-batch (lq, D) accumulators
    for h in range(N_HEAD):
        w_q = wqkv_ref[base + 0 * N_HEAD + h]           # (D, d_k), pre-scaled
        w_k = wqkv_ref[base + 1 * N_HEAD + h]           # (D, d_k)
        w_v = wqkv_ref[base + 2 * N_HEAD + h]           # (D, d_v)
        w_o = wproj_ref[mi * N_HEAD + h]                # (d_v, D)

        qh = jnp.dot(q_in, w_q, preferred_element_type=jnp.float32)   # (B*lq, d_k)
        kh = jnp.dot(kv_in, w_k, preferred_element_type=jnp.float32)  # (B*lk, d_k)
        vh = jnp.dot(kv_in, w_v, preferred_element_type=jnp.float32)  # (B*lk, d_v)

        for b in range(B):                               # static, fully unrolled
            q_b = qh[b * lq:(b + 1) * lq, :]             # sublane slices only
            k_b = kh[b * lk:(b + 1) * lk, :]
            v_b = vh[b * lk:(b + 1) * lk, :]
            # q @ k^T without explicit transpose (contract last dims).
            s = lax.dot_general(q_b, k_b, (((1,), (1,)), ((), ())),
                                preferred_element_type=jnp.float32)   # (lq, lk)
            pv = jnp.dot(_softmax_lastdim(s), v_b,
                         preferred_element_type=jnp.float32)          # (lq, d_v)
            contrib = jnp.dot(pv, w_o, preferred_element_type=jnp.float32)  # (lq, D)
            acc[b] = contrib if acc[b] is None else acc[b] + contrib

    out = jnp.concatenate(acc, axis=0) + b_proj + q_in   # single sublane concat
    return _layernorm_torchstyle(out, ln_g, ln_b)


def _ffn(x, fi, w1_ref, b1_ref, w2_ref, vec_ref):
    """Position-wise FFN (1x1 convs == matmuls) + residual + layernorm."""
    vec = vec_ref[fi]                                    # (3, D)
    b2, ln_g, ln_b = vec[0:1, :], vec[1:2, :], vec[2:3, :]
    h = jnp.dot(x, w1_ref[fi], preferred_element_type=jnp.float32) + b1_ref[fi]
    h = jnp.maximum(h, 0.0)                              # ReLU
    y = jnp.dot(h, w2_ref[fi], preferred_element_type=jnp.float32) + b2
    return _layernorm_torchstyle(y + x, ln_g, ln_b)


# ----------------------------- fused kernel ----------------------------------
def fused_transformer_kernel(src_ref, tgt_ref,
                             mha_wqkv, mha_wproj, mha_vec,
                             ffn_w1, ffn_b1, ffn_w2, ffn_vec,
                             proj_w, out_ref):
    """Whole forward pass in one program. No grid; everything resident in VMEM."""
    # ---- encoder stack ----
    enc = src_ref[...]                                   # (B*L_SRC, D)
    for l in range(N_LAYERS):
        enc = _mha(enc, enc, L_SRC, L_SRC, l, mha_wqkv, mha_wproj, mha_vec)
        enc = _ffn(enc, l, ffn_w1, ffn_b1, ffn_w2, ffn_vec)

    # ---- decoder stack (masks in the reference are computed but never used) ----
    dec = tgt_ref[...]                                   # (B*L_TGT, D)
    for l in range(N_LAYERS):
        dec = _mha(dec, dec, L_TGT, L_TGT, N_LAYERS + 2 * l,
                   mha_wqkv, mha_wproj, mha_vec)
        dec = _mha(dec, enc, L_TGT, L_SRC, N_LAYERS + 2 * l + 1,
                   mha_wqkv, mha_wproj, mha_vec)
        dec = _ffn(dec, N_LAYERS + l, ffn_w1, ffn_b1, ffn_w2, ffn_vec)

    # ---- vocab projection (lane-padded to 128 for a dense, unmasked store) ----
    out_ref[...] = jnp.dot(dec, proj_w[...], preferred_element_type=jnp.float32)


# ----------------------------- parameter init --------------------------------
def _xavier_normal(key, shape, fan_in, fan_out):
    std = math.sqrt(2.0 / (fan_in + fan_out))
    return jax.random.normal(key, shape, dtype=jnp.float32) * std


def init_mha(key):
    k1, k2, k3, k4 = jax.random.split(key, 4)
    inv_temper = 1.0 / math.sqrt(D_MODEL)   # fold 1/sqrt(d_model) into W_q
    w_qs = _xavier_normal(k1, (N_HEAD, D_MODEL, D_K), D_MODEL, D_K) * inv_temper
    w_ks = _xavier_normal(k2, (N_HEAD, D_MODEL, D_K), D_MODEL, D_K)
    w_vs = _xavier_normal(k3, (N_HEAD, D_MODEL, D_V), D_MODEL, D_V)
    wqkv = jnp.concatenate([w_qs, w_ks, w_vs], axis=0)          # (3*H, D, d_k)
    # torch Linear weight is (d_out, d_in); stored pre-transposed (H*d_v, D)
    # and split head-major into (H, d_v, D) for the fused per-head out-proj.
    w_proj = _xavier_normal(k4, (HDV, D_MODEL), HDV, D_MODEL).reshape(N_HEAD, D_V, D_MODEL)
    vec = jnp.stack([jnp.zeros((D_MODEL,), jnp.float32),        # b_proj
                     jnp.ones((D_MODEL,), jnp.float32),         # ln gamma
                     jnp.zeros((D_MODEL,), jnp.float32)])       # ln beta
    return wqkv, w_proj, vec


def init_ffn(key):
    k1, k2 = jax.random.split(key, 2)
    # conv1d(d_model, d_inner, 1) weight == (d_inner, d_model); pre-transposed.
    w1 = _xavier_normal(k1, (D_MODEL, D_INNER), D_MODEL, D_INNER)
    b1 = jnp.zeros((1, D_INNER), jnp.float32)
    w2 = _xavier_normal(k2, (D_INNER, D_MODEL), D_INNER, D_MODEL)
    vec = jnp.stack([jnp.zeros((D_MODEL,), jnp.float32),        # b2
                     jnp.ones((D_MODEL,), jnp.float32),         # ln gamma
                     jnp.zeros((D_MODEL,), jnp.float32)])       # ln beta
    return w1, b1, w2, vec


def init_params(key):
    keys = jax.random.split(key, N_MHA + N_FFN + 1)
    it = iter(keys)
    # MHA order: enc0, enc1, dec0_slf, dec0_enc, dec1_slf, dec1_enc
    mhas = [init_mha(next(it)) for _ in range(N_MHA)]
    # FFN order: enc0, enc1, dec0, dec1
    ffns = [init_ffn(next(it)) for _ in range(N_FFN)]
    # tgt_word_proj: Linear(d_model, n_vocab, bias=False); pre-transposed and
    # lane-padded to 128 columns (extra columns zero, sliced off outside).
    # TODO(synk): reference shares this weight with a nonexistent tgt_word_emb.
    proj = _xavier_normal(next(it), (D_MODEL, N_VOCAB), D_MODEL, N_VOCAB)
    proj_pad = jnp.zeros((D_MODEL, VOCAB_PAD), jnp.float32).at[:, :N_VOCAB].set(proj)
    return {
        "mha_wqkv": jnp.concatenate([m[0] for m in mhas], axis=0),   # (36, 32, 16)
        "mha_wproj": jnp.concatenate([m[1] for m in mhas], axis=0),  # (12, 16, 32)
        "mha_vec": jnp.stack([m[2] for m in mhas], axis=0),          # (6, 3, 32)
        "ffn_w1": jnp.stack([f[0] for f in ffns], axis=0),           # (4, 32, 64)
        "ffn_b1": jnp.stack([f[1] for f in ffns], axis=0),           # (4, 1, 64)
        "ffn_w2": jnp.stack([f[2] for f in ffns], axis=0),           # (4, 64, 32)
        "ffn_vec": jnp.stack([f[3] for f in ffns], axis=0),          # (4, 3, 32)
        "proj_w": proj_pad,                                          # (32, 128)
    }


# ----------------------------- forward pass ----------------------------------
@jax.jit
def transformer_forward(params, src_x, tgt_x_full):
    # mirrors tgt_seq = tgt_seq[:, :-1]
    tgt_x = tgt_x_full[:, :-1, :]
    src_flat = src_x.reshape(B * L_SRC, D_MODEL)
    tgt_flat = tgt_x.reshape(B * L_TGT, D_MODEL)

    padded_logits = pl.pallas_call(
        fused_transformer_kernel,
        out_shape=jax.ShapeDtypeStruct((B * L_TGT, VOCAB_PAD), jnp.float32),
    )(src_flat, tgt_flat,
      params["mha_wqkv"], params["mha_wproj"], params["mha_vec"],
      params["ffn_w1"], params["ffn_b1"], params["ffn_w2"], params["ffn_vec"],
      params["proj_w"])

    # (B*L_TGT, N_VOCAB) == seq_logit.view(-1, n_vocab) in the reference
    return padded_logits[:, :N_VOCAB]


# ----------------------------- main -------------------------------------------
if __name__ == "__main__":
    root = jax.random.PRNGKey(0)
    kp, ks, kt = jax.random.split(root, 3)

    params = init_params(kp)
    src_x = jax.random.normal(ks, (B, L_SRC, D_MODEL), dtype=jnp.float32)
    # target provided with one extra position; forward slices [:, :-1]
    tgt_x_full = jax.random.normal(kt, (B, L_TGT + 1, D_MODEL), dtype=jnp.float32)

    out = transformer_forward(params, src_x, tgt_x_full)
    jax.block_until_ready(out)
    assert out.shape == (B * L_TGT, N_VOCAB), out.shape
    assert bool(jnp.all(jnp.isfinite(out)))
    print("KERNEL_OK")
</pallas_src>

<mosaic_0001>
module attributes {stable_mosaic.version = 11 : i64} {
  func.func @fused_transformer_kernel(%arg0: memref<16x32xf32, #tpu.memory_space<vmem>>, %arg1: memref<16x32xf32, #tpu.memory_space<vmem>>, %arg2: memref<36x32x16xf32, #tpu.memory_space<vmem>>, %arg3: memref<12x16x32xf32, #tpu.memory_space<vmem>>, %arg4: memref<6x3x32xf32, #tpu.memory_space<vmem>>, %arg5: memref<4x32x64xf32, #tpu.memory_space<vmem>>, %arg6: memref<4x1x64xf32, #tpu.memory_space<vmem>>, %arg7: memref<4x64x32xf32, #tpu.memory_space<vmem>>, %arg8: memref<4x3x32xf32, #tpu.memory_space<vmem>>, %arg9: memref<32x128xf32, #tpu.memory_space<vmem>>, %arg10: memref<16x128xf32, #tpu.memory_space<vmem>>) attributes {dimension_semantics = [], scalar_prefetch = 0 : i64, scratch_operands = 0 : i64, tpu.core_type = #tpu.core_type<tc>} {
    %c0 = arith.constant 0 : index
    %c0_0 = arith.constant 0 : index
    %0 = vector.load %arg0[%c0, %c0_0] : memref<16x32xf32, #tpu.memory_space<vmem>>, vector<16x32xf32>
    %c0_1 = arith.constant 0 : index
    %c0_2 = arith.constant 0 : index
    %c0_3 = arith.constant 0 : index
    %1 = vector.load %arg4[%c0_1, %c0_2, %c0_3] : memref<6x3x32xf32, #tpu.memory_space<vmem>>, vector<1x3x32xf32>
    %2 = vector.shape_cast %1 : vector<1x3x32xf32> to vector<3x32xf32>
    %3 = vector.extract_strided_slice %2 {offsets = [0, 0], sizes = [1, 32], strides = [1, 1]} : vector<3x32xf32> to vector<1x32xf32>
    %4 = vector.extract_strided_slice %2 {offsets = [1, 0], sizes = [1, 32], strides = [1, 1]} : vector<3x32xf32> to vector<1x32xf32>
    %5 = vector.extract_strided_slice %2 {offsets = [2, 0], sizes = [1, 32], strides = [1, 1]} : vector<3x32xf32> to vector<1x32xf32>
    %c0_4 = arith.constant 0 : index
    %c0_5 = arith.constant 0 : index
    %c0_6 = arith.constant 0 : index
    %6 = vector.load %arg2[%c0_4, %c0_5, %c0_6] : memref<36x32x16xf32, #tpu.memory_space<vmem>>, vector<1x32x16xf32>
    %7 = vector.shape_cast %6 : vector<1x32x16xf32> to vector<32x16xf32>
    %c2 = arith.constant 2 : index
    %c0_7 = arith.constant 0 : index
    %c0_8 = arith.constant 0 : index
    %8 = vector.load %arg2[%c2, %c0_7, %c0_8] : memref<36x32x16xf32, #tpu.memory_space<vmem>>, vector<1x32x16xf32>
    %9 = vector.shape_cast %8 : vector<1x32x16xf32> to vector<32x16xf32>
    %c4 = arith.constant 4 : index
    %c0_9 = arith.constant 0 : index
    %c0_10 = arith.constant 0 : index
    %10 = vector.load %arg2[%c4, %c0_9, %c0_10] : memref<36x32x16xf32, #tpu.memory_space<vmem>>, vector<1x32x16xf32>
    %11 = vector.shape_cast %10 : vector<1x32x16xf32> to vector<32x16xf32>
    %c0_11 = arith.constant 0 : index
    %c0_12 = arith.constant 0 : index
    %c0_13 = arith.constant 0 : index
    %12 = vector.load %arg3[%c0_11, %c0_12, %c0_13] : memref<12x16x32xf32, #tpu.memory_space<vmem>>, vector<1x16x32xf32>
    %13 = vector.shape_cast %12 : vector<1x16x32xf32> to vector<16x32xf32>
    %cst = arith.constant dense<0.000000e+00> : vector<16x16xf32>
    %14 = tpu.matmul %0, %7, %cst {dimension_numbers = #tpu.dot_dimension_numbers<[1], [0], [0], [1], [0, 0, 1, 1], [], []>} : vector<16x32xf32>, vector<32x16xf32>, vector<16x16xf32> -> vector<16x16xf32>
    %cst_14 = arith.constant dense<0.000000e+00> : vector<16x16xf32>
    %15 = tpu.matmul %0, %9, %cst_14 {dimension_numbers = #tpu.dot_dimension_numbers<[1], [0], [0], [1], [0, 0, 1, 1], [], []>} : vector<16x32xf32>, vector<32x16xf32>, vector<16x16xf32> -> vector<16x16xf32>
    %cst_15 = arith.constant dense<0.000000e+00> : vector<16x16xf32>
    %16 = tpu.matmul %0, %11, %cst_15 {dimension_numbers = #tpu.dot_dimension_numbers<[1], [0], [0], [1], [0, 0, 1, 1], [], []>} : vector<16x32xf32>, vector<32x16xf32>, vector<16x16xf32> -> vector<16x16xf32>
    %17 = vector.extract_strided_slice %14 {offsets = [0, 0], sizes = [8, 16], strides = [1, 1]} : vector<16x16xf32> to vector<8x16xf32>
    %18 = vector.extract_strided_slice %15 {offsets = [0, 0], sizes = [8, 16], strides = [1, 1]} : vector<16x16xf32> to vector<8x16xf32>
    %19 = vector.extract_strided_slice %16 {offsets = [0, 0], sizes = [8, 16], strides = [1, 1]} : vector<16x16xf32> to vector<8x16xf32>
    %cst_16 = arith.constant dense<0.000000e+00> : vector<8x8xf32>
    %20 = tpu.matmul %17, %18, %cst_16 {dimension_numbers = #tpu.dot_dimension_numbers<[1], [1], [0], [0], [0, 0, 1, 0], [], []>} : vector<8x16xf32>, vector<8x16xf32>, vector<8x8xf32> -> vector<8x8xf32>
    %cst_17 = arith.constant dense<0xFF800000> : vector<8xf32>
    %21 = vector.multi_reduction <maximumf>, %20, %cst_17 [1] : vector<8x8xf32> to vector<8xf32>
    %22 = vector.shape_cast %21 : vector<8xf32> to vector<8x1xf32>
    %23 = vector.broadcast %22 : vector<8x1xf32> to vector<8x8xf32>
    %24 = arith.subf %20, %23 : vector<8x8xf32>
    %25 = math.exp %24 : vector<8x8xf32>
    %cst_18 = arith.constant dense<0.000000e+00> : vector<8xf32>
    %26 = vector.multi_reduction <add>, %25, %cst_18 [1] : vector<8x8xf32> to vector<8xf32>
    %27 = vector.shape_cast %26 : vector<8xf32> to vector<8x1xf32>
    %28 = tpu.reciprocal %27 : vector<8x1xf32> -> vector<8x1xf32>
    %29 = vector.broadcast %28 : vector<8x1xf32> to vector<8x8xf32>
    %30 = arith.mulf %25, %29 : vector<8x8xf32>
    %cst_19 = arith.constant dense<0.000000e+00> : vector<8x16xf32>
    %31 = tpu.matmul %30, %19, %cst_19 {dimension_numbers = #tpu.dot_dimension_numbers<[1], [0], [0], [1], [0, 0, 1, 1], [], []>} : vector<8x8xf32>, vector<8x16xf32>, vector<8x16xf32> -> vector<8x16xf32>
    %cst_20 = arith.constant dense<0.000000e+00> : vector<8x32xf32>
    %32 = tpu.matmul %31, %13, %cst_20 {dimension_numbers = #tpu.dot_dimension_numbers<[1], [0], [0], [1], [0, 0, 1, 1], [], []>} : vector<8x16xf32>, vector<16x32xf32>, vector<8x32xf32> -> vector<8x32xf32>
    %33 = vector.extract_strided_slice %14 {offsets = [8, 0], sizes = [8, 16], strides = [1, 1]} : vector<16x16xf32> to vector<8x16xf32>
    %34 = vector.extract_strided_slice %15 {offsets = [8, 0], sizes = [8, 16], strides = [1, 1]} : vector<16x16xf32> to vector<8x16xf32>
    %35 = vector.extract_strided_slice %16 {offsets = [8, 0], sizes = [8, 16], strides = [1, 1]} : vector<16x16xf32> to vector<8x16xf32>
    %cst_21 = arith.constant dense<0.000000e+00> : vector<8x8xf32>
    %36 = tpu.matmul %33, %34, %cst_21 {dimension_numbers = #tpu.dot_dimension_numbers<[1], [1], [0], [0], [0, 0, 1, 0], [], []>} : vector<8x16xf32>, vector<8x16xf32>, vector<8x8xf32> -> vector<8x8xf32>
    %cst_22 = arith.constant dense<0xFF800000> : vector<8xf32>
    %37 = vector.multi_reduction <maximumf>, %36, %cst_22 [1] : vector<8x8xf32> to vector<8xf32>
    %38 = vector.shape_cast %37 : vector<8xf32> to vector<8x1xf32>
    %39 = vector.broadcast %38 : vector<8x1xf32> to vector<8x8xf32>
    %40 = arith.subf %36, %39 : vector<8x8xf32>
    %41 = math.exp %40 : vector<8x8xf32>
    %cst_23 = arith.constant dense<0.000000e+00> : vector<8xf32>
    %42 = vector.multi_reduction <add>, %41, %cst_23 [1] : vector<8x8xf32> to vector<8xf32>
    %43 = vector.shape_cast %42 : vector<8xf32> to vector<8x1xf32>
    %44 = tpu.reciprocal %43 : vector<8x1xf32> -> vector<8x1xf32>
    %45 = vector.broadcast %44 : vector<8x1xf32> to vector<8x8xf32>
    %46 = arith.mulf %41, %45 : vector<8x8xf32>
    %cst_24 = arith.constant dense<0.000000e+00> : vector<8x16xf32>
    %47 = tpu.matmul %46, %35, %cst_24 {dimension_numbers = #tpu.dot_dimension_numbers<[1], [0], [0], [1], [0, 0, 1, 1], [], []>} : vector<8x8xf32>, vector<8x16xf32>, vector<8x16xf32> -> vector<8x16xf32>
    %cst_25 = arith.constant dense<0.000000e+00> : vector<8x32xf32>
    %48 = tpu.matmul %47, %13, %cst_25 {dimension_numbers = #tpu.dot_dimension_numbers<[1], [0], [0], [1], [0, 0, 1, 1], [], []>} : vector<8x16xf32>, vector<16x32xf32>, vector<8x32xf32> -> vector<8x32xf32>
    %c1 = arith.constant 1 : index
    %c0_26 = arith.constant 0 : index
    %c0_27 = arith.constant 0 : index
    %49 = vector.load %arg2[%c1, %c0_26, %c0_27] : memref<36x32x16xf32, #tpu.memory_space<vmem>>, vector<1x32x16xf32>
    %50 = vector.shape_cast %49 : vector<1x32x16xf32> to vector<32x16xf32>
    %c3 = arith.constant 3 : index
    %c0_28 = arith.constant 0 : index
    %c0_29 = arith.constant 0 : index
    %51 = vector.load %arg2[%c3, %c0_28, %c0_29] : memref<36x32x16xf32, #tpu.memory_space<vmem>>, vector<1x32x16xf32>
    %52 = vector.shape_cast %51 : vector<1x32x16xf32> to vector<32x16xf32>
    %c5 = arith.constant 5 : index
    %c0_30 = arith.constant 0 : index
    %c0_31 = arith.constant 0 : index
    %53 = vector.load %arg2[%c5, %c0_30, %c0_31] : memref<36x32x16xf32, #tpu.memory_space<vmem>>, vector<1x32x16xf32>
    %54 = vector.shape_cast %53 : vector<1x32x16xf32> to vector<32x16xf32>
    %c1_32 = arith.constant 1 : index
    %c0_33 = arith.constant 0 : index
    %c0_34 = arith.constant 0 : index
    %55 = vector.load %arg3[%c1_32, %c0_33, %c0_34] : memref<12x16x32xf32, #tpu.memory_space<vmem>>, vector<1x16x32xf32>
    %56 = vector.shape_cast %55 : vector<1x16x32xf32> to vector<16x32xf32>
    %cst_35 = arith.constant dense<0.000000e+00> : vector<16x16xf32>
    %57 = tpu.matmul %0, %50, %cst_35 {dimension_numbers = #tpu.dot_dimension_numbers<[1], [0], [0], [1], [0, 0, 1, 1], [], []>} : vector<16x32xf32>, vector<32x16xf32>, vector<16x16xf32> -> vector<16x16xf32>
    %cst_36 = arith.constant dense<0.000000e+00> : vector<16x16xf32>
    %58 = tpu.matmul %0, %52, %cst_36 {dimension_numbers = #tpu.dot_dimension_numbers<[1], [0], [0], [1], [0, 0, 1, 1], [], []>} : vector<16x32xf32>, vector<32x16xf32>, vector<16x16xf32> -> vector<16x16xf32>
    %cst_37 = arith.constant dense<0.000000e+00> : vector<16x16xf32>
    %59 = tpu.matmul %0, %54, %cst_37 {dimension_numbers = #tpu.dot_dimension_numbers<[1], [0], [0], [1], [0, 0, 1, 1], [], []>} : vector<16x32xf32>, vector<32x16xf32>, vector<16x16xf32> -> vector<16x16xf32>
    %60 = vector.extract_strided_slice %57 {offsets = [0, 0], sizes = [8, 16], strides = [1, 1]} : vector<16x16xf32> to vector<8x16xf32>
    %61 = vector.extract_strided_slice %58 {offsets = [0, 0], sizes = [8, 16], strides = [1, 1]} : vector<16x16xf32> to vector<8x16xf32>
    %62 = vector.extract_strided_slice %59 {offsets = [0, 0], sizes = [8, 16], strides = [1, 1]} : vector<16x16xf32> to vector<8x16xf32>
    %cst_38 = arith.constant dense<0.000000e+00> : vector<8x8xf32>
    %63 = tpu.matmul %60, %61, %cst_38 {dimension_numbers = #tpu.dot_dimension_numbers<[1], [1], [0], [0], [0, 0, 1, 0], [], []>} : vector<8x16xf32>, vector<8x16xf32>, vector<8x8xf32> -> vector<8x8xf32>
    %cst_39 = arith.constant dense<0xFF800000> : vector<8xf32>
    %64 = vector.multi_reduction <maximumf>, %63, %cst_39 [1] : vector<8x8xf32> to vector<8xf32>
    %65 = vector.shape_cast %64 : vector<8xf32> to vector<8x1xf32>
    %66 = vector.broadcast %65 : vector<8x1xf32> to vector<8x8xf32>
    %67 = arith.subf %63, %66 : vector<8x8xf32>
    %68 = math.exp %67 : vector<8x8xf32>
    %cst_40 = arith.constant dense<0.000000e+00> : vector<8xf32>
    %69 = vector.multi_reduction <add>, %68, %cst_40 [1] : vector<8x8xf32> to vector<8xf32>
    %70 = vector.shape_cast %69 : vector<8xf32> to vector<8x1xf32>
    %71 = tpu.reciprocal %70 : vector<8x1xf32> -> vector<8x1xf32>
    %72 = vector.broadcast %71 : vector<8x1xf32> to vector<8x8xf32>
    %73 = arith.mulf %68, %72 : vector<8x8xf32>
    %cst_41 = arith.constant dense<0.000000e+00> : vector<8x16xf32>
    %74 = tpu.matmul %73, %62, %cst_41 {dimension_numbers = #tpu.dot_dimension_numbers<[1], [0], [0], [1], [0, 0, 1, 1], [], []>} : vector<8x8xf32>, vector<8x16xf32>, vector<8x16xf32> -> vector<8x16xf32>
    %cst_42 = arith.constant dense<0.000000e+00> : vector<8x32xf32>
    %75 = tpu.matmul %74, %56, %cst_42 {dimension_numbers = #tpu.dot_dimension_numbers<[1], [0], [0], [1], [0, 0, 1, 1], [], []>} : vector<8x16xf32>, vector<16x32xf32>, vector<8x32xf32> -> vector<8x32xf32>
    %76 = arith.addf %32, %75 : vector<8x32xf32>
    %77 = vector.extract_strided_slice %57 {offsets = [8, 0], sizes = [8, 16], strides = [1, 1]} : vector<16x16xf32> to vector<8x16xf32>
    %78 = vector.extract_strided_slice %58 {offsets = [8, 0], sizes = [8, 16], strides = [1, 1]} : vector<16x16xf32> to vector<8x16xf32>
    %79 = vector.extract_strided_slice %59 {offsets = [8, 0], sizes = [8, 16], strides = [1, 1]} : vector<16x16xf32> to vector<8x16xf32>
    %cst_43 = arith.constant dense<0.000000e+00> : vector<8x8xf32>
    %80 = tpu.matmul %77, %78, %cst_43 {dimension_numbers = #tpu.dot_dimension_numbers<[1], [1], [0], [0], [0, 0, 1, 0], [], []>} : vector<8x16xf32>, vector<8x16xf32>, vector<8x8xf32> -> vector<8x8xf32>
    %cst_44 = arith.constant dense<0xFF800000> : vector<8xf32>
    %81 = vector.multi_reduction <maximumf>, %80, %cst_44 [1] : vector<8x8xf32> to vector<8xf32>
    %82 = vector.shape_cast %81 : vector<8xf32> to vector<8x1xf32>
    %83 = vector.broadcast %82 : vector<8x1xf32> to vector<8x8xf32>
    %84 = arith.subf %80, %83 : vector<8x8xf32>
    %85 = math.exp %84 : vector<8x8xf32>
    %cst_45 = arith.constant dense<0.000000e+00> : vector<8xf32>
    %86 = vector.multi_reduction <add>, %85, %cst_45 [1] : vector<8x8xf32> to vector<8xf32>
    %87 = vector.shape_cast %86 : vector<8xf32> to vector<8x1xf32>
    %88 = tpu.reciprocal %87 : vector<8x1xf32> -> vector<8x1xf32>
    %89 = vector.broadcast %88 : vector<8x1xf32> to vector<8x8xf32>
    %90 = arith.mulf %85, %89 : vector<8x8xf32>
    %cst_46 = arith.constant dense<0.000000e+00> : vector<8x16xf32>
    %91 = tpu.matmul %90, %79, %cst_46 {dimension_numbers = #tpu.dot_dimension_numbers<[1], [0], [0], [1], [0, 0, 1, 1], [], []>} : vector<8x8xf32>, vector<8x16xf32>, vector<8x16xf32> -> vector<8x16xf32>
    %cst_47 = arith.constant dense<0.000000e+00> : vector<8x32xf32>
    %92 = tpu.matmul %91, %56, %cst_47 {dimension_numbers = #tpu.dot_dimension_numbers<[1], [0], [0], [1], [0, 0, 1, 1], [], []>} : vector<8x16xf32>, vector<16x32xf32>, vector<8x32xf32> -> vector<8x32xf32>
    %93 = arith.addf %48, %92 : vector<8x32xf32>
    %94 = tpu.concatenate %76, %93 in 0 : vector<8x32xf32>, vector<8x32xf32> -> vector<16x32xf32>
    %95 = vector.broadcast %3 : vector<1x32xf32> to vector<16x32xf32>
    %96 = arith.addf %94, %95 : vector<16x32xf32>
    %97 = arith.addf %96, %0 : vector<16x32xf32>
    %cst_48 = arith.constant dense<0.000000e+00> : vector<16xf32>
    %98 = vector.multi_reduction <add>, %97, %cst_48 [1] : vector<16x32xf32> to vector<16xf32>
    %99 = vector.shape_cast %98 : vector<16xf32> to vector<16x1xf32>
    %cst_49 = arith.constant 3.200000e+01 : f32
    %100 = vector.broadcast %cst_49 : f32 to vector<16x1xf32>
    %101 = arith.divf %99, %100 : vector<16x1xf32>
    %102 = vector.broadcast %101 : vector<16x1xf32> to vector<16x32xf32>
    %103 = arith.subf %97, %102 : vector<16x32xf32>
    %104 = arith.mulf %103, %103 : vector<16x32xf32>
    %cst_50 = arith.constant dense<0.000000e+00> : vector<16xf32>
    %105 = vector.multi_reduction <add>, %104, %cst_50 [1] : vector<16x32xf32> to vector<16xf32>
    %106 = vector.shape_cast %105 : vector<16xf32> to vector<16x1xf32>
    %cst_51 = arith.constant 0.0322580636 : f32
    %107 = vector.broadcast %cst_51 : f32 to vector<16x1xf32>
    %108 = arith.mulf %106, %107 : vector<16x1xf32>
    %109 = math.sqrt %108 : vector<16x1xf32>
    %cst_52 = arith.constant 1.000000e-03 : f32
    %110 = vector.broadcast %cst_52 : f32 to vector<16x1xf32>
    %111 = arith.addf %109, %110 : vector<16x1xf32>
    %112 = tpu.reciprocal %111 : vector<16x1xf32> -> vector<16x1xf32>
    %113 = vector.broadcast %101 : vector<16x1xf32> to vector<16x32xf32>
    %114 = arith.subf %97, %113 : vector<16x32xf32>
    %115 = vector.broadcast %112 : vector<16x1xf32> to vector<16x32xf32>
    %116 = arith.mulf %114, %115 : vector<16x32xf32>
    %117 = vector.broadcast %4 : vector<1x32xf32> to vector<16x32xf32>
    %118 = arith.mulf %116, %117 : vector<16x32xf32>
    %119 = vector.broadcast %5 : vector<1x32xf32> to vector<16x32xf32>
    %120 = arith.addf %118, %119 : vector<16x32xf32>
    %c0_53 = arith.constant 0 : index
    %c0_54 = arith.constant 0 : index
    %c0_55 = arith.constant 0 : index
    %121 = vector.load %arg8[%c0_53, %c0_54, %c0_55] : memref<4x3x32xf32, #tpu.memory_space<vmem>>, vector<1x3x32xf32>
    %122 = vector.shape_cast %121 : vector<1x3x32xf32> to vector<3x32xf32>
    %123 = vector.extract_strided_slice %122 {offsets = [0, 0], sizes = [1, 32], strides = [1, 1]} : vector<3x32xf32> to vector<1x32xf32>
    %124 = vector.extract_strided_slice %122 {offsets = [1, 0], sizes = [1, 32], strides = [1, 1]} : vector<3x32xf32> to vector<1x32xf32>
    %125 = vector.extract_strided_slice %122 {offsets = [2, 0], sizes = [1, 32], strides = [1, 1]} : vector<3x32xf32> to vector<1x32xf32>
    %c0_56 = arith.constant 0 : index
    %c0_57 = arith.constant 0 : index
    %c0_58 = arith.constant 0 : index
    %126 = vector.load %arg5[%c0_56, %c0_57, %c0_58] : memref<4x32x64xf32, #tpu.memory_space<vmem>>, vector<1x32x64xf32>
    %127 = vector.shape_cast %126 : vector<1x32x64xf32> to vector<32x64xf32>
    %cst_59 = arith.constant dense<0.000000e+00> : vector<16x64xf32>
    %128 = tpu.matmul %120, %127, %cst_59 {dimension_numbers = #tpu.dot_dimension_numbers<[1], [0], [0], [1], [0, 0, 1, 1], [], []>} : vector<16x32xf32>, vector<32x64xf32>, vector<16x64xf32> -> vector<16x64xf32>
    %c0_60 = arith.constant 0 : index
    %c0_61 = arith.constant 0 : index
    %c0_62 = arith.constant 0 : index
    %129 = vector.load %arg6[%c0_60, %c0_61, %c0_62] : memref<4x1x64xf32, #tpu.memory_space<vmem>>, vector<1x1x64xf32>
    %130 = vector.shape_cast %129 : vector<1x1x64xf32> to vector<1x64xf32>
    %131 = vector.broadcast %130 : vector<1x64xf32> to vector<16x64xf32>
    %132 = arith.addf %128, %131 : vector<16x64xf32>
    %cst_63 = arith.constant 0.000000e+00 : f32
    %133 = vector.broadcast %cst_63 : f32 to vector<16x64xf32>
    %134 = arith.maximumf %132, %133 : vector<16x64xf32>
    %c0_64 = arith.constant 0 : index
    %c0_65 = arith.constant 0 : index
    %c0_66 = arith.constant 0 : index
    %135 = vector.load %arg7[%c0_64, %c0_65, %c0_66] : memref<4x64x32xf32, #tpu.memory_space<vmem>>, vector<1x64x32xf32>
    %136 = vector.shape_cast %135 : vector<1x64x32xf32> to vector<64x32xf32>
    %cst_67 = arith.constant dense<0.000000e+00> : vector<16x32xf32>
    %137 = tpu.matmul %134, %136, %cst_67 {dimension_numbers = #tpu.dot_dimension_numbers<[1], [0], [0], [1], [0, 0, 1, 1], [], []>} : vector<16x64xf32>, vector<64x32xf32>, vector<16x32xf32> -> vector<16x32xf32>
    %138 = vector.broadcast %123 : vector<1x32xf32> to vector<16x32xf32>
    %139 = arith.addf %137, %138 : vector<16x32xf32>
    %140 = arith.addf %139, %120 : vector<16x32xf32>
    %cst_68 = arith.constant dense<0.000000e+00> : vector<16xf32>
    %141 = vector.multi_reduction <add>, %140, %cst_68 [1] : vector<16x32xf32> to vector<16xf32>
    %142 = vector.shape_cast %141 : vector<16xf32> to vector<16x1xf32>
    %cst_69 = arith.constant 3.200000e+01 : f32
    %143 = vector.broadcast %cst_69 : f32 to vector<16x1xf32>
    %144 = arith.divf %142, %143 : vector<16x1xf32>
    %145 = vector.broadcast %144 : vector<16x1xf32> to vector<16x32xf32>
    %146 = arith.subf %140, %145 : vector<16x32xf32>
    %147 = arith.mulf %146, %146 : vector<16x32xf32>
    %cst_70 = arith.constant dense<0.000000e+00> : vector<16xf32>
    %148 = vector.multi_reduction <add>, %147, %cst_70 [1] : vector<16x32xf32> to vector<16xf32>
    %149 = vector.shape_cast %148 : vector<16xf32> to vector<16x1xf32>
    %cst_71 = arith.constant 0.0322580636 : f32
    %150 = vector.broadcast %cst_71 : f32 to vector<16x1xf32>
    %151 = arith.mulf %149, %150 : vector<16x1xf32>
    %152 = math.sqrt %151 : vector<16x1xf32>
    %cst_72 = arith.constant 1.000000e-03 : f32
    %153 = vector.broadcast %cst_72 : f32 to vector<16x1xf32>
    %154 = arith.addf %152, %153 : vector<16x1xf32>
    %155 = tpu.reciprocal %154 : vector<16x1xf32> -> vector<16x1xf32>
    %156 = vector.broadcast %144 : vector<16x1xf32> to vector<16x32xf32>
    %157 = arith.subf %140, %156 : vector<16x32xf32>
    %158 = vector.broadcast %155 : vector<16x1xf32> to vector<16x32xf32>
    %159 = arith.mulf %157, %158 : vector<16x32xf32>
    %160 = vector.broadcast %124 : vector<1x32xf32> to vector<16x32xf32>
    %161 = arith.mulf %159, %160 : vector<16x32xf32>
    %162 = vector.broadcast %125 : vector<1x32xf32> to vector<16x32xf32>
    %163 = arith.addf %161, %162 : vector<16x32xf32>
    %c1_73 = arith.constant 1 : index
    %c0_74 = arith.constant 0 : index
    %c0_75 = arith.constant 0 : index
    %164 = vector.load %arg4[%c1_73, %c0_74, %c0_75] : memref<6x3x32xf32, #tpu.memory_space<vmem>>, vector<1x3x32xf32>
    %165 = vector.shape_cast %164 : vector<1x3x32xf32> to vector<3x32xf32>
    %166 = vector.extract_strided_slice %165 {offsets = [0, 0], sizes = [1, 32], strides = [1, 1]} : vector<3x32xf32> to vector<1x32xf32>
    %167 = vector.extract_strided_slice %165 {offsets = [1, 0], sizes = [1, 32], strides = [1, 1]} : vector<3x32xf32> to vector<1x32xf32>
    %168 = vector.extract_strided_slice %165 {offsets = [2, 0], sizes = [1, 32], strides = [1, 1]} : vector<3x32xf32> to vector<1x32xf32>
    %c6 = arith.constant 6 : index
    %c0_76 = arith.constant 0 : index
    %c0_77 = arith.constant 0 : index
    %169 = vector.load %arg2[%c6, %c0_76, %c0_77] : memref<36x32x16xf32, #tpu.memory_space<vmem>>, vector<1x32x16xf32>
    %170 = vector.shape_cast %169 : vector<1x32x16xf32> to vector<32x16xf32>
    %c8 = arith.constant 8 : index
    %c0_78 = arith.constant 0 : index
    %c0_79 = arith.constant 0 : index
    %171 = vector.load %arg2[%c8, %c0_78, %c0_79] : memref<36x32x16xf32, #tpu.memory_space<vmem>>, vector<1x32x16xf32>
    %172 = vector.shape_cast %171 : vector<1x32x16xf32> to vector<32x16xf32>
    %c10 = arith.constant 10 : index
    %c0_80 = arith.constant 0 : index
    %c0_81 = arith.constant 0 : index
    %173 = vector.load %arg2[%c10, %c0_80, %c0_81] : memref<36x32x16xf32, #tpu.memory_space<vmem>>, vector<1x32x16xf32>
    %174 = vector.shape_cast %173 : vector<1x32x16xf32> to vector<32x16xf32>
    %c2_82 = arith.constant 2 : index
    %c0_83 = arith.constant 0 : index
    %c0_84 = arith.constant 0 : index
    %175 = vector.load %arg3[%c2_82, %c0_83, %c0_84] : memref<12x16x32xf32, #tpu.memory_space<vmem>>, vector<1x16x32xf32>
    %176 = vector.shape_cast %175 : vector<1x16x32xf32> to vector<16x32xf32>
    %cst_85 = arith.constant dense<0.000000e+00> : vector<16x16xf32>
    %177 = tpu.matmul %163, %170, %cst_85 {dimension_numbers = #tpu.dot_dimension_numbers<[1], [0], [0], [1], [0, 0, 1, 1], [], []>} : vector<16x32xf32>, vector<32x16xf32>, vector<16x16xf32> -> vector<16x16xf32>
    %cst_86 = arith.constant dense<0.000000e+00> : vector<16x16xf32>
    %178 = tpu.matmul %163, %172, %cst_86 {dimension_numbers = #tpu.dot_dimension_numbers<[1], [0], [0], [1], [0, 0, 1, 1], [], []>} : vector<16x32xf32>, vector<32x16xf32>, vector<16x16xf32> -> vector<16x16xf32>
    %cst_87 = arith.constant dense<0.000000e+00> : vector<16x16xf32>
    %179 = tpu.matmul %163, %174, %cst_87 {dimension_numbers = #tpu.dot_dimension_numbers<[1], [0], [0], [1], [0, 0, 1, 1], [], []>} : vector<16x32xf32>, vector<32x16xf32>, vector<16x16xf32> -> vector<16x16xf32>
    %180 = vector.extract_strided_slice %177 {offsets = [0, 0], sizes = [8, 16], strides = [1, 1]} : vector<16x16xf32> to vector<8x16xf32>
    %181 = vector.extract_strided_slice %178 {offsets = [0, 0], sizes = [8, 16], strides = [1, 1]} : vector<16x16xf32> to vector<8x16xf32>
    %182 = vector.extract_strided_slice %179 {offsets = [0, 0], sizes = [8, 16], strides = [1, 1]} : vector<16x16xf32> to vector<8x16xf32>
    %cst_88 = arith.constant dense<0.000000e+00> : vector<8x8xf32>
    %183 = tpu.matmul %180, %181, %cst_88 {dimension_numbers = #tpu.dot_dimension_numbers<[1], [1], [0], [0], [0, 0, 1, 0], [], []>} : vector<8x16xf32>, vector<8x16xf32>, vector<8x8xf32> -> vector<8x8xf32>
    %cst_89 = arith.constant dense<0xFF800000> : vector<8xf32>
    %184 = vector.multi_reduction <maximumf>, %183, %cst_89 [1] : vector<8x8xf32> to vector<8xf32>
    %185 = vector.shape_cast %184 : vector<8xf32> to vector<8x1xf32>
    %186 = vector.broadcast %185 : vector<8x1xf32> to vector<8x8xf32>
    %187 = arith.subf %183, %186 : vector<8x8xf32>
    %188 = math.exp %187 : vector<8x8xf32>
    %cst_90 = arith.constant dense<0.000000e+00> : vector<8xf32>
    %189 = vector.multi_reduction <add>, %188, %cst_90 [1] : vector<8x8xf32> to vector<8xf32>
    %190 = vector.shape_cast %189 : vector<8xf32> to vector<8x1xf32>
    %191 = tpu.reciprocal %190 : vector<8x1xf32> -> vector<8x1xf32>
    %192 = vector.broadcast %191 : vector<8x1xf32> to vector<8x8xf32>
    %193 = arith.mulf %188, %192 : vector<8x8xf32>
    %cst_91 = arith.constant dense<0.000000e+00> : vector<8x16xf32>
    %194 = tpu.matmul %193, %182, %cst_91 {dimension_numbers = #tpu.dot_dimension_numbers<[1], [0], [0], [1], [0, 0, 1, 1], [], []>} : vector<8x8xf32>, vector<8x16xf32>, vector<8x16xf32> -> vector<8x16xf32>
    %cst_92 = arith.constant dense<0.000000e+00> : vector<8x32xf32>
    %195 = tpu.matmul %194, %176, %cst_92 {dimension_numbers = #tpu.dot_dimension_numbers<[1], [0], [0], [1], [0, 0, 1, 1], [], []>} : vector<8x16xf32>, vector<16x32xf32>, vector<8x32xf32> -> vector<8x32xf32>
    %196 = vector.extract_strided_slice %177 {offsets = [8, 0], sizes = [8, 16], strides = [1, 1]} : vector<16x16xf32> to vector<8x16xf32>
    %197 = vector.extract_strided_slice %178 {offsets = [8, 0], sizes = [8, 16], strides = [1, 1]} : vector<16x16xf32> to vector<8x16xf32>
    %198 = vector.extract_strided_slice %179 {offsets = [8, 0], sizes = [8, 16], strides = [1, 1]} : vector<16x16xf32> to vector<8x16xf32>
    %cst_93 = arith.constant dense<0.000000e+00> : vector<8x8xf32>
    %199 = tpu.matmul %196, %197, %cst_93 {dimension_numbers = #tpu.dot_dimension_numbers<[1], [1], [0], [0], [0, 0, 1, 0], [], []>} : vector<8x16xf32>, vector<8x16xf32>, vector<8x8xf32> -> vector<8x8xf32>
    %cst_94 = arith.constant dense<0xFF800000> : vector<8xf32>
    %200 = vector.multi_reduction <maximumf>, %199, %cst_94 [1] : vector<8x8xf32> to vector<8xf32>
    %201 = vector.shape_cast %200 : vector<8xf32> to vector<8x1xf32>
    %202 = vector.broadcast %201 : vector<8x1xf32> to vector<8x8xf32>
    %203 = arith.subf %199, %202 : vector<8x8xf32>
    %204 = math.exp %203 : vector<8x8xf32>
    %cst_95 = arith.constant dense<0.000000e+00> : vector<8xf32>
    %205 = vector.multi_reduction <add>, %204, %cst_95 [1] : vector<8x8xf32> to vector<8xf32>
    %206 = vector.shape_cast %205 : vector<8xf32> to vector<8x1xf32>
    %207 = tpu.reciprocal %206 : vector<8x1xf32> -> vector<8x1xf32>
    %208 = vector.broadcast %207 : vector<8x1xf32> to vector<8x8xf32>
    %209 = arith.mulf %204, %208 : vector<8x8xf32>
    %cst_96 = arith.constant dense<0.000000e+00> : vector<8x16xf32>
    %210 = tpu.matmul %209, %198, %cst_96 {dimension_numbers = #tpu.dot_dimension_numbers<[1], [0], [0], [1], [0, 0, 1, 1], [], []>} : vector<8x8xf32>, vector<8x16xf32>, vector<8x16xf32> -> vector<8x16xf32>
    %cst_97 = arith.constant dense<0.000000e+00> : vector<8x32xf32>
    %211 = tpu.matmul %210, %176, %cst_97 {dimension_numbers = #tpu.dot_dimension_numbers<[1], [0], [0], [1], [0, 0, 1, 1], [], []>} : vector<8x16xf32>, vector<16x32xf32>, vector<8x32xf32> -> vector<8x32xf32>
    %c7 = arith.constant 7 : index
    %c0_98 = arith.constant 0 : index
    %c0_99 = arith.constant 0 : index
    %212 = vector.load %arg2[%c7, %c0_98, %c0_99] : memref<36x32x16xf32, #tpu.memory_space<vmem>>, vector<1x32x16xf32>
    %213 = vector.shape_cast %212 : vector<1x32x16xf32> to vector<32x16xf32>
    %c9 = arith.constant 9 : index
    %c0_100 = arith.constant 0 : index
    %c0_101 = arith.constant 0 : index
    %214 = vector.load %arg2[%c9, %c0_100, %c0_101] : memref<36x32x16xf32, #tpu.memory_space<vmem>>, vector<1x32x16xf32>
    %215 = vector.shape_cast %214 : vector<1x32x16xf32> to vector<32x16xf32>
    %c11 = arith.constant 11 : index
    %c0_102 = arith.constant 0 : index
    %c0_103 = arith.constant 0 : index
    %216 = vector.load %arg2[%c11, %c0_102, %c0_103] : memref<36x32x16xf32, #tpu.memory_space<vmem>>, vector<1x32x16xf32>
    %217 = vector.shape_cast %216 : vector<1x32x16xf32> to vector<32x16xf32>
    %c3_104 = arith.constant 3 : index
    %c0_105 = arith.constant 0 : index
    %c0_106 = arith.constant 0 : index
    %218 = vector.load %arg3[%c3_104, %c0_105, %c0_106] : memref<12x16x32xf32, #tpu.memory_space<vmem>>, vector<1x16x32xf32>
    %219 = vector.shape_cast %218 : vector<1x16x32xf32> to vector<16x32xf32>
    %cst_107 = arith.constant dense<0.000000e+00> : vector<16x16xf32>
    %220 = tpu.matmul %163, %213, %cst_107 {dimension_numbers = #tpu.dot_dimension_numbers<[1], [0], [0], [1], [0, 0, 1, 1], [], []>} : vector<16x32xf32>, vector<32x16xf32>, vector<16x16xf32> -> vector<16x16xf32>
    %cst_108 = arith.constant dense<0.000000e+00> : vector<16x16xf32>
    %221 = tpu.matmul %163, %215, %cst_108 {dimension_numbers = #tpu.dot_dimension_numbers<[1], [0], [0], [1], [0, 0, 1, 1], [], []>} : vector<16x32xf32>, vector<32x16xf32>, vector<16x16xf32> -> vector<16x16xf32>
    %cst_109 = arith.constant dense<0.000000e+00> : vector<16x16xf32>
    %222 = tpu.matmul %163, %217, %cst_109 {dimension_numbers = #tpu.dot_dimension_numbers<[1], [0], [0], [1], [0, 0, 1, 1], [], []>} : vector<16x32xf32>, vector<32x16xf32>, vector<16x16xf32> -> vector<16x16xf32>
    %223 = vector.extract_strided_slice %220 {offsets = [0, 0], sizes = [8, 16], strides = [1, 1]} : vector<16x16xf32> to vector<8x16xf32>
    %224 = vector.extract_strided_slice %221 {offsets = [0, 0], sizes = [8, 16], strides = [1, 1]} : vector<16x16xf32> to vector<8x16xf32>
    %225 = vector.extract_strided_slice %222 {offsets = [0, 0], sizes = [8, 16], strides = [1, 1]} : vector<16x16xf32> to vector<8x16xf32>
    %cst_110 = arith.constant dense<0.000000e+00> : vector<8x8xf32>
    %226 = tpu.matmul %223, %224, %cst_110 {dimension_numbers = #tpu.dot_dimension_numbers<[1], [1], [0], [0], [0, 0, 1, 0], [], []>} : vector<8x16xf32>, vector<8x16xf32>, vector<8x8xf32> -> vector<8x8xf32>
    %cst_111 = arith.constant dense<0xFF800000> : vector<8xf32>
    %227 = vector.multi_reduction <maximumf>, %226, %cst_111 [1] : vector<8x8xf32> to vector<8xf32>
    %228 = vector.shape_cast %227 : vector<8xf32> to vector<8x1xf32>
    %229 = vector.broadcast %228 : vector<8x1xf32> to vector<8x8xf32>
    %230 = arith.subf %226, %229 : vector<8x8xf32>
    %231 = math.exp %230 : vector<8x8xf32>
    %cst_112 = arith.constant dense<0.000000e+00> : vector<8xf32>
    %232 = vector.multi_reduction <add>, %231, %cst_112 [1] : vector<8x8xf32> to vector<8xf32>
    %233 = vector.shape_cast %232 : vector<8xf32> to vector<8x1xf32>
    %234 = tpu.reciprocal %233 : vector<8x1xf32> -> vector<8x1xf32>
    %235 = vector.broadcast %234 : vector<8x1xf32> to vector<8x8xf32>
    %236 = arith.mulf %231, %235 : vector<8x8xf32>
    %cst_113 = arith.constant dense<0.000000e+00> : vector<8x16xf32>
    %237 = tpu.matmul %236, %225, %cst_113 {dimension_numbers = #tpu.dot_dimension_numbers<[1], [0], [0], [1], [0, 0, 1, 1], [], []>} : vector<8x8xf32>, vector<8x16xf32>, vector<8x16xf32> -> vector<8x16xf32>
    %cst_114 = arith.constant dense<0.000000e+00> : vector<8x32xf32>
    %238 = tpu.matmul %237, %219, %cst_114 {dimension_numbers = #tpu.dot_dimension_numbers<[1], [0], [0], [1], [0, 0, 1, 1], [], []>} : vector<8x16xf32>, vector<16x32xf32>, vector<8x32xf32> -> vector<8x32xf32>
    %239 = arith.addf %195, %238 : vector<8x32xf32>
    %240 = vector.extract_strided_slice %220 {offsets = [8, 0], sizes = [8, 16], strides = [1, 1]} : vector<16x16xf32> to vector<8x16xf32>
    %241 = vector.extract_strided_slice %221 {offsets = [8, 0], sizes = [8, 16], strides = [1, 1]} : vector<16x16xf32> to vector<8x16xf32>
    %242 = vector.extract_strided_slice %222 {offsets = [8, 0], sizes = [8, 16], strides = [1, 1]} : vector<16x16xf32> to vector<8x16xf32>
    %cst_115 = arith.constant dense<0.000000e+00> : vector<8x8xf32>
    %243 = tpu.matmul %240, %241, %cst_115 {dimension_numbers = #tpu.dot_dimension_numbers<[1], [1], [0], [0], [0, 0, 1, 0], [], []>} : vector<8x16xf32>, vector<8x16xf32>, vector<8x8xf32> -> vector<8x8xf32>
    %cst_116 = arith.constant dense<0xFF800000> : vector<8xf32>
    %244 = vector.multi_reduction <maximumf>, %243, %cst_116 [1] : vector<8x8xf32> to vector<8xf32>
    %245 = vector.shape_cast %244 : vector<8xf32> to vector<8x1xf32>
    %246 = vector.broadcast %245 : vector<8x1xf32> to vector<8x8xf32>
    %247 = arith.subf %243, %246 : vector<8x8xf32>
    %248 = math.exp %247 : vector<8x8xf32>
    %cst_117 = arith.constant dense<0.000000e+00> : vector<8xf32>
    %249 = vector.multi_reduction <add>, %248, %cst_117 [1] : vector<8x8xf32> to vector<8xf32>
    %250 = vector.shape_cast %249 : vector<8xf32> to vector<8x1xf32>
    %251 = tpu.reciprocal %250 : vector<8x1xf32> -> vector<8x1xf32>
    %252 = vector.broadcast %251 : vector<8x1xf32> to vector<8x8xf32>
    %253 = arith.mulf %248, %252 : vector<8x8xf32>
    %cst_118 = arith.constant dense<0.000000e+00> : vector<8x16xf32>
    %254 = tpu.matmul %253, %242, %cst_118 {dimension_numbers = #tpu.dot_dimension_numbers<[1], [0], [0], [1], [0, 0, 1, 1], [], []>} : vector<8x8xf32>, vector<8x16xf32>, vector<8x16xf32> -> vector<8x16xf32>
    %cst_119 = arith.constant dense<0.000000e+00> : vector<8x32xf32>
    %255 = tpu.matmul %254, %219, %cst_119 {dimension_numbers = #tpu.dot_dimension_numbers<[1], [0], [0], [1], [0, 0, 1, 1], [], []>} : vector<8x16xf32>, vector<16x32xf32>, vector<8x32xf32> -> vector<8x32xf32>
    %256 = arith.addf %211, %255 : vector<8x32xf32>
    %257 = tpu.concatenate %239, %256 in 0 : vector<8x32xf32>, vector<8x32xf32> -> vector<16x32xf32>
    %258 = vector.broadcast %166 : vector<1x32xf32> to vector<16x32xf32>
    %259 = arith.addf %257, %258 : vector<16x32xf32>
    %260 = arith.addf %259, %163 : vector<16x32xf32>
    %cst_120 = arith.constant dense<0.000000e+00> : vector<16xf32>
    %261 = vector.multi_reduction <add>, %260, %cst_120 [1] : vector<16x32xf32> to vector<16xf32>
    %262 = vector.shape_cast %261 : vector<16xf32> to vector<16x1xf32>
    %cst_121 = arith.constant 3.200000e+01 : f32
    %263 = vector.broadcast %cst_121 : f32 to vector<16x1xf32>
    %264 = arith.divf %262, %263 : vector<16x1xf32>
    %265 = vector.broadcast %264 : vector<16x1xf32> to vector<16x32xf32>
    %266 = arith.subf %260, %265 : vector<16x32xf32>
    %267 = arith.mulf %266, %266 : vector<16x32xf32>
    %cst_122 = arith.constant dense<0.000000e+00> : vector<16xf32>
    %268 = vector.multi_reduction <add>, %267, %cst_122 [1] : vector<16x32xf32> to vector<16xf32>
    %269 = vector.shape_cast %268 : vector<16xf32> to vector<16x1xf32>
    %cst_123 = arith.constant 0.0322580636 : f32
    %270 = vector.broadcast %cst_123 : f32 to vector<16x1xf32>
    %271 = arith.mulf %269, %270 : vector<16x1xf32>
    %272 = math.sqrt %271 : vector<16x1xf32>
    %cst_124 = arith.constant 1.000000e-03 : f32
    %273 = vector.broadcast %cst_124 : f32 to vector<16x1xf32>
    %274 = arith.addf %272, %273 : vector<16x1xf32>
    %275 = tpu.reciprocal %274 : vector<16x1xf32> -> vector<16x1xf32>
    %276 = vector.broadcast %264 : vector<16x1xf32> to vector<16x32xf32>
    %277 = arith.subf %260, %276 : vector<16x32xf32>
    %278 = vector.broadcast %275 : vector<16x1xf32> to vector<16x32xf32>
    %279 = arith.mulf %277, %278 : vector<16x32xf32>
    %280 = vector.broadcast %167 : vector<1x32xf32> to vector<16x32xf32>
    %281 = arith.mulf %279, %280 : vector<16x32xf32>
    %282 = vector.broadcast %168 : vector<1x32xf32> to vector<16x32xf32>
    %283 = arith.addf %281, %282 : vector<16x32xf32>
    %c1_125 = arith.constant 1 : index
    %c0_126 = arith.constant 0 : index
    %c0_127 = arith.constant 0 : index
    %284 = vector.load %arg8[%c1_125, %c0_126, %c0_127] : memref<4x3x32xf32, #tpu.memory_space<vmem>>, vector<1x3x32xf32>
    %285 = vector.shape_cast %284 : vector<1x3x32xf32> to vector<3x32xf32>
    %286 = vector.extract_strided_slice %285 {offsets = [0, 0], sizes = [1, 32], strides = [1, 1]} : vector<3x32xf32> to vector<1x32xf32>
    %287 = vector.extract_strided_slice %285 {offsets = [1, 0], sizes = [1, 32], strides = [1, 1]} : vector<3x32xf32> to vector<1x32xf32>
    %288 = vector.extract_strided_slice %285 {offsets = [2, 0], sizes = [1, 32], strides = [1, 1]} : vector<3x32xf32> to vector<1x32xf32>
    %c1_128 = arith.constant 1 : index
    %c0_129 = arith.constant 0 : index
    %c0_130 = arith.constant 0 : index
    %289 = vector.load %arg5[%c1_128, %c0_129, %c0_130] : memref<4x32x64xf32, #tpu.memory_space<vmem>>, vector<1x32x64xf32>
    %290 = vector.shape_cast %289 : vector<1x32x64xf32> to vector<32x64xf32>
    %cst_131 = arith.constant dense<0.000000e+00> : vector<16x64xf32>
    %291 = tpu.matmul %283, %290, %cst_131 {dimension_numbers = #tpu.dot_dimension_numbers<[1], [0], [0], [1], [0, 0, 1, 1], [], []>} : vector<16x32xf32>, vector<32x64xf32>, vector<16x64xf32> -> vector<16x64xf32>
    %c1_132 = arith.constant 1 : index
    %c0_133 = arith.constant 0 : index
    %c0_134 = arith.constant 0 : index
    %292 = vector.load %arg6[%c1_132, %c0_133, %c0_134] : memref<4x1x64xf32, #tpu.memory_space<vmem>>, vector<1x1x64xf32>
    %293 = vector.shape_cast %292 : vector<1x1x64xf32> to vector<1x64xf32>
    %294 = vector.broadcast %293 : vector<1x64xf32> to vector<16x64xf32>
    %295 = arith.addf %291, %294 : vector<16x64xf32>
    %cst_135 = arith.constant 0.000000e+00 : f32
    %296 = vector.broadcast %cst_135 : f32 to vector<16x64xf32>
    %297 = arith.maximumf %295, %296 : vector<16x64xf32>
    %c1_136 = arith.constant 1 : index
    %c0_137 = arith.constant 0 : index
    %c0_138 = arith.constant 0 : index
    %298 = vector.load %arg7[%c1_136, %c0_137, %c0_138] : memref<4x64x32xf32, #tpu.memory_space<vmem>>, vector<1x64x32xf32>
    %299 = vector.shape_cast %298 : vector<1x64x32xf32> to vector<64x32xf32>
    %cst_139 = arith.constant dense<0.000000e+00> : vector<16x32xf32>
    %300 = tpu.matmul %297, %299, %cst_139 {dimension_numbers = #tpu.dot_dimension_numbers<[1], [0], [0], [1], [0, 0, 1, 1], [], []>} : vector<16x64xf32>, vector<64x32xf32>, vector<16x32xf32> -> vector<16x32xf32>
    %301 = vector.broadcast %286 : vector<1x32xf32> to vector<16x32xf32>
    %302 = arith.addf %300, %301 : vector<16x32xf32>
    %303 = arith.addf %302, %283 : vector<16x32xf32>
    %cst_140 = arith.constant dense<0.000000e+00> : vector<16xf32>
    %304 = vector.multi_reduction <add>, %303, %cst_140 [1] : vector<16x32xf32> to vector<16xf32>
    %305 = vector.shape_cast %304 : vector<16xf32> to vector<16x1xf32>
    %cst_141 = arith.constant 3.200000e+01 : f32
    %306 = vector.broadcast %cst_141 : f32 to vector<16x1xf32>
    %307 = arith.divf %305, %306 : vector<16x1xf32>
    %308 = vector.broadcast %307 : vector<16x1xf32> to vector<16x32xf32>
    %309 = arith.subf %303, %308 : vector<16x32xf32>
    %310 = arith.mulf %309, %309 : vector<16x32xf32>
    %cst_142 = arith.constant dense<0.000000e+00> : vector<16xf32>
    %311 = vector.multi_reduction <add>, %310, %cst_142 [1] : vector<16x32xf32> to vector<16xf32>
    %312 = vector.shape_cast %311 : vector<16xf32> to vector<16x1xf32>
    %cst_143 = arith.constant 0.0322580636 : f32
    %313 = vector.broadcast %cst_143 : f32 to vector<16x1xf32>
    %314 = arith.mulf %312, %313 : vector<16x1xf32>
    %315 = math.sqrt %314 : vector<16x1xf32>
    %cst_144 = arith.constant 1.000000e-03 : f32
    %316 = vector.broadcast %cst_144 : f32 to vector<16x1xf32>
    %317 = arith.addf %315, %316 : vector<16x1xf32>
    %318 = tpu.reciprocal %317 : vector<16x1xf32> -> vector<16x1xf32>
    %319 = vector.broadcast %307 : vector<16x1xf32> to vector<16x32xf32>
    %320 = arith.subf %303, %319 : vector<16x32xf32>
    %321 = vector.broadcast %318 : vector<16x1xf32> to vector<16x32xf32>
    %322 = arith.mulf %320, %321 : vector<16x32xf32>
    %323 = vector.broadcast %287 : vector<1x32xf32> to vector<16x32xf32>
    %324 = arith.mulf %322, %323 : vector<16x32xf32>
    %325 = vector.broadcast %288 : vector<1x32xf32> to vector<16x32xf32>
    %326 = arith.addf %324, %325 : vector<16x32xf32>
    %c0_145 = arith.constant 0 : index
    %c0_146 = arith.constant 0 : index
    %327 = vector.load %arg1[%c0_145, %c0_146] : memref<16x32xf32, #tpu.memory_space<vmem>>, vector<16x32xf32>
    %c2_147 = arith.constant 2 : index
    %c0_148 = arith.constant 0 : index
    %c0_149 = arith.constant 0 : index
    %328 = vector.load %arg4[%c2_147, %c0_148, %c0_149] : memref<6x3x32xf32, #tpu.memory_space<vmem>>, vector<1x3x32xf32>
    %329 = vector.shape_cast %328 : vector<1x3x32xf32> to vector<3x32xf32>
    %330 = vector.extract_strided_slice %329 {offsets = [0, 0], sizes = [1, 32], strides = [1, 1]} : vector<3x32xf32> to vector<1x32xf32>
    %331 = vector.extract_strided_slice %329 {offsets = [1, 0], sizes = [1, 32], strides = [1, 1]} : vector<3x32xf32> to vector<1x32xf32>
    %332 = vector.extract_strided_slice %329 {offsets = [2, 0], sizes = [1, 32], strides = [1, 1]} : vector<3x32xf32> to vector<1x32xf32>
    %c12 = arith.constant 12 : index
    %c0_150 = arith.constant 0 : index
    %c0_151 = arith.constant 0 : index
    %333 = vector.load %arg2[%c12, %c0_150, %c0_151] : memref<36x32x16xf32, #tpu.memory_space<vmem>>, vector<1x32x16xf32>
    %334 = vector.shape_cast %333 : vector<1x32x16xf32> to vector<32x16xf32>
    %c14 = arith.constant 14 : index
    %c0_152 = arith.constant 0 : index
    %c0_153 = arith.constant 0 : index
    %335 = vector.load %arg2[%c14, %c0_152, %c0_153] : memref<36x32x16xf32, #tpu.memory_space<vmem>>, vector<1x32x16xf32>
    %336 = vector.shape_cast %335 : vector<1x32x16xf32> to vector<32x16xf32>
    %c16 = arith.constant 16 : index
    %c0_154 = arith.constant 0 : index
    %c0_155 = arith.constant 0 : index
    %337 = vector.load %arg2[%c16, %c0_154, %c0_155] : memref<36x32x16xf32, #tpu.memory_space<vmem>>, vector<1x32x16xf32>
    %338 = vector.shape_cast %337 : vector<1x32x16xf32> to vector<32x16xf32>
    %c4_156 = arith.constant 4 : index
    %c0_157 = arith.constant 0 : index
    %c0_158 = arith.constant 0 : index
    %339 = vector.load %arg3[%c4_156, %c0_157, %c0_158] : memref<12x16x32xf32, #tpu.memory_space<vmem>>, vector<1x16x32xf32>
    %340 = vector.shape_cast %339 : vector<1x16x32xf32> to vector<16x32xf32>
    %cst_159 = arith.constant dense<0.000000e+00> : vector<16x16xf32>
    %341 = tpu.matmul %327, %334, %cst_159 {dimension_numbers = #tpu.dot_dimension_numbers<[1], [0], [0], [1], [0, 0, 1, 1], [], []>} : vector<16x32xf32>, vector<32x16xf32>, vector<16x16xf32> -> vector<16x16xf32>
    %cst_160 = arith.constant dense<0.000000e+00> : vector<16x16xf32>
    %342 = tpu.matmul %327, %336, %cst_160 {dimension_numbers = #tpu.dot_dimension_numbers<[1], [0], [0], [1], [0, 0, 1, 1], [], []>} : vector<16x32xf32>, vector<32x16xf32>, vector<16x16xf32> -> vector<16x16xf32>
    %cst_161 = arith.constant dense<0.000000e+00> : vector<16x16xf32>
    %343 = tpu.matmul %327, %338, %cst_161 {dimension_numbers = #tpu.dot_dimension_numbers<[1], [0], [0], [1], [0, 0, 1, 1], [], []>} : vector<16x32xf32>, vector<32x16xf32>, vector<16x16xf32> -> vector<16x16xf32>
    %344 = vector.extract_strided_slice %341 {offsets = [0, 0], sizes = [8, 16], strides = [1, 1]} : vector<16x16xf32> to vector<8x16xf32>
    %345 = vector.extract_strided_slice %342 {offsets = [0, 0], sizes = [8, 16], strides = [1, 1]} : vector<16x16xf32> to vector<8x16xf32>
    %346 = vector.extract_strided_slice %343 {offsets = [0, 0], sizes = [8, 16], strides = [1, 1]} : vector<16x16xf32> to vector<8x16xf32>
    %cst_162 = arith.constant dense<0.000000e+00> : vector<8x8xf32>
    %347 = tpu.matmul %344, %345, %cst_162 {dimension_numbers = #tpu.dot_dimension_numbers<[1], [1], [0], [0], [0, 0, 1, 0], [], []>} : vector<8x16xf32>, vector<8x16xf32>, vector<8x8xf32> -> vector<8x8xf32>
    %cst_163 = arith.constant dense<0xFF800000> : vector<8xf32>
    %348 = vector.multi_reduction <maximumf>, %347, %cst_163 [1] : vector<8x8xf32> to vector<8xf32>
    %349 = vector.shape_cast %348 : vector<8xf32> to vector<8x1xf32>
    %350 = vector.broadcast %349 : vector<8x1xf32> to vector<8x8xf32>
    %351 = arith.subf %347, %350 : vector<8x8xf32>
    %352 = math.exp %351 : vector<8x8xf32>
    %cst_164 = arith.constant dense<0.000000e+00> : vector<8xf32>
    %353 = vector.multi_reduction <add>, %352, %cst_164 [1] : vector<8x8xf32> to vector<8xf32>
    %354 = vector.shape_cast %353 : vector<8xf32> to vector<8x1xf32>
    %355 = tpu.reciprocal %354 : vector<8x1xf32> -> vector<8x1xf32>
    %356 = vector.broadcast %355 : vector<8x1xf32> to vector<8x8xf32>
    %357 = arith.mulf %352, %356 : vector<8x8xf32>
    %cst_165 = arith.constant dense<0.000000e+00> : vector<8x16xf32>
    %358 = tpu.matmul %357, %346, %cst_165 {dimension_numbers = #tpu.dot_dimension_numbers<[1], [0], [0], [1], [0, 0, 1, 1], [], []>} : vector<8x8xf32>, vector<8x16xf32>, vector<8x16xf32> -> vector<8x16xf32>
    %cst_166 = arith.constant dense<0.000000e+00> : vector<8x32xf32>
    %359 = tpu.matmul %358, %340, %cst_166 {dimension_numbers = #tpu.dot_dimension_numbers<[1], [0], [0], [1], [0, 0, 1, 1], [], []>} : vector<8x16xf32>, vector<16x32xf32>, vector<8x32xf32> -> vector<8x32xf32>
    %360 = vector.extract_strided_slice %341 {offsets = [8, 0], sizes = [8, 16], strides = [1, 1]} : vector<16x16xf32> to vector<8x16xf32>
    %361 = vector.extract_strided_slice %342 {offsets = [8, 0], sizes = [8, 16], strides = [1, 1]} : vector<16x16xf32> to vector<8x16xf32>
    %362 = vector.extract_strided_slice %343 {offsets = [8, 0], sizes = [8, 16], strides = [1, 1]} : vector<16x16xf32> to vector<8x16xf32>
    %cst_167 = arith.constant dense<0.000000e+00> : vector<8x8xf32>
    %363 = tpu.matmul %360, %361, %cst_167 {dimension_numbers = #tpu.dot_dimension_numbers<[1], [1], [0], [0], [0, 0, 1, 0], [], []>} : vector<8x16xf32>, vector<8x16xf32>, vector<8x8xf32> -> vector<8x8xf32>
    %cst_168 = arith.constant dense<0xFF800000> : vector<8xf32>
    %364 = vector.multi_reduction <maximumf>, %363, %cst_168 [1] : vector<8x8xf32> to vector<8xf32>
    %365 = vector.shape_cast %364 : vector<8xf32> to vector<8x1xf32>
    %366 = vector.broadcast %365 : vector<8x1xf32> to vector<8x8xf32>
    %367 = arith.subf %363, %366 : vector<8x8xf32>
    %368 = math.exp %367 : vector<8x8xf32>
    %cst_169 = arith.constant dense<0.000000e+00> : vector<8xf32>
    %369 = vector.multi_reduction <add>, %368, %cst_169 [1] : vector<8x8xf32> to vector<8xf32>
    %370 = vector.shape_cast %369 : vector<8xf32> to vector<8x1xf32>
    %371 = tpu.reciprocal %370 : vector<8x1xf32> -> vector<8x1xf32>
    %372 = vector.broadcast %371 : vector<8x1xf32> to vector<8x8xf32>
    %373 = arith.mulf %368, %372 : vector<8x8xf32>
    %cst_170 = arith.constant dense<0.000000e+00> : vector<8x16xf32>
    %374 = tpu.matmul %373, %362, %cst_170 {dimension_numbers = #tpu.dot_dimension_numbers<[1], [0], [0], [1], [0, 0, 1, 1], [], []>} : vector<8x8xf32>, vector<8x16xf32>, vector<8x16xf32> -> vector<8x16xf32>
    %cst_171 = arith.constant dense<0.000000e+00> : vector<8x32xf32>
    %375 = tpu.matmul %374, %340, %cst_171 {dimension_numbers = #tpu.dot_dimension_numbers<[1], [0], [0], [1], [0, 0, 1, 1], [], []>} : vector<8x16xf32>, vector<16x32xf32>, vector<8x32xf32> -> vector<8x32xf32>
    %c13 = arith.constant 13 : index
    %c0_172 = arith.constant 0 : index
    %c0_173 = arith.constant 0 : index
    %376 = vector.load %arg2[%c13, %c0_172, %c0_173] : memref<36x32x16xf32, #tpu.memory_space<vmem>>, vector<1x32x16xf32>
    %377 = vector.shape_cast %376 : vector<1x32x16xf32> to vector<32x16xf32>
    %c15 = arith.constant 15 : index
    %c0_174 = arith.constant 0 : index
    %c0_175 = arith.constant 0 : index
    %378 = vector.load %arg2[%c15, %c0_174, %c0_175] : memref<36x32x16xf32, #tpu.memory_space<vmem>>, vector<1x32x16xf32>
    %379 = vector.shape_cast %378 : vector<1x32x16xf32> to vector<32x16xf32>
    %c17 = arith.constant 17 : index
    %c0_176 = arith.constant 0 : index
    %c0_177 = arith.constant 0 : index
    %380 = vector.load %arg2[%c17, %c0_176, %c0_177] : memref<36x32x16xf32, #tpu.memory_space<vmem>>, vector<1x32x16xf32>
    %381 = vector.shape_cast %380 : vector<1x32x16xf32> to vector<32x16xf32>
    %c5_178 = arith.constant 5 : index
    %c0_179 = arith.constant 0 : index
    %c0_180 = arith.constant 0 : index
    %382 = vector.load %arg3[%c5_178, %c0_179, %c0_180] : memref<12x16x32xf32, #tpu.memory_space<vmem>>, vector<1x16x32xf32>
    %383 = vector.shape_cast %382 : vector<1x16x32xf32> to vector<16x32xf32>
    %cst_181 = arith.constant dense<0.000000e+00> : vector<16x16xf32>
    %384 = tpu.matmul %327, %377, %cst_181 {dimension_numbers = #tpu.dot_dimension_numbers<[1], [0], [0], [1], [0, 0, 1, 1], [], []>} : vector<16x32xf32>, vector<32x16xf32>, vector<16x16xf32> -> vector<16x16xf32>
    %cst_182 = arith.constant dense<0.000000e+00> : vector<16x16xf32>
    %385 = tpu.matmul %327, %379, %cst_182 {dimension_numbers = #tpu.dot_dimension_numbers<[1], [0], [0], [1], [0, 0, 1, 1], [], []>} : vector<16x32xf32>, vector<32x16xf32>, vector<16x16xf32> -> vector<16x16xf32>
    %cst_183 = arith.constant dense<0.000000e+00> : vector<16x16xf32>
    %386 = tpu.matmul %327, %381, %cst_183 {dimension_numbers = #tpu.dot_dimension_numbers<[1], [0], [0], [1], [0, 0, 1, 1], [], []>} : vector<16x32xf32>, vector<32x16xf32>, vector<16x16xf32> -> vector<16x16xf32>
    %387 = vector.extract_strided_slice %384 {offsets = [0, 0], sizes = [8, 16], strides = [1, 1]} : vector<16x16xf32> to vector<8x16xf32>
    %388 = vector.extract_strided_slice %385 {offsets = [0, 0], sizes = [8, 16], strides = [1, 1]} : vector<16x16xf32> to vector<8x16xf32>
    %389 = vector.extract_strided_slice %386 {offsets = [0, 0], sizes = [8, 16], strides = [1, 1]} : vector<16x16xf32> to vector<8x16xf32>
    %cst_184 = arith.constant dense<0.000000e+00> : vector<8x8xf32>
    %390 = tpu.matmul %387, %388, %cst_184 {dimension_numbers = #tpu.dot_dimension_numbers<[1], [1], [0], [0], [0, 0, 1, 0], [], []>} : vector<8x16xf32>, vector<8x16xf32>, vector<8x8xf32> -> vector<8x8xf32>
    %cst_185 = arith.constant dense<0xFF800000> : vector<8xf32>
    %391 = vector.multi_reduction <maximumf>, %390, %cst_185 [1] : vector<8x8xf32> to vector<8xf32>
    %392 = vector.shape_cast %391 : vector<8xf32> to vector<8x1xf32>
    %393 = vector.broadcast %392 : vector<8x1xf32> to vector<8x8xf32>
    %394 = arith.subf %390, %393 : vector<8x8xf32>
    %395 = math.exp %394 : vector<8x8xf32>
    %cst_186 = arith.constant dense<0.000000e+00> : vector<8xf32>
    %396 = vector.multi_reduction <add>, %395, %cst_186 [1] : vector<8x8xf32> to vector<8xf32>
    %397 = vector.shape_cast %396 : vector<8xf32> to vector<8x1xf32>
    %398 = tpu.reciprocal %397 : vector<8x1xf32> -> vector<8x1xf32>
    %399 = vector.broadcast %398 : vector<8x1xf32> to vector<8x8xf32>
    %400 = arith.mulf %395, %399 : vector<8x8xf32>
    %cst_187 = arith.constant dense<0.000000e+00> : vector<8x16xf32>
    %401 = tpu.matmul %400, %389, %cst_187 {dimension_numbers = #tpu.dot_dimension_numbers<[1], [0], [0], [1], [0, 0, 1, 1], [], []>} : vector<8x8xf32>, vector<8x16xf32>, vector<8x16xf32> -> vector<8x16xf32>
    %cst_188 = arith.constant dense<0.000000e+00> : vector<8x32xf32>
    %402 = tpu.matmul %401, %383, %cst_188 {dimension_numbers = #tpu.dot_dimension_numbers<[1], [0], [0], [1], [0, 0, 1, 1], [], []>} : vector<8x16xf32>, vector<16x32xf32>, vector<8x32xf32> -> vector<8x32xf32>
    %403 = arith.addf %359, %402 : vector<8x32xf32>
    %404 = vector.extract_strided_slice %384 {offsets = [8, 0], sizes = [8, 16], strides = [1, 1]} : vector<16x16xf32> to vector<8x16xf32>
    %405 = vector.extract_strided_slice %385 {offsets = [8, 0], sizes = [8, 16], strides = [1, 1]} : vector<16x16xf32> to vector<8x16xf32>
    %406 = vector.extract_strided_slice %386 {offsets = [8, 0], sizes = [8, 16], strides = [1, 1]} : vector<16x16xf32> to vector<8x16xf32>
    %cst_189 = arith.constant dense<0.000000e+00> : vector<8x8xf32>
    %407 = tpu.matmul %404, %405, %cst_189 {dimension_numbers = #tpu.dot_dimension_numbers<[1], [1], [0], [0], [0, 0, 1, 0], [], []>} : vector<8x16xf32>, vector<8x16xf32>, vector<8x8xf32> -> vector<8x8xf32>
    %cst_190 = arith.constant dense<0xFF800000> : vector<8xf32>
    %408 = vector.multi_reduction <maximumf>, %407, %cst_190 [1] : vector<8x8xf32> to vector<8xf32>
    %409 = vector.shape_cast %408 : vector<8xf32> to vector<8x1xf32>
    %410 = vector.broadcast %409 : vector<8x1xf32> to vector<8x8xf32>
    %411 = arith.subf %407, %410 : vector<8x8xf32>
    %412 = math.exp %411 : vector<8x8xf32>
    %cst_191 = arith.constant dense<0.000000e+00> : vector<8xf32>
    %413 = vector.multi_reduction <add>, %412, %cst_191 [1] : vector<8x8xf32> to vector<8xf32>
    %414 = vector.shape_cast %413 : vector<8xf32> to vector<8x1xf32>
    %415 = tpu.reciprocal %414 : vector<8x1xf32> -> vector<8x1xf32>
    %416 = vector.broadcast %415 : vector<8x1xf32> to vector<8x8xf32>
    %417 = arith.mulf %412, %416 : vector<8x8xf32>
    %cst_192 = arith.constant dense<0.000000e+00> : vector<8x16xf32>
    %418 = tpu.matmul %417, %406, %cst_192 {dimension_numbers = #tpu.dot_dimension_numbers<[1], [0], [0], [1], [0, 0, 1, 1], [], []>} : vector<8x8xf32>, vector<8x16xf32>, vector<8x16xf32> -> vector<8x16xf32>
    %cst_193 = arith.constant dense<0.000000e+00> : vector<8x32xf32>
    %419 = tpu.matmul %418, %383, %cst_193 {dimension_numbers = #tpu.dot_dimension_numbers<[1], [0], [0], [1], [0, 0, 1, 1], [], []>} : vector<8x16xf32>, vector<16x32xf32>, vector<8x32xf32> -> vector<8x32xf32>
    %420 = arith.addf %375, %419 : vector<8x32xf32>
    %421 = tpu.concatenate %403, %420 in 0 : vector<8x32xf32>, vector<8x32xf32> -> vector<16x32xf32>
    %422 = vector.broadcast %330 : vector<1x32xf32> to vector<16x32xf32>
    %423 = arith.addf %421, %422 : vector<16x32xf32>
    %424 = arith.addf %423, %327 : vector<16x32xf32>
    %cst_194 = arith.constant dense<0.000000e+00> : vector<16xf32>
    %425 = vector.multi_reduction <add>, %424, %cst_194 [1] : vector<16x32xf32> to vector<16xf32>
    %426 = vector.shape_cast %425 : vector<16xf32> to vector<16x1xf32>
    %cst_195 = arith.constant 3.200000e+01 : f32
    %427 = vector.broadcast %cst_195 : f32 to vector<16x1xf32>
    %428 = arith.divf %426, %427 : vector<16x1xf32>
    %429 = vector.broadcast %428 : vector<16x1xf32> to vector<16x32xf32>
    %430 = arith.subf %424, %429 : vector<16x32xf32>
    %431 = arith.mulf %430, %430 : vector<16x32xf32>
    %cst_196 = arith.constant dense<0.000000e+00> : vector<16xf32>
    %432 = vector.multi_reduction <add>, %431, %cst_196 [1] : vector<16x32xf32> to vector<16xf32>
    %433 = vector.shape_cast %432 : vector<16xf32> to vector<16x1xf32>
    %cst_197 = arith.constant 0.0322580636 : f32
    %434 = vector.broadcast %cst_197 : f32 to vector<16x1xf32>
    %435 = arith.mulf %433, %434 : vector<16x1xf32>
    %436 = math.sqrt %435 : vector<16x1xf32>
    %cst_198 = arith.constant 1.000000e-03 : f32
    %437 = vector.broadcast %cst_198 : f32 to vector<16x1xf32>
    %438 = arith.addf %436, %437 : vector<16x1xf32>
    %439 = tpu.reciprocal %438 : vector<16x1xf32> -> vector<16x1xf32>
    %440 = vector.broadcast %428 : vector<16x1xf32> to vector<16x32xf32>
    %441 = arith.subf %424, %440 : vector<16x32xf32>
    %442 = vector.broadcast %439 : vector<16x1xf32> to vector<16x32xf32>
    %443 = arith.mulf %441, %442 : vector<16x32xf32>
    %444 = vector.broadcast %331 : vector<1x32xf32> to vector<16x32xf32>
    %445 = arith.mulf %443, %444 : vector<16x32xf32>
    %446 = vector.broadcast %332 : vector<1x32xf32> to vector<16x32xf32>
    %447 = arith.addf %445, %446 : vector<16x32xf32>
    %c3_199 = arith.constant 3 : index
    %c0_200 = arith.constant 0 : index
    %c0_201 = arith.constant 0 : index
    %448 = vector.load %arg4[%c3_199, %c0_200, %c0_201] : memref<6x3x32xf32, #tpu.memory_space<vmem>>, vector<1x3x32xf32>
    %449 = vector.shape_cast %448 : vector<1x3x32xf32> to vector<3x32xf32>
    %450 = vector.extract_strided_slice %449 {offsets = [0, 0], sizes = [1, 32], strides = [1, 1]} : vector<3x32xf32> to vector<1x32xf32>
    %451 = vector.extract_strided_slice %449 {offsets = [1, 0], sizes = [1, 32], strides = [1, 1]} : vector<3x32xf32> to vector<1x32xf32>
    %452 = vector.extract_strided_slice %449 {offsets = [2, 0], sizes = [1, 32], strides = [1, 1]} : vector<3x32xf32> to vector<1x32xf32>
    %c18 = arith.constant 18 : index
    %c0_202 = arith.constant 0 : index
    %c0_203 = arith.constant 0 : index
    %453 = vector.load %arg2[%c18, %c0_202, %c0_203] : memref<36x32x16xf32, #tpu.memory_space<vmem>>, vector<1x32x16xf32>
    %454 = vector.shape_cast %453 : vector<1x32x16xf32> to vector<32x16xf32>
    %c20 = arith.constant 20 : index
    %c0_204 = arith.constant 0 : index
    %c0_205 = arith.constant 0 : index
    %455 = vector.load %arg2[%c20, %c0_204, %c0_205] : memref<36x32x16xf32, #tpu.memory_space<vmem>>, vector<1x32x16xf32>
    %456 = vector.shape_cast %455 : vector<1x32x16xf32> to vector<32x16xf32>
    %c22 = arith.constant 22 : index
    %c0_206 = arith.constant 0 : index
    %c0_207 = arith.constant 0 : index
    %457 = vector.load %arg2[%c22, %c0_206, %c0_207] : memref<36x32x16xf32, #tpu.memory_space<vmem>>, vector<1x32x16xf32>
    %458 = vector.shape_cast %457 : vector<1x32x16xf32> to vector<32x16xf32>
    %c6_208 = arith.constant 6 : index
    %c0_209 = arith.constant 0 : index
    %c0_210 = arith.constant 0 : index
    %459 = vector.load %arg3[%c6_208, %c0_209, %c0_210] : memref<12x16x32xf32, #tpu.memory_space<vmem>>, vector<1x16x32xf32>
    %460 = vector.shape_cast %459 : vector<1x16x32xf32> to vector<16x32xf32>
    %cst_211 = arith.constant dense<0.000000e+00> : vector<16x16xf32>
    %461 = tpu.matmul %447, %454, %cst_211 {dimension_numbers = #tpu.dot_dimension_numbers<[1], [0], [0], [1], [0, 0, 1, 1], [], []>} : vector<16x32xf32>, vector<32x16xf32>, vector<16x16xf32> -> vector<16x16xf32>
    %cst_212 = arith.constant dense<0.000000e+00> : vector<16x16xf32>
    %462 = tpu.matmul %326, %456, %cst_212 {dimension_numbers = #tpu.dot_dimension_numbers<[1], [0], [0], [1], [0, 0, 1, 1], [], []>} : vector<16x32xf32>, vector<32x16xf32>, vector<16x16xf32> -> vector<16x16xf32>
    %cst_213 = arith.constant dense<0.000000e+00> : vector<16x16xf32>
    %463 = tpu.matmul %326, %458, %cst_213 {dimension_numbers = #tpu.dot_dimension_numbers<[1], [0], [0], [1], [0, 0, 1, 1], [], []>} : vector<16x32xf32>, vector<32x16xf32>, vector<16x16xf32> -> vector<16x16xf32>
    %464 = vector.extract_strided_slice %461 {offsets = [0, 0], sizes = [8, 16], strides = [1, 1]} : vector<16x16xf32> to vector<8x16xf32>
    %465 = vector.extract_strided_slice %462 {offsets = [0, 0], sizes = [8, 16], strides = [1, 1]} : vector<16x16xf32> to vector<8x16xf32>
    %466 = vector.extract_strided_slice %463 {offsets = [0, 0], sizes = [8, 16], strides = [1, 1]} : vector<16x16xf32> to vector<8x16xf32>
    %cst_214 = arith.constant dense<0.000000e+00> : vector<8x8xf32>
    %467 = tpu.matmul %464, %465, %cst_214 {dimension_numbers = #tpu.dot_dimension_numbers<[1], [1], [0], [0], [0, 0, 1, 0], [], []>} : vector<8x16xf32>, vector<8x16xf32>, vector<8x8xf32> -> vector<8x8xf32>
    %cst_215 = arith.constant dense<0xFF800000> : vector<8xf32>
    %468 = vector.multi_reduction <maximumf>, %467, %cst_215 [1] : vector<8x8xf32> to vector<8xf32>
    %469 = vector.shape_cast %468 : vector<8xf32> to vector<8x1xf32>
    %470 = vector.broadcast %469 : vector<8x1xf32> to vector<8x8xf32>
    %471 = arith.subf %467, %470 : vector<8x8xf32>
    %472 = math.exp %471 : vector<8x8xf32>
    %cst_216 = arith.constant dense<0.000000e+00> : vector<8xf32>
    %473 = vector.multi_reduction <add>, %472, %cst_216 [1] : vector<8x8xf32> to vector<8xf32>
    %474 = vector.shape_cast %473 : vector<8xf32> to vector<8x1xf32>
    %475 = tpu.reciprocal %474 : vector<8x1xf32> -> vector<8x1xf32>
    %476 = vector.broadcast %475 : vector<8x1xf32> to vector<8x8xf32>
    %477 = arith.mulf %472, %476 : vector<8x8xf32>
    %cst_217 = arith.constant dense<0.000000e+00> : vector<8x16xf32>
    %478 = tpu.matmul %477, %466, %cst_217 {dimension_numbers = #tpu.dot_dimension_numbers<[1], [0], [0], [1], [0, 0, 1, 1], [], []>} : vector<8x8xf32>, vector<8x16xf32>, vector<8x16xf32> -> vector<8x16xf32>
    %cst_218 = arith.constant dense<0.000000e+00> : vector<8x32xf32>
    %479 = tpu.matmul %478, %460, %cst_218 {dimension_numbers = #tpu.dot_dimension_numbers<[1], [0], [0], [1], [0, 0, 1, 1], [], []>} : vector<8x16xf32>, vector<16x32xf32>, vector<8x32xf32> -> vector<8x32xf32>
    %480 = vector.extract_strided_slice %461 {offsets = [8, 0], sizes = [8, 16], strides = [1, 1]} : vector<16x16xf32> to vector<8x16xf32>
    %481 = vector.extract_strided_slice %462 {offsets = [8, 0], sizes = [8, 16], strides = [1, 1]} : vector<16x16xf32> to vector<8x16xf32>
    %482 = vector.extract_strided_slice %463 {offsets = [8, 0], sizes = [8, 16], strides = [1, 1]} : vector<16x16xf32> to vector<8x16xf32>
    %cst_219 = arith.constant dense<0.000000e+00> : vector<8x8xf32>
    %483 = tpu.matmul %480, %481, %cst_219 {dimension_numbers = #tpu.dot_dimension_numbers<[1], [1], [0], [0], [0, 0, 1, 0], [], []>} : vector<8x16xf32>, vector<8x16xf32>, vector<8x8xf32> -> vector<8x8xf32>
    %cst_220 = arith.constant dense<0xFF800000> : vector<8xf32>
    %484 = vector.multi_reduction <maximumf>, %483, %cst_220 [1] : vector<8x8xf32> to vector<8xf32>
    %485 = vector.shape_cast %484 : vector<8xf32> to vector<8x1xf32>
    %486 = vector.broadcast %485 : vector<8x1xf32> to vector<8x8xf32>
    %487 = arith.subf %483, %486 : vector<8x8xf32>
    %488 = math.exp %487 : vector<8x8xf32>
    %cst_221 = arith.constant dense<0.000000e+00> : vector<8xf32>
    %489 = vector.multi_reduction <add>, %488, %cst_221 [1] : vector<8x8xf32> to vector<8xf32>
    %490 = vector.shape_cast %489 : vector<8xf32> to vector<8x1xf32>
    %491 = tpu.reciprocal %490 : vector<8x1xf32> -> vector<8x1xf32>
    %492 = vector.broadcast %491 : vector<8x1xf32> to vector<8x8xf32>
    %493 = arith.mulf %488, %492 : vector<8x8xf32>
    %cst_222 = arith.constant dense<0.000000e+00> : vector<8x16xf32>
    %494 = tpu.matmul %493, %482, %cst_222 {dimension_numbers = #tpu.dot_dimension_numbers<[1], [0], [0], [1], [0, 0, 1, 1], [], []>} : vector<8x8xf32>, vector<8x16xf32>, vector<8x16xf32> -> vector<8x16xf32>
    %cst_223 = arith.constant dense<0.000000e+00> : vector<8x32xf32>
    %495 = tpu.matmul %494, %460, %cst_223 {dimension_numbers = #tpu.dot_dimension_numbers<[1], [0], [0], [1], [0, 0, 1, 1], [], []>} : vector<8x16xf32>, vector<16x32xf32>, vector<8x32xf32> -> vector<8x32xf32>
    %c19 = arith.constant 19 : index
    %c0_224 = arith.constant 0 : index
    %c0_225 = arith.constant 0 : index
    %496 = vector.load %arg2[%c19, %c0_224, %c0_225] : memref<36x32x16xf32, #tpu.memory_space<vmem>>, vector<1x32x16xf32>
    %497 = vector.shape_cast %496 : vector<1x32x16xf32> to vector<32x16xf32>
    %c21 = arith.constant 21 : index
    %c0_226 = arith.constant 0 : index
    %c0_227 = arith.constant 0 : index
    %498 = vector.load %arg2[%c21, %c0_226, %c0_227] : memref<36x32x16xf32, #tpu.memory_space<vmem>>, vector<1x32x16xf32>
    %499 = vector.shape_cast %498 : vector<1x32x16xf32> to vector<32x16xf32>
    %c23 = arith.constant 23 : index
    %c0_228 = arith.constant 0 : index
    %c0_229 = arith.constant 0 : index
    %500 = vector.load %arg2[%c23, %c0_228, %c0_229] : memref<36x32x16xf32, #tpu.memory_space<vmem>>, vector<1x32x16xf32>
    %501 = vector.shape_cast %500 : vector<1x32x16xf32> to vector<32x16xf32>
    %c7_230 = arith.constant 7 : index
    %c0_231 = arith.constant 0 : index
    %c0_232 = arith.constant 0 : index
    %502 = vector.load %arg3[%c7_230, %c0_231, %c0_232] : memref<12x16x32xf32, #tpu.memory_space<vmem>>, vector<1x16x32xf32>
    %503 = vector.shape_cast %502 : vector<1x16x32xf32> to vector<16x32xf32>
    %cst_233 = arith.constant dense<0.000000e+00> : vector<16x16xf32>
    %504 = tpu.matmul %447, %497, %cst_233 {dimension_numbers = #tpu.dot_dimension_numbers<[1], [0], [0], [1], [0, 0, 1, 1], [], []>} : vector<16x32xf32>, vector<32x16xf32>, vector<16x16xf32> -> vector<16x16xf32>
    %cst_234 = arith.constant dense<0.000000e+00> : vector<16x16xf32>
    %505 = tpu.matmul %326, %499, %cst_234 {dimension_numbers = #tpu.dot_dimension_numbers<[1], [0], [0], [1], [0, 0, 1, 1], [], []>} : vector<16x32xf32>, vector<32x16xf32>, vector<16x16xf32> -> vector<16x16xf32>
    %cst_235 = arith.constant dense<0.000000e+00> : vector<16x16xf32>
    %506 = tpu.matmul %326, %501, %cst_235 {dimension_numbers = #tpu.dot_dimension_numbers<[1], [0], [0], [1], [0, 0, 1, 1], [], []>} : vector<16x32xf32>, vector<32x16xf32>, vector<16x16xf32> -> vector<16x16xf32>
    %507 = vector.extract_strided_slice %504 {offsets = [0, 0], sizes = [8, 16], strides = [1, 1]} : vector<16x16xf32> to vector<8x16xf32>
    %508 = vector.extract_strided_slice %505 {offsets = [0, 0], sizes = [8, 16], strides = [1, 1]} : vector<16x16xf32> to vector<8x16xf32>
    %509 = vector.extract_strided_slice %506 {offsets = [0, 0], sizes = [8, 16], strides = [1, 1]} : vector<16x16xf32> to vector<8x16xf32>
    %cst_236 = arith.constant dense<0.000000e+00> : vector<8x8xf32>
    %510 = tpu.matmul %507, %508, %cst_236 {dimension_numbers = #tpu.dot_dimension_numbers<[1], [1], [0], [0], [0, 0, 1, 0], [], []>} : vector<8x16xf32>, vector<8x16xf32>, vector<8x8xf32> -> vector<8x8xf32>
    %cst_237 = arith.constant dense<0xFF800000> : vector<8xf32>
    %511 = vector.multi_reduction <maximumf>, %510, %cst_237 [1] : vector<8x8xf32> to vector<8xf32>
    %512 = vector.shape_cast %511 : vector<8xf32> to vector<8x1xf32>
    %513 = vector.broadcast %512 : vector<8x1xf32> to vector<8x8xf32>
    %514 = arith.subf %510, %513 : vector<8x8xf32>
    %515 = math.exp %514 : vector<8x8xf32>
    %cst_238 = arith.constant dense<0.000000e+00> : vector<8xf32>
    %516 = vector.multi_reduction <add>, %515, %cst_238 [1] : vector<8x8xf32> to vector<8xf32>
    %517 = vector.shape_cast %516 : vector<8xf32> to vector<8x1xf32>
    %518 = tpu.reciprocal %517 : vector<8x1xf32> -> vector<8x1xf32>
    %519 = vector.broadcast %518 : vector<8x1xf32> to vector<8x8xf32>
    %520 = arith.mulf %515, %519 : vector<8x8xf32>
    %cst_239 = arith.constant dense<0.000000e+00> : vector<8x16xf32>
    %521 = tpu.matmul %520, %509, %cst_239 {dimension_numbers = #tpu.dot_dimension_numbers<[1], [0], [0], [1], [0, 0, 1, 1], [], []>} : vector<8x8xf32>, vector<8x16xf32>, vector<8x16xf32> -> vector<8x16xf32>
    %cst_240 = arith.constant dense<0.000000e+00> : vector<8x32xf32>
    %522 = tpu.matmul %521, %503, %cst_240 {dimension_numbers = #tpu.dot_dimension_numbers<[1], [0], [0], [1], [0, 0, 1, 1], [], []>} : vector<8x16xf32>, vector<16x32xf32>, vector<8x32xf32> -> vector<8x32xf32>
    %523 = arith.addf %479, %522 : vector<8x32xf32>
    %524 = vector.extract_strided_slice %504 {offsets = [8, 0], sizes = [8, 16], strides = [1, 1]} : vector<16x16xf32> to vector<8x16xf32>
    %525 = vector.extract_strided_slice %505 {offsets = [8, 0], sizes = [8, 16], strides = [1, 1]} : vector<16x16xf32> to vector<8x16xf32>
    %526 = vector.extract_strided_slice %506 {offsets = [8, 0], sizes = [8, 16], strides = [1, 1]} : vector<16x16xf32> to vector<8x16xf32>
    %cst_241 = arith.constant dense<0.000000e+00> : vector<8x8xf32>
    %527 = tpu.matmul %524, %525, %cst_241 {dimension_numbers = #tpu.dot_dimension_numbers<[1], [1], [0], [0], [0, 0, 1, 0], [], []>} : vector<8x16xf32>, vector<8x16xf32>, vector<8x8xf32> -> vector<8x8xf32>
    %cst_242 = arith.constant dense<0xFF800000> : vector<8xf32>
    %528 = vector.multi_reduction <maximumf>, %527, %cst_242 [1] : vector<8x8xf32> to vector<8xf32>
    %529 = vector.shape_cast %528 : vector<8xf32> to vector<8x1xf32>
    %530 = vector.broadcast %529 : vector<8x1xf32> to vector<8x8xf32>
    %531 = arith.subf %527, %530 : vector<8x8xf32>
    %532 = math.exp %531 : vector<8x8xf32>
    %cst_243 = arith.constant dense<0.000000e+00> : vector<8xf32>
    %533 = vector.multi_reduction <add>, %532, %cst_243 [1] : vector<8x8xf32> to vector<8xf32>
    %534 = vector.shape_cast %533 : vector<8xf32> to vector<8x1xf32>
    %535 = tpu.reciprocal %534 : vector<8x1xf32> -> vector<8x1xf32>
    %536 = vector.broadcast %535 : vector<8x1xf32> to vector<8x8xf32>
    %537 = arith.mulf %532, %536 : vector<8x8xf32>
    %cst_244 = arith.constant dense<0.000000e+00> : vector<8x16xf32>
    %538 = tpu.matmul %537, %526, %cst_244 {dimension_numbers = #tpu.dot_dimension_numbers<[1], [0], [0], [1], [0, 0, 1, 1], [], []>} : vector<8x8xf32>, vector<8x16xf32>, vector<8x16xf32> -> vector<8x16xf32>
    %cst_245 = arith.constant dense<0.000000e+00> : vector<8x32xf32>
    %539 = tpu.matmul %538, %503, %cst_245 {dimension_numbers = #tpu.dot_dimension_numbers<[1], [0], [0], [1], [0, 0, 1, 1], [], []>} : vector<8x16xf32>, vector<16x32xf32>, vector<8x32xf32> -> vector<8x32xf32>
    %540 = arith.addf %495, %539 : vector<8x32xf32>
    %541 = tpu.concatenate %523, %540 in 0 : vector<8x32xf32>, vector<8x32xf32> -> vector<16x32xf32>
    %542 = vector.broadcast %450 : vector<1x32xf32> to vector<16x32xf32>
    %543 = arith.addf %541, %542 : vector<16x32xf32>
    %544 = arith.addf %543, %447 : vector<16x32xf32>
    %cst_246 = arith.constant dense<0.000000e+00> : vector<16xf32>
    %545 = vector.multi_reduction <add>, %544, %cst_246 [1] : vector<16x32xf32> to vector<16xf32>
    %546 = vector.shape_cast %545 : vector<16xf32> to vector<16x1xf32>
    %cst_247 = arith.constant 3.200000e+01 : f32
    %547 = vector.broadcast %cst_247 : f32 to vector<16x1xf32>
    %548 = arith.divf %546, %547 : vector<16x1xf32>
    %549 = vector.broadcast %548 : vector<16x1xf32> to vector<16x32xf32>
    %550 = arith.subf %544, %549 : vector<16x32xf32>
    %551 = arith.mulf %550, %550 : vector<16x32xf32>
    %cst_248 = arith.constant dense<0.000000e+00> : vector<16xf32>
    %552 = vector.multi_reduction <add>, %551, %cst_248 [1] : vector<16x32xf32> to vector<16xf32>
    %553 = vector.shape_cast %552 : vector<16xf32> to vector<16x1xf32>
    %cst_249 = arith.constant 0.0322580636 : f32
    %554 = vector.broadcast %cst_249 : f32 to vector<16x1xf32>
    %555 = arith.mulf %553, %554 : vector<16x1xf32>
    %556 = math.sqrt %555 : vector<16x1xf32>
    %cst_250 = arith.constant 1.000000e-03 : f32
    %557 = vector.broadcast %cst_250 : f32 to vector<16x1xf32>
    %558 = arith.addf %556, %557 : vector<16x1xf32>
    %559 = tpu.reciprocal %558 : vector<16x1xf32> -> vector<16x1xf32>
    %560 = vector.broadcast %548 : vector<16x1xf32> to vector<16x32xf32>
    %561 = arith.subf %544, %560 : vector<16x32xf32>
    %562 = vector.broadcast %559 : vector<16x1xf32> to vector<16x32xf32>
    %563 = arith.mulf %561, %562 : vector<16x32xf32>
    %564 = vector.broadcast %451 : vector<1x32xf32> to vector<16x32xf32>
    %565 = arith.mulf %563, %564 : vector<16x32xf32>
    %566 = vector.broadcast %452 : vector<1x32xf32> to vector<16x32xf32>
    %567 = arith.addf %565, %566 : vector<16x32xf32>
    %c2_251 = arith.constant 2 : index
    %c0_252 = arith.constant 0 : index
    %c0_253 = arith.constant 0 : index
    %568 = vector.load %arg8[%c2_251, %c0_252, %c0_253] : memref<4x3x32xf32, #tpu.memory_space<vmem>>, vector<1x3x32xf32>
    %569 = vector.shape_cast %568 : vector<1x3x32xf32> to vector<3x32xf32>
    %570 = vector.extract_strided_slice %569 {offsets = [0, 0], sizes = [1, 32], strides = [1, 1]} : vector<3x32xf32> to vector<1x32xf32>
    %571 = vector.extract_strided_slice %569 {offsets = [1, 0], sizes = [1, 32], strides = [1, 1]} : vector<3x32xf32> to vector<1x32xf32>
    %572 = vector.extract_strided_slice %569 {offsets = [2, 0], sizes = [1, 32], strides = [1, 1]} : vector<3x32xf32> to vector<1x32xf32>
    %c2_254 = arith.constant 2 : index
    %c0_255 = arith.constant 0 : index
    %c0_256 = arith.constant 0 : index
    %573 = vector.load %arg5[%c2_254, %c0_255, %c0_256] : memref<4x32x64xf32, #tpu.memory_space<vmem>>, vector<1x32x64xf32>
    %574 = vector.shape_cast %573 : vector<1x32x64xf32> to vector<32x64xf32>
    %cst_257 = arith.constant dense<0.000000e+00> : vector<16x64xf32>
    %575 = tpu.matmul %567, %574, %cst_257 {dimension_numbers = #tpu.dot_dimension_numbers<[1], [0], [0], [1], [0, 0, 1, 1], [], []>} : vector<16x32xf32>, vector<32x64xf32>, vector<16x64xf32> -> vector<16x64xf32>
    %c2_258 = arith.constant 2 : index
    %c0_259 = arith.constant 0 : index
    %c0_260 = arith.constant 0 : index
    %576 = vector.load %arg6[%c2_258, %c0_259, %c0_260] : memref<4x1x64xf32, #tpu.memory_space<vmem>>, vector<1x1x64xf32>
    %577 = vector.shape_cast %576 : vector<1x1x64xf32> to vector<1x64xf32>
    %578 = vector.broadcast %577 : vector<1x64xf32> to vector<16x64xf32>
    %579 = arith.addf %575, %578 : vector<16x64xf32>
    %cst_261 = arith.constant 0.000000e+00 : f32
    %580 = vector.broadcast %cst_261 : f32 to vector<16x64xf32>
    %581 = arith.maximumf %579, %580 : vector<16x64xf32>
    %c2_262 = arith.constant 2 : index
    %c0_263 = arith.constant 0 : index
    %c0_264 = arith.constant 0 : index
    %582 = vector.load %arg7[%c2_262, %c0_263, %c0_264] : memref<4x64x32xf32, #tpu.memory_space<vmem>>, vector<1x64x32xf32>
    %583 = vector.shape_cast %582 : vector<1x64x32xf32> to vector<64x32xf32>
    %cst_265 = arith.constant dense<0.000000e+00> : vector<16x32xf32>
    %584 = tpu.matmul %581, %583, %cst_265 {dimension_numbers = #tpu.dot_dimension_numbers<[1], [0], [0], [1], [0, 0, 1, 1], [], []>} : vector<16x64xf32>, vector<64x32xf32>, vector<16x32xf32> -> vector<16x32xf32>
    %585 = vector.broadcast %570 : vector<1x32xf32> to vector<16x32xf32>
    %586 = arith.addf %584, %585 : vector<16x32xf32>
    %587 = arith.addf %586, %567 : vector<16x32xf32>
    %cst_266 = arith.constant dense<0.000000e+00> : vector<16xf32>
    %588 = vector.multi_reduction <add>, %587, %cst_266 [1] : vector<16x32xf32> to vector<16xf32>
    %589 = vector.shape_cast %588 : vector<16xf32> to vector<16x1xf32>
    %cst_267 = arith.constant 3.200000e+01 : f32
    %590 = vector.broadcast %cst_267 : f32 to vector<16x1xf32>
    %591 = arith.divf %589, %590 : vector<16x1xf32>
    %592 = vector.broadcast %591 : vector<16x1xf32> to vector<16x32xf32>
    %593 = arith.subf %587, %592 : vector<16x32xf32>
    %594 = arith.mulf %593, %593 : vector<16x32xf32>
    %cst_268 = arith.constant dense<0.000000e+00> : vector<16xf32>
    %595 = vector.multi_reduction <add>, %594, %cst_268 [1] : vector<16x32xf32> to vector<16xf32>
    %596 = vector.shape_cast %595 : vector<16xf32> to vector<16x1xf32>
    %cst_269 = arith.constant 0.0322580636 : f32
    %597 = vector.broadcast %cst_269 : f32 to vector<16x1xf32>
    %598 = arith.mulf %596, %597 : vector<16x1xf32>
    %599 = math.sqrt %598 : vector<16x1xf32>
    %cst_270 = arith.constant 1.000000e-03 : f32
    %600 = vector.broadcast %cst_270 : f32 to vector<16x1xf32>
    %601 = arith.addf %599, %600 : vector<16x1xf32>
    %602 = tpu.reciprocal %601 : vector<16x1xf32> -> vector<16x1xf32>
    %603 = vector.broadcast %591 : vector<16x1xf32> to vector<16x32xf32>
    %604 = arith.subf %587, %603 : vector<16x32xf32>
    %605 = vector.broadcast %602 : vector<16x1xf32> to vector<16x32xf32>
    %606 = arith.mulf %604, %605 : vector<16x32xf32>
    %607 = vector.broadcast %571 : vector<1x32xf32> to vector<16x32xf32>
    %608 = arith.mulf %606, %607 : vector<16x32xf32>
    %609 = vector.broadcast %572 : vector<1x32xf32> to vector<16x32xf32>
    %610 = arith.addf %608, %609 : vector<16x32xf32>
    %c4_271 = arith.constant 4 : index
    %c0_272 = arith.constant 0 : index
    %c0_273 = arith.constant 0 : index
    %611 = vector.load %arg4[%c4_271, %c0_272, %c0_273] : memref<6x3x32xf32, #tpu.memory_space<vmem>>, vector<1x3x32xf32>
    %612 = vector.shape_cast %611 : vector<1x3x32xf32> to vector<3x32xf32>
    %613 = vector.extract_strided_slice %612 {offsets = [0, 0], sizes = [1, 32], strides = [1, 1]} : vector<3x32xf32> to vector<1x32xf32>
    %614 = vector.extract_strided_slice %612 {offsets = [1, 0], sizes = [1, 32], strides = [1, 1]} : vector<3x32xf32> to vector<1x32xf32>
    %615 = vector.extract_strided_slice %612 {offsets = [2, 0], sizes = [1, 32], strides = [1, 1]} : vector<3x32xf32> to vector<1x32xf32>
    %c24 = arith.constant 24 : index
    %c0_274 = arith.constant 0 : index
    %c0_275 = arith.constant 0 : index
    %616 = vector.load %arg2[%c24, %c0_274, %c0_275] : memref<36x32x16xf32, #tpu.memory_space<vmem>>, vector<1x32x16xf32>
    %617 = vector.shape_cast %616 : vector<1x32x16xf32> to vector<32x16xf32>
    %c26 = arith.constant 26 : index
    %c0_276 = arith.constant 0 : index
    %c0_277 = arith.constant 0 : index
    %618 = vector.load %arg2[%c26, %c0_276, %c0_277] : memref<36x32x16xf32, #tpu.memory_space<vmem>>, vector<1x32x16xf32>
    %619 = vector.shape_cast %618 : vector<1x32x16xf32> to vector<32x16xf32>
    %c28 = arith.constant 28 : index
    %c0_278 = arith.constant 0 : index
    %c0_279 = arith.constant 0 : index
    %620 = vector.load %arg2[%c28, %c0_278, %c0_279] : memref<36x32x16xf32, #tpu.memory_space<vmem>>, vector<1x32x16xf32>
    %621 = vector.shape_cast %620 : vector<1x32x16xf32> to vector<32x16xf32>
    %c8_280 = arith.constant 8 : index
    %c0_281 = arith.constant 0 : index
    %c0_282 = arith.constant 0 : index
    %622 = vector.load %arg3[%c8_280, %c0_281, %c0_282] : memref<12x16x32xf32, #tpu.memory_space<vmem>>, vector<1x16x32xf32>
    %623 = vector.shape_cast %622 : vector<1x16x32xf32> to vector<16x32xf32>
    %cst_283 = arith.constant dense<0.000000e+00> : vector<16x16xf32>
    %624 = tpu.matmul %610, %617, %cst_283 {dimension_numbers = #tpu.dot_dimension_numbers<[1], [0], [0], [1], [0, 0, 1, 1], [], []>} : vector<16x32xf32>, vector<32x16xf32>, vector<16x16xf32> -> vector<16x16xf32>
    %cst_284 = arith.constant dense<0.000000e+00> : vector<16x16xf32>
    %625 = tpu.matmul %610, %619, %cst_284 {dimension_numbers = #tpu.dot_dimension_numbers<[1], [0], [0], [1], [0, 0, 1, 1], [], []>} : vector<16x32xf32>, vector<32x16xf32>, vector<16x16xf32> -> vector<16x16xf32>
    %cst_285 = arith.constant dense<0.000000e+00> : vector<16x16xf32>
    %626 = tpu.matmul %610, %621, %cst_285 {dimension_numbers = #tpu.dot_dimension_numbers<[1], [0], [0], [1], [0, 0, 1, 1], [], []>} : vector<16x32xf32>, vector<32x16xf32>, vector<16x16xf32> -> vector<16x16xf32>
    %627 = vector.extract_strided_slice %624 {offsets = [0, 0], sizes = [8, 16], strides = [1, 1]} : vector<16x16xf32> to vector<8x16xf32>
    %628 = vector.extract_strided_slice %625 {offsets = [0, 0], sizes = [8, 16], strides = [1, 1]} : vector<16x16xf32> to vector<8x16xf32>
    %629 = vector.extract_strided_slice %626 {offsets = [0, 0], sizes = [8, 16], strides = [1, 1]} : vector<16x16xf32> to vector<8x16xf32>
    %cst_286 = arith.constant dense<0.000000e+00> : vector<8x8xf32>
    %630 = tpu.matmul %627, %628, %cst_286 {dimension_numbers = #tpu.dot_dimension_numbers<[1], [1], [0], [0], [0, 0, 1, 0], [], []>} : vector<8x16xf32>, vector<8x16xf32>, vector<8x8xf32> -> vector<8x8xf32>
    %cst_287 = arith.constant dense<0xFF800000> : vector<8xf32>
    %631 = vector.multi_reduction <maximumf>, %630, %cst_287 [1] : vector<8x8xf32> to vector<8xf32>
    %632 = vector.shape_cast %631 : vector<8xf32> to vector<8x1xf32>
    %633 = vector.broadcast %632 : vector<8x1xf32> to vector<8x8xf32>
    %634 = arith.subf %630, %633 : vector<8x8xf32>
    %635 = math.exp %634 : vector<8x8xf32>
    %cst_288 = arith.constant dense<0.000000e+00> : vector<8xf32>
    %636 = vector.multi_reduction <add>, %635, %cst_288 [1] : vector<8x8xf32> to vector<8xf32>
    %637 = vector.shape_cast %636 : vector<8xf32> to vector<8x1xf32>
    %638 = tpu.reciprocal %637 : vector<8x1xf32> -> vector<8x1xf32>
    %639 = vector.broadcast %638 : vector<8x1xf32> to vector<8x8xf32>
    %640 = arith.mulf %635, %639 : vector<8x8xf32>
    %cst_289 = arith.constant dense<0.000000e+00> : vector<8x16xf32>
    %641 = tpu.matmul %640, %629, %cst_289 {dimension_numbers = #tpu.dot_dimension_numbers<[1], [0], [0], [1], [0, 0, 1, 1], [], []>} : vector<8x8xf32>, vector<8x16xf32>, vector<8x16xf32> -> vector<8x16xf32>
    %cst_290 = arith.constant dense<0.000000e+00> : vector<8x32xf32>
    %642 = tpu.matmul %641, %623, %cst_290 {dimension_numbers = #tpu.dot_dimension_numbers<[1], [0], [0], [1], [0, 0, 1, 1], [], []>} : vector<8x16xf32>, vector<16x32xf32>, vector<8x32xf32> -> vector<8x32xf32>
    %643 = vector.extract_strided_slice %624 {offsets = [8, 0], sizes = [8, 16], strides = [1, 1]} : vector<16x16xf32> to vector<8x16xf32>
    %644 = vector.extract_strided_slice %625 {offsets = [8, 0], sizes = [8, 16], strides = [1, 1]} : vector<16x16xf32> to vector<8x16xf32>
    %645 = vector.extract_strided_slice %626 {offsets = [8, 0], sizes = [8, 16], strides = [1, 1]} : vector<16x16xf32> to vector<8x16xf32>
    %cst_291 = arith.constant dense<0.000000e+00> : vector<8x8xf32>
    %646 = tpu.matmul %643, %644, %cst_291 {dimension_numbers = #tpu.dot_dimension_numbers<[1], [1], [0], [0], [0, 0, 1, 0], [], []>} : vector<8x16xf32>, vector<8x16xf32>, vector<8x8xf32> -> vector<8x8xf32>
    %cst_292 = arith.constant dense<0xFF800000> : vector<8xf32>
    %647 = vector.multi_reduction <maximumf>, %646, %cst_292 [1] : vector<8x8xf32> to vector<8xf32>
    %648 = vector.shape_cast %647 : vector<8xf32> to vector<8x1xf32>
    %649 = vector.broadcast %648 : vector<8x1xf32> to vector<8x8xf32>
    %650 = arith.subf %646, %649 : vector<8x8xf32>
    %651 = math.exp %650 : vector<8x8xf32>
    %cst_293 = arith.constant dense<0.000000e+00> : vector<8xf32>
    %652 = vector.multi_reduction <add>, %651, %cst_293 [1] : vector<8x8xf32> to vector<8xf32>
    %653 = vector.shape_cast %652 : vector<8xf32> to vector<8x1xf32>
    %654 = tpu.reciprocal %653 : vector<8x1xf32> -> vector<8x1xf32>
    %655 = vector.broadcast %654 : vector<8x1xf32> to vector<8x8xf32>
    %656 = arith.mulf %651, %655 : vector<8x8xf32>
    %cst_294 = arith.constant dense<0.000000e+00> : vector<8x16xf32>
    %657 = tpu.matmul %656, %645, %cst_294 {dimension_numbers = #tpu.dot_dimension_numbers<[1], [0], [0], [1], [0, 0, 1, 1], [], []>} : vector<8x8xf32>, vector<8x16xf32>, vector<8x16xf32> -> vector<8x16xf32>
    %cst_295 = arith.constant dense<0.000000e+00> : vector<8x32xf32>
    %658 = tpu.matmul %657, %623, %cst_295 {dimension_numbers = #tpu.dot_dimension_numbers<[1], [0], [0], [1], [0, 0, 1, 1], [], []>} : vector<8x16xf32>, vector<16x32xf32>, vector<8x32xf32> -> vector<8x32xf32>
    %c25 = arith.constant 25 : index
    %c0_296 = arith.constant 0 : index
    %c0_297 = arith.constant 0 : index
    %659 = vector.load %arg2[%c25, %c0_296, %c0_297] : memref<36x32x16xf32, #tpu.memory_space<vmem>>, vector<1x32x16xf32>
    %660 = vector.shape_cast %659 : vector<1x32x16xf32> to vector<32x16xf32>
    %c27 = arith.constant 27 : index
    %c0_298 = arith.constant 0 : index
    %c0_299 = arith.constant 0 : index
    %661 = vector.load %arg2[%c27, %c0_298, %c0_299] : memref<36x32x16xf32, #tpu.memory_space<vmem>>, vector<1x32x16xf32>
    %662 = vector.shape_cast %661 : vector<1x32x16xf32> to vector<32x16xf32>
    %c29 = arith.constant 29 : index
    %c0_300 = arith.constant 0 : index
    %c0_301 = arith.constant 0 : index
    %663 = vector.load %arg2[%c29, %c0_300, %c0_301] : memref<36x32x16xf32, #tpu.memory_space<vmem>>, vector<1x32x16xf32>
    %664 = vector.shape_cast %663 : vector<1x32x16xf32> to vector<32x16xf32>
    %c9_302 = arith.constant 9 : index
    %c0_303 = arith.constant 0 : index
    %c0_304 = arith.constant 0 : index
    %665 = vector.load %arg3[%c9_302, %c0_303, %c0_304] : memref<12x16x32xf32, #tpu.memory_space<vmem>>, vector<1x16x32xf32>
    %666 = vector.shape_cast %665 : vector<1x16x32xf32> to vector<16x32xf32>
    %cst_305 = arith.constant dense<0.000000e+00> : vector<16x16xf32>
    %667 = tpu.matmul %610, %660, %cst_305 {dimension_numbers = #tpu.dot_dimension_numbers<[1], [0], [0], [1], [0, 0, 1, 1], [], []>} : vector<16x32xf32>, vector<32x16xf32>, vector<16x16xf32> -> vector<16x16xf32>
    %cst_306 = arith.constant dense<0.000000e+00> : vector<16x16xf32>
    %668 = tpu.matmul %610, %662, %cst_306 {dimension_numbers = #tpu.dot_dimension_numbers<[1], [0], [0], [1], [0, 0, 1, 1], [], []>} : vector<16x32xf32>, vector<32x16xf32>, vector<16x16xf32> -> vector<16x16xf32>
    %cst_307 = arith.constant dense<0.000000e+00> : vector<16x16xf32>
    %669 = tpu.matmul %610, %664, %cst_307 {dimension_numbers = #tpu.dot_dimension_numbers<[1], [0], [0], [1], [0, 0, 1, 1], [], []>} : vector<16x32xf32>, vector<32x16xf32>, vector<16x16xf32> -> vector<16x16xf32>
    %670 = vector.extract_strided_slice %667 {offsets = [0, 0], sizes = [8, 16], strides = [1, 1]} : vector<16x16xf32> to vector<8x16xf32>
    %671 = vector.extract_strided_slice %668 {offsets = [0, 0], sizes = [8, 16], strides = [1, 1]} : vector<16x16xf32> to vector<8x16xf32>
    %672 = vector.extract_strided_slice %669 {offsets = [0, 0], sizes = [8, 16], strides = [1, 1]} : vector<16x16xf32> to vector<8x16xf32>
    %cst_308 = arith.constant dense<0.000000e+00> : vector<8x8xf32>
    %673 = tpu.matmul %670, %671, %cst_308 {dimension_numbers = #tpu.dot_dimension_numbers<[1], [1], [0], [0], [0, 0, 1, 0], [], []>} : vector<8x16xf32>, vector<8x16xf32>, vector<8x8xf32> -> vector<8x8xf32>
    %cst_309 = arith.constant dense<0xFF800000> : vector<8xf32>
    %674 = vector.multi_reduction <maximumf>, %673, %cst_309 [1] : vector<8x8xf32> to vector<8xf32>
    %675 = vector.shape_cast %674 : vector<8xf32> to vector<8x1xf32>
    %676 = vector.broadcast %675 : vector<8x1xf32> to vector<8x8xf32>
    %677 = arith.subf %673, %676 : vector<8x8xf32>
    %678 = math.exp %677 : vector<8x8xf32>
    %cst_310 = arith.constant dense<0.000000e+00> : vector<8xf32>
    %679 = vector.multi_reduction <add>, %678, %cst_310 [1] : vector<8x8xf32> to vector<8xf32>
    %680 = vector.shape_cast %679 : vector<8xf32> to vector<8x1xf32>
    %681 = tpu.reciprocal %680 : vector<8x1xf32> -> vector<8x1xf32>
    %682 = vector.broadcast %681 : vector<8x1xf32> to vector<8x8xf32>
    %683 = arith.mulf %678, %682 : vector<8x8xf32>
    %cst_311 = arith.constant dense<0.000000e+00> : vector<8x16xf32>
    %684 = tpu.matmul %683, %672, %cst_311 {dimension_numbers = #tpu.dot_dimension_numbers<[1], [0], [0], [1], [0, 0, 1, 1], [], []>} : vector<8x8xf32>, vector<8x16xf32>, vector<8x16xf32> -> vector<8x16xf32>
    %cst_312 = arith.constant dense<0.000000e+00> : vector<8x32xf32>
    %685 = tpu.matmul %684, %666, %cst_312 {dimension_numbers = #tpu.dot_dimension_numbers<[1], [0], [0], [1], [0, 0, 1, 1], [], []>} : vector<8x16xf32>, vector<16x32xf32>, vector<8x32xf32> -> vector<8x32xf32>
    %686 = arith.addf %642, %685 : vector<8x32xf32>
    %687 = vector.extract_strided_slice %667 {offsets = [8, 0], sizes = [8, 16], strides = [1, 1]} : vector<16x16xf32> to vector<8x16xf32>
    %688 = vector.extract_strided_slice %668 {offsets = [8, 0], sizes = [8, 16], strides = [1, 1]} : vector<16x16xf32> to vector<8x16xf32>
    %689 = vector.extract_strided_slice %669 {offsets = [8, 0], sizes = [8, 16], strides = [1, 1]} : vector<16x16xf32> to vector<8x16xf32>
    %cst_313 = arith.constant dense<0.000000e+00> : vector<8x8xf32>
    %690 = tpu.matmul %687, %688, %cst_313 {dimension_numbers = #tpu.dot_dimension_numbers<[1], [1], [0], [0], [0, 0, 1, 0], [], []>} : vector<8x16xf32>, vector<8x16xf32>, vector<8x8xf32> -> vector<8x8xf32>
    %cst_314 = arith.constant dense<0xFF800000> : vector<8xf32>
    %691 = vector.multi_reduction <maximumf>, %690, %cst_314 [1] : vector<8x8xf32> to vector<8xf32>
    %692 = vector.shape_cast %691 : vector<8xf32> to vector<8x1xf32>
    %693 = vector.broadcast %692 : vector<8x1xf32> to vector<8x8xf32>
    %694 = arith.subf %690, %693 : vector<8x8xf32>
    %695 = math.exp %694 : vector<8x8xf32>
    %cst_315 = arith.constant dense<0.000000e+00> : vector<8xf32>
    %696 = vector.multi_reduction <add>, %695, %cst_315 [1] : vector<8x8xf32> to vector<8xf32>
    %697 = vector.shape_cast %696 : vector<8xf32> to vector<8x1xf32>
    %698 = tpu.reciprocal %697 : vector<8x1xf32> -> vector<8x1xf32>
    %699 = vector.broadcast %698 : vector<8x1xf32> to vector<8x8xf32>
    %700 = arith.mulf %695, %699 : vector<8x8xf32>
    %cst_316 = arith.constant dense<0.000000e+00> : vector<8x16xf32>
    %701 = tpu.matmul %700, %689, %cst_316 {dimension_numbers = #tpu.dot_dimension_numbers<[1], [0], [0], [1], [0, 0, 1, 1], [], []>} : vector<8x8xf32>, vector<8x16xf32>, vector<8x16xf32> -> vector<8x16xf32>
    %cst_317 = arith.constant dense<0.000000e+00> : vector<8x32xf32>
    %702 = tpu.matmul %701, %666, %cst_317 {dimension_numbers = #tpu.dot_dimension_numbers<[1], [0], [0], [1], [0, 0, 1, 1], [], []>} : vector<8x16xf32>, vector<16x32xf32>, vector<8x32xf32> -> vector<8x32xf32>
    %703 = arith.addf %658, %702 : vector<8x32xf32>
    %704 = tpu.concatenate %686, %703 in 0 : vector<8x32xf32>, vector<8x32xf32> -> vector<16x32xf32>
    %705 = vector.broadcast %613 : vector<1x32xf32> to vector<16x32xf32>
    %706 = arith.addf %704, %705 : vector<16x32xf32>
    %707 = arith.addf %706, %610 : vector<16x32xf32>
    %cst_318 = arith.constant dense<0.000000e+00> : vector<16xf32>
    %708 = vector.multi_reduction <add>, %707, %cst_318 [1] : vector<16x32xf32> to vector<16xf32>
    %709 = vector.shape_cast %708 : vector<16xf32> to vector<16x1xf32>
    %cst_319 = arith.constant 3.200000e+01 : f32
    %710 = vector.broadcast %cst_319 : f32 to vector<16x1xf32>
    %711 = arith.divf %709, %710 : vector<16x1xf32>
    %712 = vector.broadcast %711 : vector<16x1xf32> to vector<16x32xf32>
    %713 = arith.subf %707, %712 : vector<16x32xf32>
    %714 = arith.mulf %713, %713 : vector<16x32xf32>
    %cst_320 = arith.constant dense<0.000000e+00> : vector<16xf32>
    %715 = vector.multi_reduction <add>, %714, %cst_320 [1] : vector<16x32xf32> to vector<16xf32>
    %716 = vector.shape_cast %715 : vector<16xf32> to vector<16x1xf32>
    %cst_321 = arith.constant 0.0322580636 : f32
    %717 = vector.broadcast %cst_321 : f32 to vector<16x1xf32>
    %718 = arith.mulf %716, %717 : vector<16x1xf32>
    %719 = math.sqrt %718 : vector<16x1xf32>
    %cst_322 = arith.constant 1.000000e-03 : f32
    %720 = vector.broadcast %cst_322 : f32 to vector<16x1xf32>
    %721 = arith.addf %719, %720 : vector<16x1xf32>
    %722 = tpu.reciprocal %721 : vector<16x1xf32> -> vector<16x1xf32>
    %723 = vector.broadcast %711 : vector<16x1xf32> to vector<16x32xf32>
    %724 = arith.subf %707, %723 : vector<16x32xf32>
    %725 = vector.broadcast %722 : vector<16x1xf32> to vector<16x32xf32>
    %726 = arith.mulf %724, %725 : vector<16x32xf32>
    %727 = vector.broadcast %614 : vector<1x32xf32> to vector<16x32xf32>
    %728 = arith.mulf %726, %727 : vector<16x32xf32>
    %729 = vector.broadcast %615 : vector<1x32xf32> to vector<16x32xf32>
    %730 = arith.addf %728, %729 : vector<16x32xf32>
    %c5_323 = arith.constant 5 : index
    %c0_324 = arith.constant 0 : index
    %c0_325 = arith.constant 0 : index
    %731 = vector.load %arg4[%c5_323, %c0_324, %c0_325] : memref<6x3x32xf32, #tpu.memory_space<vmem>>, vector<1x3x32xf32>
    %732 = vector.shape_cast %731 : vector<1x3x32xf32> to vector<3x32xf32>
    %733 = vector.extract_strided_slice %732 {offsets = [0, 0], sizes = [1, 32], strides = [1, 1]} : vector<3x32xf32> to vector<1x32xf32>
    %734 = vector.extract_strided_slice %732 {offsets = [1, 0], sizes = [1, 32], strides = [1, 1]} : vector<3x32xf32> to vector<1x32xf32>
    %735 = vector.extract_strided_slice %732 {offsets = [2, 0], sizes = [1, 32], strides = [1, 1]} : vector<3x32xf32> to vector<1x32xf32>
    %c30 = arith.constant 30 : index
    %c0_326 = arith.constant 0 : index
    %c0_327 = arith.constant 0 : index
    %736 = vector.load %arg2[%c30, %c0_326, %c0_327] : memref<36x32x16xf32, #tpu.memory_space<vmem>>, vector<1x32x16xf32>
    %737 = vector.shape_cast %736 : vector<1x32x16xf32> to vector<32x16xf32>
    %c32 = arith.constant 32 : index
    %c0_328 = arith.constant 0 : index
    %c0_329 = arith.constant 0 : index
    %738 = vector.load %arg2[%c32, %c0_328, %c0_329] : memref<36x32x16xf32, #tpu.memory_space<vmem>>, vector<1x32x16xf32>
    %739 = vector.shape_cast %738 : vector<1x32x16xf32> to vector<32x16xf32>
    %c34 = arith.constant 34 : index
    %c0_330 = arith.constant 0 : index
    %c0_331 = arith.constant 0 : index
    %740 = vector.load %arg2[%c34, %c0_330, %c0_331] : memref<36x32x16xf32, #tpu.memory_space<vmem>>, vector<1x32x16xf32>
    %741 = vector.shape_cast %740 : vector<1x32x16xf32> to vector<32x16xf32>
    %c10_332 = arith.constant 10 : index
    %c0_333 = arith.constant 0 : index
    %c0_334 = arith.constant 0 : index
    %742 = vector.load %arg3[%c10_332, %c0_333, %c0_334] : memref<12x16x32xf32, #tpu.memory_space<vmem>>, vector<1x16x32xf32>
    %743 = vector.shape_cast %742 : vector<1x16x32xf32> to vector<16x32xf32>
    %cst_335 = arith.constant dense<0.000000e+00> : vector<16x16xf32>
    %744 = tpu.matmul %730, %737, %cst_335 {dimension_numbers = #tpu.dot_dimension_numbers<[1], [0], [0], [1], [0, 0, 1, 1], [], []>} : vector<16x32xf32>, vector<32x16xf32>, vector<16x16xf32> -> vector<16x16xf32>
    %cst_336 = arith.constant dense<0.000000e+00> : vector<16x16xf32>
    %745 = tpu.matmul %326, %739, %cst_336 {dimension_numbers = #tpu.dot_dimension_numbers<[1], [0], [0], [1], [0, 0, 1, 1], [], []>} : vector<16x32xf32>, vector<32x16xf32>, vector<16x16xf32> -> vector<16x16xf32>
    %cst_337 = arith.constant dense<0.000000e+00> : vector<16x16xf32>
    %746 = tpu.matmul %326, %741, %cst_337 {dimension_numbers = #tpu.dot_dimension_numbers<[1], [0], [0], [1], [0, 0, 1, 1], [], []>} : vector<16x32xf32>, vector<32x16xf32>, vector<16x16xf32> -> vector<16x16xf32>
    %747 = vector.extract_strided_slice %744 {offsets = [0, 0], sizes = [8, 16], strides = [1, 1]} : vector<16x16xf32> to vector<8x16xf32>
    %748 = vector.extract_strided_slice %745 {offsets = [0, 0], sizes = [8, 16], strides = [1, 1]} : vector<16x16xf32> to vector<8x16xf32>
    %749 = vector.extract_strided_slice %746 {offsets = [0, 0], sizes = [8, 16], strides = [1, 1]} : vector<16x16xf32> to vector<8x16xf32>
    %cst_338 = arith.constant dense<0.000000e+00> : vector<8x8xf32>
    %750 = tpu.matmul %747, %748, %cst_338 {dimension_numbers = #tpu.dot_dimension_numbers<[1], [1], [0], [0], [0, 0, 1, 0], [], []>} : vector<8x16xf32>, vector<8x16xf32>, vector<8x8xf32> -> vector<8x8xf32>
    %cst_339 = arith.constant dense<0xFF800000> : vector<8xf32>
    %751 = vector.multi_reduction <maximumf>, %750, %cst_339 [1] : vector<8x8xf32> to vector<8xf32>
    %752 = vector.shape_cast %751 : vector<8xf32> to vector<8x1xf32>
    %753 = vector.broadcast %752 : vector<8x1xf32> to vector<8x8xf32>
    %754 = arith.subf %750, %753 : vector<8x8xf32>
    %755 = math.exp %754 : vector<8x8xf32>
    %cst_340 = arith.constant dense<0.000000e+00> : vector<8xf32>
    %756 = vector.multi_reduction <add>, %755, %cst_340 [1] : vector<8x8xf32> to vector<8xf32>
    %757 = vector.shape_cast %756 : vector<8xf32> to vector<8x1xf32>
    %758 = tpu.reciprocal %757 : vector<8x1xf32> -> vector<8x1xf32>
    %759 = vector.broadcast %758 : vector<8x1xf32> to vector<8x8xf32>
    %760 = arith.mulf %755, %759 : vector<8x8xf32>
    %cst_341 = arith.constant dense<0.000000e+00> : vector<8x16xf32>
    %761 = tpu.matmul %760, %749, %cst_341 {dimension_numbers = #tpu.dot_dimension_numbers<[1], [0], [0], [1], [0, 0, 1, 1], [], []>} : vector<8x8xf32>, vector<8x16xf32>, vector<8x16xf32> -> vector<8x16xf32>
    %cst_342 = arith.constant dense<0.000000e+00> : vector<8x32xf32>
    %762 = tpu.matmul %761, %743, %cst_342 {dimension_numbers = #tpu.dot_dimension_numbers<[1], [0], [0], [1], [0, 0, 1, 1], [], []>} : vector<8x16xf32>, vector<16x32xf32>, vector<8x32xf32> -> vector<8x32xf32>
    %763 = vector.extract_strided_slice %744 {offsets = [8, 0], sizes = [8, 16], strides = [1, 1]} : vector<16x16xf32> to vector<8x16xf32>
    %764 = vector.extract_strided_slice %745 {offsets = [8, 0], sizes = [8, 16], strides = [1, 1]} : vector<16x16xf32> to vector<8x16xf32>
    %765 = vector.extract_strided_slice %746 {offsets = [8, 0], sizes = [8, 16], strides = [1, 1]} : vector<16x16xf32> to vector<8x16xf32>
    %cst_343 = arith.constant dense<0.000000e+00> : vector<8x8xf32>
    %766 = tpu.matmul %763, %764, %cst_343 {dimension_numbers = #tpu.dot_dimension_numbers<[1], [1], [0], [0], [0, 0, 1, 0], [], []>} : vector<8x16xf32>, vector<8x16xf32>, vector<8x8xf32> -> vector<8x8xf32>
    %cst_344 = arith.constant dense<0xFF800000> : vector<8xf32>
    %767 = vector.multi_reduction <maximumf>, %766, %cst_344 [1] : vector<8x8xf32> to vector<8xf32>
    %768 = vector.shape_cast %767 : vector<8xf32> to vector<8x1xf32>
    %769 = vector.broadcast %768 : vector<8x1xf32> to vector<8x8xf32>
    %770 = arith.subf %766, %769 : vector<8x8xf32>
    %771 = math.exp %770 : vector<8x8xf32>
    %cst_345 = arith.constant dense<0.000000e+00> : vector<8xf32>
    %772 = vector.multi_reduction <add>, %771, %cst_345 [1] : vector<8x8xf32> to vector<8xf32>
    %773 = vector.shape_cast %772 : vector<8xf32> to vector<8x1xf32>
    %774 = tpu.reciprocal %773 : vector<8x1xf32> -> vector<8x1xf32>
    %775 = vector.broadcast %774 : vector<8x1xf32> to vector<8x8xf32>
    %776 = arith.mulf %771, %775 : vector<8x8xf32>
    %cst_346 = arith.constant dense<0.000000e+00> : vector<8x16xf32>
    %777 = tpu.matmul %776, %765, %cst_346 {dimension_numbers = #tpu.dot_dimension_numbers<[1], [0], [0], [1], [0, 0, 1, 1], [], []>} : vector<8x8xf32>, vector<8x16xf32>, vector<8x16xf32> -> vector<8x16xf32>
    %cst_347 = arith.constant dense<0.000000e+00> : vector<8x32xf32>
    %778 = tpu.matmul %777, %743, %cst_347 {dimension_numbers = #tpu.dot_dimension_numbers<[1], [0], [0], [1], [0, 0, 1, 1], [], []>} : vector<8x16xf32>, vector<16x32xf32>, vector<8x32xf32> -> vector<8x32xf32>
    %c31 = arith.constant 31 : index
    %c0_348 = arith.constant 0 : index
    %c0_349 = arith.constant 0 : index
    %779 = vector.load %arg2[%c31, %c0_348, %c0_349] : memref<36x32x16xf32, #tpu.memory_space<vmem>>, vector<1x32x16xf32>
    %780 = vector.shape_cast %779 : vector<1x32x16xf32> to vector<32x16xf32>
    %c33 = arith.constant 33 : index
    %c0_350 = arith.constant 0 : index
    %c0_351 = arith.constant 0 : index
    %781 = vector.load %arg2[%c33, %c0_350, %c0_351] : memref<36x32x16xf32, #tpu.memory_space<vmem>>, vector<1x32x16xf32>
    %782 = vector.shape_cast %781 : vector<1x32x16xf32> to vector<32x16xf32>
    %c35 = arith.constant 35 : index
    %c0_352 = arith.constant 0 : index
    %c0_353 = arith.constant 0 : index
    %783 = vector.load %arg2[%c35, %c0_352, %c0_353] : memref<36x32x16xf32, #tpu.memory_space<vmem>>, vector<1x32x16xf32>
    %784 = vector.shape_cast %783 : vector<1x32x16xf32> to vector<32x16xf32>
    %c11_354 = arith.constant 11 : index
    %c0_355 = arith.constant 0 : index
    %c0_356 = arith.constant 0 : index
    %785 = vector.load %arg3[%c11_354, %c0_355, %c0_356] : memref<12x16x32xf32, #tpu.memory_space<vmem>>, vector<1x16x32xf32>
    %786 = vector.shape_cast %785 : vector<1x16x32xf32> to vector<16x32xf32>
    %cst_357 = arith.constant dense<0.000000e+00> : vector<16x16xf32>
    %787 = tpu.matmul %730, %780, %cst_357 {dimension_numbers = #tpu.dot_dimension_numbers<[1], [0], [0], [1], [0, 0, 1, 1], [], []>} : vector<16x32xf32>, vector<32x16xf32>, vector<16x16xf32> -> vector<16x16xf32>
    %cst_358 = arith.constant dense<0.000000e+00> : vector<16x16xf32>
    %788 = tpu.matmul %326, %782, %cst_358 {dimension_numbers = #tpu.dot_dimension_numbers<[1], [0], [0], [1], [0, 0, 1, 1], [], []>} : vector<16x32xf32>, vector<32x16xf32>, vector<16x16xf32> -> vector<16x16xf32>
    %cst_359 = arith.constant dense<0.000000e+00> : vector<16x16xf32>
    %789 = tpu.matmul %326, %784, %cst_359 {dimension_numbers = #tpu.dot_dimension_numbers<[1], [0], [0], [1], [0, 0, 1, 1], [], []>} : vector<16x32xf32>, vector<32x16xf32>, vector<16x16xf32> -> vector<16x16xf32>
    %790 = vector.extract_strided_slice %787 {offsets = [0, 0], sizes = [8, 16], strides = [1, 1]} : vector<16x16xf32> to vector<8x16xf32>
    %791 = vector.extract_strided_slice %788 {offsets = [0, 0], sizes = [8, 16], strides = [1, 1]} : vector<16x16xf32> to vector<8x16xf32>
    %792 = vector.extract_strided_slice %789 {offsets = [0, 0], sizes = [8, 16], strides = [1, 1]} : vector<16x16xf32> to vector<8x16xf32>
    %cst_360 = arith.constant dense<0.000000e+00> : vector<8x8xf32>
    %793 = tpu.matmul %790, %791, %cst_360 {dimension_numbers = #tpu.dot_dimension_numbers<[1], [1], [0], [0], [0, 0, 1, 0], [], []>} : vector<8x16xf32>, vector<8x16xf32>, vector<8x8xf32> -> vector<8x8xf32>
    %cst_361 = arith.constant dense<0xFF800000> : vector<8xf32>
    %794 = vector.multi_reduction <maximumf>, %793, %cst_361 [1] : vector<8x8xf32> to vector<8xf32>
    %795 = vector.shape_cast %794 : vector<8xf32> to vector<8x1xf32>
    %796 = vector.broadcast %795 : vector<8x1xf32> to vector<8x8xf32>
    %797 = arith.subf %793, %796 : vector<8x8xf32>
    %798 = math.exp %797 : vector<8x8xf32>
    %cst_362 = arith.constant dense<0.000000e+00> : vector<8xf32>
    %799 = vector.multi_reduction <add>, %798, %cst_362 [1] : vector<8x8xf32> to vector<8xf32>
    %800 = vector.shape_cast %799 : vector<8xf32> to vector<8x1xf32>
    %801 = tpu.reciprocal %800 : vector<8x1xf32> -> vector<8x1xf32>
    %802 = vector.broadcast %801 : vector<8x1xf32> to vector<8x8xf32>
    %803 = arith.mulf %798, %802 : vector<8x8xf32>
    %cst_363 = arith.constant dense<0.000000e+00> : vector<8x16xf32>
    %804 = tpu.matmul %803, %792, %cst_363 {dimension_numbers = #tpu.dot_dimension_numbers<[1], [0], [0], [1], [0, 0, 1, 1], [], []>} : vector<8x8xf32>, vector<8x16xf32>, vector<8x16xf32> -> vector<8x16xf32>
    %cst_364 = arith.constant dense<0.000000e+00> : vector<8x32xf32>
    %805 = tpu.matmul %804, %786, %cst_364 {dimension_numbers = #tpu.dot_dimension_numbers<[1], [0], [0], [1], [0, 0, 1, 1], [], []>} : vector<8x16xf32>, vector<16x32xf32>, vector<8x32xf32> -> vector<8x32xf32>
    %806 = arith.addf %762, %805 : vector<8x32xf32>
    %807 = vector.extract_strided_slice %787 {offsets = [8, 0], sizes = [8, 16], strides = [1, 1]} : vector<16x16xf32> to vector<8x16xf32>
    %808 = vector.extract_strided_slice %788 {offsets = [8, 0], sizes = [8, 16], strides = [1, 1]} : vector<16x16xf32> to vector<8x16xf32>
    %809 = vector.extract_strided_slice %789 {offsets = [8, 0], sizes = [8, 16], strides = [1, 1]} : vector<16x16xf32> to vector<8x16xf32>
    %cst_365 = arith.constant dense<0.000000e+00> : vector<8x8xf32>
    %810 = tpu.matmul %807, %808, %cst_365 {dimension_numbers = #tpu.dot_dimension_numbers<[1], [1], [0], [0], [0, 0, 1, 0], [], []>} : vector<8x16xf32>, vector<8x16xf32>, vector<8x8xf32> -> vector<8x8xf32>
    %cst_366 = arith.constant dense<0xFF800000> : vector<8xf32>
    %811 = vector.multi_reduction <maximumf>, %810, %cst_366 [1] : vector<8x8xf32> to vector<8xf32>
    %812 = vector.shape_cast %811 : vector<8xf32> to vector<8x1xf32>
    %813 = vector.broadcast %812 : vector<8x1xf32> to vector<8x8xf32>
    %814 = arith.subf %810, %813 : vector<8x8xf32>
    %815 = math.exp %814 : vector<8x8xf32>
    %cst_367 = arith.constant dense<0.000000e+00> : vector<8xf32>
    %816 = vector.multi_reduction <add>, %815, %cst_367 [1] : vector<8x8xf32> to vector<8xf32>
    %817 = vector.shape_cast %816 : vector<8xf32> to vector<8x1xf32>
    %818 = tpu.reciprocal %817 : vector<8x1xf32> -> vector<8x1xf32>
    %819 = vector.broadcast %818 : vector<8x1xf32> to vector<8x8xf32>
    %820 = arith.mulf %815, %819 : vector<8x8xf32>
    %cst_368 = arith.constant dense<0.000000e+00> : vector<8x16xf32>
    %821 = tpu.matmul %820, %809, %cst_368 {dimension_numbers = #tpu.dot_dimension_numbers<[1], [0], [0], [1], [0, 0, 1, 1], [], []>} : vector<8x8xf32>, vector<8x16xf32>, vector<8x16xf32> -> vector<8x16xf32>
    %cst_369 = arith.constant dense<0.000000e+00> : vector<8x32xf32>
    %822 = tpu.matmul %821, %786, %cst_369 {dimension_numbers = #tpu.dot_dimension_numbers<[1], [0], [0], [1], [0, 0, 1, 1], [], []>} : vector<8x16xf32>, vector<16x32xf32>, vector<8x32xf32> -> vector<8x32xf32>
    %823 = arith.addf %778, %822 : vector<8x32xf32>
    %824 = tpu.concatenate %806, %823 in 0 : vector<8x32xf32>, vector<8x32xf32> -> vector<16x32xf32>
    %825 = vector.broadcast %733 : vector<1x32xf32> to vector<16x32xf32>
    %826 = arith.addf %824, %825 : vector<16x32xf32>
    %827 = arith.addf %826, %730 : vector<16x32xf32>
    %cst_370 = arith.constant dense<0.000000e+00> : vector<16xf32>
    %828 = vector.multi_reduction <add>, %827, %cst_370 [1] : vector<16x32xf32> to vector<16xf32>
    %829 = vector.shape_cast %828 : vector<16xf32> to vector<16x1xf32>
    %cst_371 = arith.constant 3.200000e+01 : f32
    %830 = vector.broadcast %cst_371 : f32 to vector<16x1xf32>
    %831 = arith.divf %829, %830 : vector<16x1xf32>
    %832 = vector.broadcast %831 : vector<16x1xf32> to vector<16x32xf32>
    %833 = arith.subf %827, %832 : vector<16x32xf32>
    %834 = arith.mulf %833, %833 : vector<16x32xf32>
    %cst_372 = arith.constant dense<0.000000e+00> : vector<16xf32>
    %835 = vector.multi_reduction <add>, %834, %cst_372 [1] : vector<16x32xf32> to vector<16xf32>
    %836 = vector.shape_cast %835 : vector<16xf32> to vector<16x1xf32>
    %cst_373 = arith.constant 0.0322580636 : f32
    %837 = vector.broadcast %cst_373 : f32 to vector<16x1xf32>
    %838 = arith.mulf %836, %837 : vector<16x1xf32>
    %839 = math.sqrt %838 : vector<16x1xf32>
    %cst_374 = arith.constant 1.000000e-03 : f32
    %840 = vector.broadcast %cst_374 : f32 to vector<16x1xf32>
    %841 = arith.addf %839, %840 : vector<16x1xf32>
    %842 = tpu.reciprocal %841 : vector<16x1xf32> -> vector<16x1xf32>
    %843 = vector.broadcast %831 : vector<16x1xf32> to vector<16x32xf32>
    %844 = arith.subf %827, %843 : vector<16x32xf32>
    %845 = vector.broadcast %842 : vector<16x1xf32> to vector<16x32xf32>
    %846 = arith.mulf %844, %845 : vector<16x32xf32>
    %847 = vector.broadcast %734 : vector<1x32xf32> to vector<16x32xf32>
    %848 = arith.mulf %846, %847 : vector<16x32xf32>
    %849 = vector.broadcast %735 : vector<1x32xf32> to vector<16x32xf32>
    %850 = arith.addf %848, %849 : vector<16x32xf32>
    %c3_375 = arith.constant 3 : index
    %c0_376 = arith.constant 0 : index
    %c0_377 = arith.constant 0 : index
    %851 = vector.load %arg8[%c3_375, %c0_376, %c0_377] : memref<4x3x32xf32, #tpu.memory_space<vmem>>, vector<1x3x32xf32>
    %852 = vector.shape_cast %851 : vector<1x3x32xf32> to vector<3x32xf32>
    %853 = vector.extract_strided_slice %852 {offsets = [0, 0], sizes = [1, 32], strides = [1, 1]} : vector<3x32xf32> to vector<1x32xf32>
    %854 = vector.extract_strided_slice %852 {offsets = [1, 0], sizes = [1, 32], strides = [1, 1]} : vector<3x32xf32> to vector<1x32xf32>
    %855 = vector.extract_strided_slice %852 {offsets = [2, 0], sizes = [1, 32], strides = [1, 1]} : vector<3x32xf32> to vector<1x32xf32>
    %c3_378 = arith.constant 3 : index
    %c0_379 = arith.constant 0 : index
    %c0_380 = arith.constant 0 : index
    %856 = vector.load %arg5[%c3_378, %c0_379, %c0_380] : memref<4x32x64xf32, #tpu.memory_space<vmem>>, vector<1x32x64xf32>
    %857 = vector.shape_cast %856 : vector<1x32x64xf32> to vector<32x64xf32>
    %cst_381 = arith.constant dense<0.000000e+00> : vector<16x64xf32>
    %858 = tpu.matmul %850, %857, %cst_381 {dimension_numbers = #tpu.dot_dimension_numbers<[1], [0], [0], [1], [0, 0, 1, 1], [], []>} : vector<16x32xf32>, vector<32x64xf32>, vector<16x64xf32> -> vector<16x64xf32>
    %c3_382 = arith.constant 3 : index
    %c0_383 = arith.constant 0 : index
    %c0_384 = arith.constant 0 : index
    %859 = vector.load %arg6[%c3_382, %c0_383, %c0_384] : memref<4x1x64xf32, #tpu.memory_space<vmem>>, vector<1x1x64xf32>
    %860 = vector.shape_cast %859 : vector<1x1x64xf32> to vector<1x64xf32>
    %861 = vector.broadcast %860 : vector<1x64xf32> to vector<16x64xf32>
    %862 = arith.addf %858, %861 : vector<16x64xf32>
    %cst_385 = arith.constant 0.000000e+00 : f32
    %863 = vector.broadcast %cst_385 : f32 to vector<16x64xf32>
    %864 = arith.maximumf %862, %863 : vector<16x64xf32>
    %c3_386 = arith.constant 3 : index
    %c0_387 = arith.constant 0 : index
    %c0_388 = arith.constant 0 : index
    %865 = vector.load %arg7[%c3_386, %c0_387, %c0_388] : memref<4x64x32xf32, #tpu.memory_space<vmem>>, vector<1x64x32xf32>
    %866 = vector.shape_cast %865 : vector<1x64x32xf32> to vector<64x32xf32>
    %cst_389 = arith.constant dense<0.000000e+00> : vector<16x32xf32>
    %867 = tpu.matmul %864, %866, %cst_389 {dimension_numbers = #tpu.dot_dimension_numbers<[1], [0], [0], [1], [0, 0, 1, 1], [], []>} : vector<16x64xf32>, vector<64x32xf32>, vector<16x32xf32> -> vector<16x32xf32>
    %868 = vector.broadcast %853 : vector<1x32xf32> to vector<16x32xf32>
    %869 = arith.addf %867, %868 : vector<16x32xf32>
    %870 = arith.addf %869, %850 : vector<16x32xf32>
    %cst_390 = arith.constant dense<0.000000e+00> : vector<16xf32>
    %871 = vector.multi_reduction <add>, %870, %cst_390 [1] : vector<16x32xf32> to vector<16xf32>
    %872 = vector.shape_cast %871 : vector<16xf32> to vector<16x1xf32>
    %cst_391 = arith.constant 3.200000e+01 : f32
    %873 = vector.broadcast %cst_391 : f32 to vector<16x1xf32>
    %874 = arith.divf %872, %873 : vector<16x1xf32>
    %875 = vector.broadcast %874 : vector<16x1xf32> to vector<16x32xf32>
    %876 = arith.subf %870, %875 : vector<16x32xf32>
    %877 = arith.mulf %876, %876 : vector<16x32xf32>
    %cst_392 = arith.constant dense<0.000000e+00> : vector<16xf32>
    %878 = vector.multi_reduction <add>, %877, %cst_392 [1] : vector<16x32xf32> to vector<16xf32>
    %879 = vector.shape_cast %878 : vector<16xf32> to vector<16x1xf32>
    %cst_393 = arith.constant 0.0322580636 : f32
    %880 = vector.broadcast %cst_393 : f32 to vector<16x1xf32>
    %881 = arith.mulf %879, %880 : vector<16x1xf32>
    %882 = math.sqrt %881 : vector<16x1xf32>
    %cst_394 = arith.constant 1.000000e-03 : f32
    %883 = vector.broadcast %cst_394 : f32 to vector<16x1xf32>
    %884 = arith.addf %882, %883 : vector<16x1xf32>
    %885 = tpu.reciprocal %884 : vector<16x1xf32> -> vector<16x1xf32>
    %886 = vector.broadcast %874 : vector<16x1xf32> to vector<16x32xf32>
    %887 = arith.subf %870, %886 : vector<16x32xf32>
    %888 = vector.broadcast %885 : vector<16x1xf32> to vector<16x32xf32>
    %889 = arith.mulf %887, %888 : vector<16x32xf32>
    %890 = vector.broadcast %854 : vector<1x32xf32> to vector<16x32xf32>
    %891 = arith.mulf %889, %890 : vector<16x32xf32>
    %892 = vector.broadcast %855 : vector<1x32xf32> to vector<16x32xf32>
    %893 = arith.addf %891, %892 : vector<16x32xf32>
    %c0_395 = arith.constant 0 : index
    %c0_396 = arith.constant 0 : index
    %894 = vector.load %arg9[%c0_395, %c0_396] : memref<32x128xf32, #tpu.memory_space<vmem>>, vector<32x128xf32>
    %cst_397 = arith.constant dense<0.000000e+00> : vector<16x128xf32>
    %895 = tpu.matmul %893, %894, %cst_397 {dimension_numbers = #tpu.dot_dimension_numbers<[1], [0], [0], [1], [0, 0, 1, 1], [], []>} : vector<16x32xf32>, vector<32x128xf32>, vector<16x128xf32> -> vector<16x128xf32>
    %c0_398 = arith.constant 0 : index
    %c0_399 = arith.constant 0 : index
    %896 = vector.load %arg10[%c0_398, %c0_399] : memref<16x128xf32, #tpu.memory_space<vmem>>, vector<16x128xf32>
    tpu.vector_store %arg10[%c0_398, %c0_399], %895 {strides = array<i32>} : memref<16x128xf32, #tpu.memory_space<vmem>>, vector<16x128xf32>,
    return
  }
}

</mosaic_0001>

<bundles_post_ra>
// kernel: transformer_forward.1
= control target key start
LH: loop header
LB: loop body
LE: loop exit
PB: predicated region body
PF: predicated region fallthrough
CT: control target
= control target key end

     0   :  { %vm55_vm0 = vcmask 261120   ;;  %s6659_s0 = inlined_call_operand.vmem [shape: f32[16,32], index: 0, kind: input, shape index: {}]   ;;  %s6660_s1 = inlined_call_operand.vmem [shape: f32[16,32], index: 1, kind: input, shape index: {}]   ;;  %s6661_s2 = inlined_call_operand.vmem [shape: f32[36,32,16], index: 2, kind: input, shape index: {}]   ;;  %s6662_s3 = inlined_call_operand.vmem [shape: f32[12,16,32], index: 3, kind: input, shape index: {}]   ;;  %s6663_s4 = inlined_call_operand.vmem [shape: f32[6,3,32], index: 4, kind: input, shape index: {}]   ;;  %s6664_s5 = inlined_call_operand.vmem [shape: f32[4,32,64], index: 5, kind: input, shape index: {}]   ;;  %s6665_s6 = inlined_call_operand.vmem [shape: f32[4,1,64], index: 6, kind: input, shape index: {}]   ;;  %s6666_s7 = inlined_call_operand.vmem [shape: f32[4,64,32], index: 7, kind: input, shape index: {}]   ;;  %s6667_s8 = inlined_call_operand.vmem [shape: f32[4,3,32], index: 8, kind: input, shape index: {}]   ;;  %s6668_s9 = inlined_call_operand.vmem [shape: f32[32,128], index: 9, kind: input, shape index: {}]   ;;  %s6669_s10 = inlined_call_operand.hbm [shape: f32[16,128], index: 10, kind: output, shape index: {}]  }
   0x1   :  { %v4688_v0 = vld [vmem:[%s6661_s2 + $0x58] sm:$0xff]  ;;  %v4687_v1 = vld [vmem:[%s6661_s2 + $0x50] sm:$0xff]  ;;  %v4686_v4 = vld [vmem:[%s6661_s2 + $0x48] sm:$0xff] }
   0x2   :  { %v42_v2 = vld [vmem:[%s6661_s2 + $0x18] sm:$0xff]  ;;  %97 = vmatpush.msra.mxu1 %v4688_v0  ;;  %v41_v3 = vld [vmem:[%s6661_s2 + $0x10] sm:$0xff]  ;;  %v40_v5 = vld [vmem:[%s6661_s2 + $0x8] sm:$0xff] }
   0x3   :  { %74 = vmatpush.msra.mxu0 %v42_v2  ;;  %v4685_v6 = vld [vmem:[%s6661_s2 + $0x40] sm:$0xff]  ;;  %v4692_v7 = vld [vmem:[%s6661_s2 + $0x98] sm:$0xff]  ;;  %v4691_v8 = vld [vmem:[%s6661_s2 + $0x90] sm:$0xff] }
   0x4   :  { %98 = vmatpush.msra.mxu1 %v4687_v1  ;;  %v5381_v9 = vld [vmem:[%s6659_s0] sm:$0xff]  ;;  %120 = vmatpush.msra.mxu2 %v4692_v7  ;;  %v4690_v11 = vld [vmem:[%s6661_s2 + $0x88] sm:$0xff] }
   0x5   :  { %75 = vmatpush.msra.mxu0 %v41_v3  ;;  %v39_v10 = vld [vmem:[%s6661_s2] sm:$0xff] }
   0x6   :  { %99 = vmatpush.msra.mxu1 %v4686_v4  ;;  %121 = vmatpush.msra.mxu2 %v4691_v8 }
   0x7   :  { %76 = vmatpush.msra.mxu0 %v40_v5 }
   0x8   :  { %15 = vsyncpa [#allocation3], 0  ;;  %100 = vmatpush.msra.mxu1 %v4685_v6  ;;  %v4689_v12 = vld [vmem:[%s6661_s2 + $0x80] sm:$0xff]  ;;  %122 = vmatpush.msra.mxu2 %v4690_v11  ;;  %v5401_v13 = vld [vmem:[%s6659_s0 + $0x8] sm:$0xff]  ;;  %vm131_vm1 = vcmask 130048   ;;  %vm158_vm2 = vcmask 64512  }
   0x9   :  { %77 = vmatpush.msra.mxu0 %v39_v10  ;;  %4695 = vmatmul.msk.f32.vlgmr.msra.gmra.mxu1 %vm55_vm0, %v5381_v9  ;;  %v4712_v25 = vld [vmem:[%s6661_s2 + $0x78] sm:$0xff]  ;;  %v4711_v26 = vld [vmem:[%s6661_s2 + $0x70] sm:$0xff]  ;;  %v4710_v27 = vld [vmem:[%s6661_s2 + $0x68] sm:$0xff]  ;;  %s4673_s26 = sshll.u32 %s6669_s10, 4  ;;  %s5294_s27 = smov 128   ;;  %s4674_s26 = int_to_ptr.hbm [resolvable:$true] %s4673_s26 }
   0xa   :  { %4693 = vmatmul.msk.f32.vlgmr.msra.gmra.mxu0 %vm55_vm0, %v5381_v9  ;;  %123 = vmatpush.msra.mxu2 %v4689_v12  ;;  %v4709_v29 = vld [vmem:[%s6661_s2 + $0x60] sm:$0xff]  ;;  %v54_v30 = vld [vmem:[%s6662_s3 + $0x8] sm:$0xff]  ;;  %v4708_v44 = vld [vmem:[%s6661_s2 + $0x38] sm:$0xff]  ;;  %s5295_s28 = smov 8  }
   0xb   :  { %4697 = vmatmul.msk.f32.vlgmr.msra.gmra.mxu2 %vm55_vm0, %v5381_v9  ;;  %v53_v43 = vld [vmem:[%s6662_s3] sm:$0xff]  ;;  %v4707_v45 = vld [vmem:[%s6661_s2 + $0x30] sm:$0xff]  ;;  %v4706_v46 = vld [vmem:[%s6661_s2 + $0x28] sm:$0xff] }
   0xc   :  { %332 = vmatpush.msrb.mxu2 %v4712_v25  ;;  %v4705_v48 = vld [vmem:[%s6661_s2 + $0x20] sm:$0xff]  ;;  %v4716_v53 = vld [vmem:[%s6661_s2 + $0xb8] sm:$0xff]  ;;  %v4715_v54 = vld [vmem:[%s6661_s2 + $0xb0] sm:$0xff] }
   0xd   :  { %v4714_v55 = vld [vmem:[%s6661_s2 + $0xa8] sm:$0xff]  ;;  %v4713_v56 = vld [vmem:[%s6661_s2 + $0xa0] sm:$0xff] }
   0xe   :  { %333 = vmatpush.msrb.mxu2 %v4711_v26 }
  0x10   :  { %334 = vmatpush.msrb.mxu2 %v4710_v27 }
  0x11   :  { %4696 = vmatmul.msk.f32.gmra.mxu1 %vm55_vm0, %v5401_v13 }
  0x12   :  { %4694 = vmatmul.msk.f32.gmra.mxu0 %vm55_vm0, %v5401_v13  ;;  %335 = vmatpush.msrb.mxu2 %v4709_v29 }
  0x13   :  { %4698 = vmatmul.msk.f32.gmra.mxu2 %vm55_vm0, %v5401_v13 }
  0x14   :  { %479 = vmatpush.msra.mxu2 %v54_v30 }
  0x16   :  { %480 = vmatpush.msra.mxu2 %v53_v43 }
  0x1b   :  { %4721 = vmatmul.msk.f32.vlgmr.msrb.gmra.mxu2 %vm55_vm0, %v5381_v9 }
  0x1c   :  { %598 = vmatpush.msrb.mxu2 %v54_v30 }
  0x1e   :  { %599 = vmatpush.msrb.mxu2 %v53_v43 }
  0x23   :  { %4722 = vmatmul.msk.f32.gmra.mxu2 %vm55_vm0, %v5401_v13 }
  0x86   :  { %v102_v14 = vpop.f32.mrf.mxu1 }
  0x87   :  { %4699 = vmatpush.xpose.msk.msrb.mxu1 %vm131_vm1, %v102_v14  ;;  %v79_v15 = vpop.f32.mrf.mxu0 }
  0x8a   :  { %4700 = vmatmul.msk.f32.vlgmr.msrb.gmra.mxu1 %vm131_vm1, %v79_v15 }
  0x8b   :  { %309 = vmatpush.msra.mxu1 %v4708_v44 }
  0x8d   :  { %310 = vmatpush.msra.mxu1 %v4707_v45 }
  0x8e   :  { %v105_v16 = vpop.f32.mrf.mxu1  ;;  %v125_v17 = vpop.f32.mrf.mxu2 }
  0x8f   :  { %201 = vmatpush.msra.mxu3 %v125_v17  ;;  %v82_v42 = vpop.f32.mrf.mxu0  ;;  %311 = vmatpush.msra.mxu1 %v4706_v46 }
  0x91   :  { %4702 = vmatpush.xpose.msk.msrb.mxu3 %vm131_vm1, %v105_v16  ;;  %312 = vmatpush.msra.mxu1 %v4705_v48 }
  0x92   :  { %4719 = vmatmul.msk.f32.vlgmr.msra.gmra.mxu1 %vm55_vm0, %v5381_v9 }
  0x96   :  { %v128_v47 = vpop.f32.mrf.mxu2 }
  0x97   :  { %274 = vmatpush.msrb.mxu0 %v128_v47 }
  0x9a   :  { %4720 = vmatmul.msk.f32.gmra.mxu1 %vm55_vm0, %v5401_v13 }
  0x9e   :  { %v337_v49 = vpop.f32.mrf.mxu2 }
  0x9f   :  { %4725 = vmatpush.xpose.msk.msra.mxu0 %vm131_vm1, %v337_v49 }
  0xa6   :  { %v340_v57 = vpop.f32.mrf.mxu2 }
 0x107   :  { %v155_v18 = vpop.f32.mrf.mxu1 }
 0x108   :  { %v159_v19 = vsel %vm158_vm2, %v155_v18, -inf }
 0x109   :  { %160 = vmax.xlane.f32.xlu0 %v159_v19 }
 0x10f   :  { %v314_v58 = vpop.f32.mrf.mxu1 }
 0x117   :  { %v317_v59 = vpop.f32.mrf.mxu1 }
 0x17c   :  { %v161_v20 = vpop.xlane.xlu0 %160 }
 0x17d   :  { %v162_v21 = vsub.f32 %v155_v18, %v161_v20 }
 0x17f   :  { %v163_v22 = vmul.f32 1.442695, %v162_v21 }
 0x181   :  { %5088 = vpow2.f32 %v163_v22 }
 0x187   :  { %v5089_v23 = vpop.eup %5088 }
 0x188   :  { %v165_v24 = vsel %vm158_vm2, %v5089_v23, 0.0 }
 0x189   :  { %166 = vadd.xlane.f32.xlu0 %v165_v24 }
 0x1fc   :  { %v167_v28 = vpop.xlane.xlu0 %166 }
 0x1fd   :  { %5090 = vrcp.f32 %v167_v28  ;;  %v179_v34 = vand.u32 2147483648, %v167_v28  ;;  %v177_v36 = vand.u32 2147483647, %v167_v28  ;;  %vm173_vm4 = vweird.f32 %v167_v28 }
 0x1ff   :  { %v180_v38 = vor.u32 1.1754944e-38, %v179_v34  ;;  %vm178_vm6 = vcmp.eq.f32.partialorder %v177_v36, 8.507059e+37 }
 0x203   :  { %v5091_v31 = vpop.eup %5090 }
 0x204   :  { %v169_v32 = vmul.f32 %v5091_v31, %v167_v28  ;;  %vm174_vm3 = vweird.f32 %v5091_v31 }
 0x205   :  { %vm175_vm5 = vmor %vm173_vm4, %vm174_vm3 }
 0x206   :  { %v170_v33 = vsub.f32 1.0, %v169_v32 }
 0x208   :  { %v171_v35 = vmul.f32 %v5091_v31, %v170_v33  ;;  %v4718_v33 = vld [vmem:[%s6662_s3 + $0x18] sm:$0xff] }
 0x209   :  { %456 = vmatpush.msrb.mxu1 %v4718_v33 }
 0x20a   :  { %v172_v37 = vadd.f32 %v5091_v31, %v171_v35 }
 0x20c   :  { %v176_v39 = vsel %vm175_vm5, %v5091_v31, %v172_v37 }
 0x20d   :  { %v181_v40 = vsel %vm178_vm6, %v180_v38, %v176_v39 }
 0x20e   :  { %v182_v41 = vmul.f32 %v5089_v23, %v181_v40 }
 0x210   :  { %4701 = vmatmul.msk.f32.vlgmr.msra.gmra.mxu3 %vm158_vm2, %v182_v41 }
 0x211   :  { %355 = vmatpush.msra.mxu3 %v4716_v53 }
 0x213   :  { %356 = vmatpush.msra.mxu3 %v4715_v54 }
 0x215   :  { %357 = vmatpush.msra.mxu3 %v4714_v55 }
 0x217   :  { %358 = vmatpush.msra.mxu3 %v4713_v56 }
 0x218   :  { %4703 = vmatmul.msk.f32.vlgmr.msrb.gmra.mxu3 %vm131_vm1, %v82_v42 }
 0x219   :  { %4730 = vmatpush.xpose.msk.msrb.mxu3 %vm131_vm1, %v340_v57  ;;  %v4717_v57 = vld [vmem:[%s6662_s3 + $0x10] sm:$0xff] }
 0x21a   :  { %457 = vmatpush.msrb.mxu1 %v4717_v57 }
 0x21c   :  { %575 = vmatpush.msra.mxu1 %v4718_v33 }
 0x21e   :  { %576 = vmatpush.msra.mxu1 %v4717_v57  ;;  %v742_v57 = vld [vmem:[%s6666_s7 + $0x20] sm:$0xff] }
 0x220   :  { %4723 = vmatmul.msk.f32.vlgmr.msra.gmra.mxu3 %vm55_vm0, %v5381_v9 }
 0x228   :  { %4724 = vmatmul.msk.f32.gmra.mxu3 %vm55_vm0, %v5401_v13 }
 0x230   :  { %4731 = vmatmul.msk.f32.vlgmr.msrb.gmra.mxu3 %vm131_vm1, %v317_v59 }
 0x293   :  { %v203_v50 = vpop.f32.mrf.mxu3 }
 0x294   :  { %4729 = vmatmul.msk.f32.vlgmr.msra.gmra.mxu2 %vm131_vm1, %v203_v50 }
 0x29b   :  { %v229_v51 = vpop.f32.mrf.mxu3 }
 0x29c   :  { %v232_v52 = vsel %vm158_vm2, %v229_v51, -inf }
 0x29d   :  { %233 = vmax.xlane.f32.xlu1 %v232_v52 }
 0x2a3   :  { %v360_v1 = vpop.f32.mrf.mxu3 }
 0x2ab   :  { %v363_v2 = vpop.f32.mrf.mxu3 }
 0x2b3   :  { %v508_v3 = vpop.f32.mrf.mxu3 }
 0x2b4   :  { %v511_v4 = vsel %vm158_vm2, %v508_v3, -inf }
 0x2b5   :  { %512 = vmax.xlane.f32.xlu0 %v511_v4 }
 0x310   :  { %v234_v60 = vpop.xlane.xlu1 %233 }
 0x311   :  { %v235_v61 = vsub.f32 %v229_v51, %v234_v60  ;;  %v5496_v60 = vld [vmem:[%s6663_s4] sm:$0x7] }
 0x313   :  { %v236_v62 = vmul.f32 1.442695, %v235_v61  ;;  %v604_v61 = vperm.slane %v5496_v60, 0 }
 0x315   :  { %5092 = vpow2.f32 %v236_v62 }
 0x317   :  { %v482_v62 = vpop.f32.mrf.mxu2 }
 0x31b   :  { %v5093_v63 = vpop.eup %5092 }
 0x31c   :  { %v238_v0 = vsel %vm158_vm2, %v5093_v63, 0.0 }
 0x31d   :  { %239 = vadd.xlane.f32.xlu1 %v238_v0 }
 0x328   :  { %v513_v19 = vpop.xlane.xlu0 %512 }
 0x329   :  { %v514_v20 = vsub.f32 %v508_v3, %v513_v19 }
 0x32b   :  { %v515_v21 = vmul.f32 1.442695, %v514_v20 }
 0x390   :  { %v240_v5 = vpop.xlane.xlu1 %239 }
 0x391   :  { %5094 = vrcp.f32 %v240_v5  ;;  %v252_v10 = vand.u32 2147483648, %v240_v5  ;;  %v250_v12 = vand.u32 2147483647, %v240_v5  ;;  %vm246_vm8 = vweird.f32 %v240_v5 }
 0x392   :  { %5096 = vpow2.f32 %v515_v21 }
 0x393   :  { %v253_v15 = vor.u32 1.1754944e-38, %v252_v10  ;;  %vm251_vm10 = vcmp.eq.f32.partialorder %v250_v12, 8.507059e+37 }
 0x397   :  { %v5095_v6 = vpop.eup %5094 }
 0x398   :  { %v242_v7 = vmul.f32 %v5095_v6, %v240_v5  ;;  %vm247_vm7 = vweird.f32 %v5095_v6  ;;  %v5097_v22 = vpop.eup %5096 }
 0x399   :  { %vm248_vm9 = vmor %vm246_vm8, %vm247_vm7  ;;  %v517_v23 = vsel %vm158_vm2, %v5097_v22, 0.0 }
 0x39a   :  { %v243_v8 = vsub.f32 1.0, %v242_v7  ;;  %518 = vadd.xlane.f32.xlu1 %v517_v23 }
 0x39c   :  { %v244_v11 = vmul.f32 %v5095_v6, %v243_v8 }
 0x39e   :  { %v245_v14 = vadd.f32 %v5095_v6, %v244_v11  ;;  %v5292_v11 = vmov 32.0  }
 0x3a0   :  { %v249_v16 = vsel %vm248_vm9, %v5095_v6, %v245_v14 }
 0x3a1   :  { %v254_v17 = vsel %vm251_vm10, %v253_v15, %v249_v16 }
 0x3a2   :  { %v255_v18 = vmul.f32 %v5093_v63, %v254_v17 }
 0x3a4   :  { %4704 = vmatmul.msk.f32.vlgmr.msrb.gmra.mxu0 %vm158_vm2, %v255_v18 }
 0x3a5   :  { %434 = vmatpush.msrb.mxu0 %v360_v1 }
 0x3ac   :  { %4726 = vmatmul.msk.f32.vlgmr.msra.gmra.mxu0 %vm131_vm1, %v314_v58 }
 0x3ad   :  { %553 = vmatpush.msra.mxu0 %v363_v2 }
 0x40d   :  { %v519_v32 = vpop.xlane.xlu1 %518 }
 0x40e   :  { %vm525_vm12 = vweird.f32 %v519_v32  ;;  %v531_v46 = vand.u32 2147483648, %v519_v32  ;;  %v529_v49 = vand.u32 2147483647, %v519_v32 }
 0x410   :  { %v532_v53 = vor.u32 1.1754944e-38, %v531_v46  ;;  %vm530_vm5 = vcmp.eq.f32.partialorder %v529_v49, 8.507059e+37 }
 0x421   :  { %v276_v24 = vpop.f32.mrf.mxu0 }
 0x422   :  { %4734 = vmatmul.msk.f32.vlgmr.msrb.gmra.mxu2 %vm131_vm1, %v276_v24 }
 0x429   :  { %v389_v25 = vpop.f32.mrf.mxu0 }
 0x42a   :  { %v392_v26 = vsel %vm158_vm2, %v389_v25, -inf }
 0x42b   :  { %393 = vmax.xlane.f32.xlu2 %v392_v26 }
 0x49e   :  { %v394_v27 = vpop.xlane.xlu2 %393 }
 0x49f   :  { %v395_v28 = vsub.f32 %v389_v25, %v394_v27  ;;  %v702_v27 = vld [vmem:[%s6664_s5 + $0x18] sm:$0xff] }
 0x4a0   :  { %725 = vmatpush.msra.mxu3 %v702_v27 }
 0x4a1   :  { %v396_v29 = vmul.f32 1.442695, %v395_v28  ;;  %v701_v28 = vld [vmem:[%s6664_s5 + $0x10] sm:$0xff] }
 0x4a2   :  { %726 = vmatpush.msra.mxu3 %v701_v28  ;;  %v740_v28 = vld [vmem:[%s6666_s7 + $0x10] sm:$0xff] }
 0x4a3   :  { %5098 = vpow2.f32 %v396_v29 }
 0x4a4   :  { %5100 = vrcp.f32 %v519_v32 }
 0x4a5   :  { %v601_v4 = vpop.f32.mrf.mxu2 }
 0x4a9   :  { %v5099_v30 = vpop.eup %5098 }
 0x4aa   :  { %v398_v31 = vsel %vm158_vm2, %v5099_v30, 0.0  ;;  %v5101_v35 = vpop.eup %5100 }
 0x4ab   :  { %399 = vadd.xlane.f32.xlu2 %v398_v31  ;;  %v521_v36 = vmul.f32 %v5101_v35, %v519_v32  ;;  %vm526_vm13 = vweird.f32 %v5101_v35  ;;  %v699_v32 = vld [vmem:[%s6664_s5] sm:$0xff] }
 0x4ac   :  { %vm527_vm4 = vmor %vm525_vm12, %vm526_vm13 }
 0x4ad   :  { %v522_v38 = vsub.f32 1.0, %v521_v36 }
 0x4af   :  { %v523_v42 = vmul.f32 %v5101_v35, %v522_v38 }
 0x4b1   :  { %v524_v48 = vadd.f32 %v5101_v35, %v523_v42 }
 0x4b3   :  { %v528_v54 = vsel %vm527_vm4, %v5101_v35, %v524_v48 }
 0x4b4   :  { %v533_v55 = vsel %vm530_vm5, %v532_v53, %v528_v54  ;;  %v743_v54 = vld [vmem:[%s6666_s7 + $0x28] sm:$0xff] }
 0x4b5   :  { %v534_v56 = vmul.f32 %v5097_v22, %v533_v55 }
 0x51e   :  { %v400_v34 = vpop.xlane.xlu2 %399 }
 0x51f   :  { %5102 = vrcp.f32 %v400_v34  ;;  %v412_v41 = vand.u32 2147483648, %v400_v34  ;;  %v410_v44 = vand.u32 2147483647, %v400_v34  ;;  %vm406_vm14 = vweird.f32 %v400_v34 }
 0x520   :  { %5104 = vrcp.f32 %v5292_v11 }
 0x521   :  { %v413_v47 = vor.u32 1.1754944e-38, %v412_v41  ;;  %vm411_vm3 = vcmp.eq.f32.partialorder %v410_v44, 8.507059e+37 }
 0x525   :  { %v5103_v37 = vpop.eup %5102 }
 0x526   :  { %v402_v39 = vmul.f32 %v5103_v37, %v400_v34  ;;  %vm407_vm11 = vweird.f32 %v5103_v37  ;;  %v5105_v12 = vpop.eup %5104 }
 0x527   :  { %vm408_vm15 = vmor %vm406_vm14, %vm407_vm11  ;;  %v616_v14 = vmul.f32 32.0, %v5105_v12  ;;  %vm620_vm6 = vweird.f32 %v5105_v12 }
 0x528   :  { %v403_v40 = vsub.f32 1.0, %v402_v39 }
 0x529   :  { %v617_v15 = vsub.f32 1.0, %v616_v14  ;;  %v695_v14 = vperm.slane %v5496_v60, 2 }
 0x52a   :  { %v404_v43 = vmul.f32 %v5103_v37, %v403_v40 }
 0x52b   :  { %v618_v16 = vmul.f32 %v5105_v12, %v617_v15 }
 0x52c   :  { %v405_v45 = vadd.f32 %v5103_v37, %v404_v43 }
 0x52d   :  { %v619_v17 = vadd.f32 %v5105_v12, %v618_v16 }
 0x52e   :  { %v409_v50 = vsel %vm408_vm15, %v5103_v37, %v405_v45 }
 0x52f   :  { %v414_v51 = vsel %vm411_vm3, %v413_v47, %v409_v50 }
 0x530   :  { %v415_v52 = vmul.f32 %v5099_v30, %v414_v51  ;;  %v700_v30 = vld [vmem:[%s6664_s5 + $0x8] sm:$0xff]  ;;  %v745_v51 = vld [vmem:[%s6666_s7 + $0x38] sm:$0xff] }
 0x531   :  { %727 = vmatpush.msra.mxu3 %v700_v30  ;;  %v738_v30 = vld [vmem:[%s6666_s7] sm:$0xff] }
 0x532   :  { %4727 = vmatmul.msk.f32.vlgmr.msrb.gmra.mxu0 %vm158_vm2, %v415_v52  ;;  %v744_v52 = vld [vmem:[%s6666_s7 + $0x30] sm:$0xff] }
 0x533   :  { %728 = vmatpush.msra.mxu3 %v699_v32  ;;  %762 = vmatpush.msrb.mxu0 %v745_v51 }
 0x535   :  { %763 = vmatpush.msrb.mxu0 %v744_v52 }
 0x537   :  { %764 = vmatpush.msrb.mxu0 %v743_v54 }
 0x539   :  { %765 = vmatpush.msrb.mxu0 %v742_v57 }
 0x53a   :  { %4732 = vmatmul.msk.f32.vlgmr.msra.gmra.mxu0 %vm158_vm2, %v534_v56 }
 0x5af   :  { %v436_v58 = vpop.f32.mrf.mxu0 }
 0x5b0   :  { %4728 = vmatmul.msk.f32.vlgmr.msrb.gmra.mxu1 %vm131_vm1, %v436_v58 }
 0x5b7   :  { %v555_v59 = vpop.f32.mrf.mxu0 }
 0x5b8   :  { %4733 = vmatmul.msk.f32.vlgmr.msra.gmra.mxu1 %vm131_vm1, %v555_v59 }
 0x62d   :  { %v459_v63 = vpop.f32.mrf.mxu1 }
 0x62e   :  { %v483_v0 = vadd.f32 %v482_v62, %v459_v63 }
 0x630   :  { %v605_v1 = vadd.f32 %v604_v61, %v483_v0 }
 0x632   :  { %v607_v2 = vadd.f32 %v605_v1, %v5381_v9  ;;  %v5503_v9 = vsel %vm620_vm6, %v5105_v12, %v619_v17  ;;  %vm747_vm6 = vcmask 523264  }
 0x634   :  { %v609_v3 = vsel %vm55_vm0, %v607_v2, 0.0 }
 0x635   :  { %610 = vadd.xlane.f32.xlu2 %v609_v3  ;;  %v578_v5 = vpop.f32.mrf.mxu1 }
 0x636   :  { %v602_v6 = vadd.f32 %v601_v4, %v578_v5 }
 0x638   :  { %v606_v7 = vadd.f32 %v604_v61, %v602_v6  ;;  %v741_v61 = vld [vmem:[%s6666_s7 + $0x18] sm:$0xff] }
 0x639   :  { %766 = vmatpush.msrb.mxu0 %v741_v61 }
 0x63a   :  { %v608_v8 = vadd.f32 %v606_v7, %v5401_v13 }
 0x63b   :  { %767 = vmatpush.msrb.mxu0 %v740_v28  ;;  %v4773_v28 = vld [vmem:[%s6661_s2 + $0x138] sm:$0xff] }
 0x63c   :  { %v612_v10 = vsel %vm55_vm0, %v608_v8, 0.0 }
 0x63d   :  { %613 = vadd.xlane.f32.xlu1 %v612_v10 }
 0x6a8   :  { %v611_v18 = vpop.xlane.xlu2 %610 }
 0x6a9   :  { %v622_v19 = vmul.f32 %v5503_v9, %v611_v18 }
 0x6ab   :  { %v5506_v20 = vsub.f32 %v607_v2, %v622_v19 }
 0x6ad   :  { %v626_v13 = vmul.f32 %v5506_v20, %v5506_v20 }
 0x6af   :  { %v628_v21 = vsel %vm55_vm0, %v626_v13, 0.0 }
 0x6b0   :  { %629 = vadd.xlane.f32.xlu0 %v628_v21  ;;  %v614_v22 = vpop.xlane.xlu1 %613 }
 0x6b1   :  { %v623_v23 = vmul.f32 %v5503_v9, %v614_v22 }
 0x6b3   :  { %v5512_v24 = vsub.f32 %v608_v8, %v623_v23  ;;  %v692_v8 = vperm.slane %v5496_v60, 1 }
 0x6b5   :  { %v627_v25 = vmul.f32 %v5512_v24, %v5512_v24 }
 0x6b7   :  { %v631_v26 = vsel %vm55_vm0, %v627_v25, 0.0 }
 0x6b8   :  { %632 = vadd.xlane.f32.xlu2 %v631_v26 }
 0x723   :  { %v630_v29 = vpop.xlane.xlu0 %629 }
 0x724   :  { %v634_v31 = vmul.f32 0.032258064, %v630_v29  ;;  %v739_v29 = vld [vmem:[%s6666_s7 + $0x8] sm:$0xff] }
 0x725   :  { %768 = vmatpush.msrb.mxu0 %v739_v29  ;;  %v4772_v29 = vld [vmem:[%s6661_s2 + $0x130] sm:$0xff] }
 0x726   :  { %5106 = vrsqrt.f32 %v634_v31  ;;  %vm643_vm7 = vcmp.eq.f32.partialorder %v634_v31, inf  ;;  %v646_v45 = vand.u32 2147483648, %v634_v31  ;;  %vm645_vm8 = vcmp.eq.f32.partialorder %v634_v31, 0.0 }
 0x727   :  { %769 = vmatpush.msrb.mxu0 %v738_v30 }
 0x72b   :  { %v633_v33 = vpop.xlane.xlu2 %632 }
 0x72c   :  { %v5107_v34 = vpop.eup %5106  ;;  %v635_v35 = vmul.f32 0.032258064, %v633_v33 }
 0x72d   :  { %v637_v36 = vmul.f32 %v5107_v34, %v634_v31 }
 0x72e   :  { %5108 = vrsqrt.f32 %v635_v35  ;;  %vm655_vm9 = vcmp.eq.f32.partialorder %v635_v35, inf  ;;  %v658_v56 = vand.u32 2147483648, %v635_v35  ;;  %vm657_vm10 = vcmp.eq.f32.partialorder %v635_v35, 0.0 }
 0x72f   :  { %v638_v37 = vmul.f32 %v5107_v34, %v637_v36 }
 0x731   :  { %v639_v38 = vmul.f32 0.5, %v638_v37  ;;  %v5567_v37 = vld [vmem:[%s6667_s8] sm:$0x7] }
 0x733   :  { %v640_v39 = vsub.f32 1.5, %v639_v38  ;;  %v746_v38 = vperm.slane %v5567_v37, 0 }
 0x734   :  { %v5109_v40 = vpop.eup %5108 }
 0x735   :  { %v641_v41 = vmul.f32 %v5107_v34, %v640_v39  ;;  %v649_v42 = vmul.f32 %v5109_v40, %v635_v35 }
 0x737   :  { %v642_v43 = vmul.f32 %v641_v41, %v634_v31  ;;  %v650_v44 = vmul.f32 %v5109_v40, %v649_v42 }
 0x739   :  { %v644_v46 = vsel %vm643_vm7, %v634_v31, %v642_v43  ;;  %v651_v47 = vmul.f32 0.5, %v650_v44 }
 0x73a   :  { %v647_v48 = vsel %vm645_vm8, %v646_v45, %v644_v46 }
 0x73b   :  { %v660_v49 = vadd.f32 0.001, %v647_v48  ;;  %v652_v50 = vsub.f32 1.5, %v651_v47 }
 0x73d   :  { %5110 = vrcp.f32 %v660_v49  ;;  %v653_v53 = vmul.f32 %v5109_v40, %v652_v50  ;;  %v673_v2 = vand.u32 2147483648, %v660_v49  ;;  %v671_v4 = vand.u32 2147483647, %v660_v49 }
 0x73e   :  { %vm667_vm12 = vweird.f32 %v660_v49 }
 0x73f   :  { %v654_v55 = vmul.f32 %v653_v53, %v635_v35  ;;  %v674_v7 = vor.u32 1.1754944e-38, %v673_v2  ;;  %vm672_vm14 = vcmp.eq.f32.partialorder %v671_v4, 8.507059e+37  ;;  %v4746_v4 = vld [vmem:[%s6661_s2 + $0x110] sm:$0xff] }
 0x741   :  { %v656_v58 = vsel %vm655_vm9, %v635_v35, %v654_v55 }
 0x742   :  { %v659_v59 = vsel %vm657_vm10, %v658_v56, %v656_v58 }
 0x743   :  { %v5111_v62 = vpop.eup %5110  ;;  %v661_v63 = vadd.f32 0.001, %v659_v59 }
 0x744   :  { %v663_v0 = vmul.f32 %v5111_v62, %v660_v49  ;;  %vm668_vm11 = vweird.f32 %v5111_v62 }
 0x745   :  { %5112 = vrcp.f32 %v661_v63  ;;  %vm669_vm13 = vmor %vm667_vm12, %vm668_vm11  ;;  %v687_v17 = vand.u32 2147483648, %v661_v63  ;;  %v685_v13 = vand.u32 2147483647, %v661_v63  ;;  %vm681_vm3 = vweird.f32 %v661_v63 }
 0x746   :  { %v664_v1 = vsub.f32 1.0, %v663_v0  ;;  %v4747_v0 = vld [vmem:[%s6661_s2 + $0x118] sm:$0xff] }
 0x747   :  { %v688_v23 = vor.u32 1.1754944e-38, %v687_v17  ;;  %vm686_vm5 = vcmp.eq.f32.partialorder %v685_v13, 8.507059e+37  ;;  %922 = vmatpush.msra.mxu2 %v4747_v0 }
 0x748   :  { %v665_v3 = vmul.f32 %v5111_v62, %v664_v1  ;;  %v4751_v1 = vld [vmem:[%s6661_s2 + $0x158] sm:$0xff] }
 0x749   :  { %945 = vmatpush.msrb.mxu3 %v4751_v1  ;;  %923 = vmatpush.msra.mxu2 %v4746_v4  ;;  %v4777_v4 = vld [vmem:[%s6661_s2 + $0x178] sm:$0xff] }
 0x74a   :  { %v666_v5 = vadd.f32 %v5111_v62, %v665_v3  ;;  %v4742_v3 = vld [vmem:[%s6661_s2 + $0xd0] sm:$0xff] }
 0x74b   :  { %v5113_v6 = vpop.eup %5112 }
 0x74c   :  { %v670_v10 = vsel %vm669_vm13, %v5111_v62, %v666_v5  ;;  %v677_v11 = vmul.f32 %v5113_v6, %v661_v63  ;;  %vm682_vm15 = vweird.f32 %v5113_v6  ;;  %v4743_v63 = vld [vmem:[%s6661_s2 + $0xd8] sm:$0xff]  ;;  %v4750_v5 = vld [vmem:[%s6661_s2 + $0x150] sm:$0xff] }
 0x74d   :  { %v675_v12 = vsel %vm672_vm14, %v674_v7, %v670_v10  ;;  %vm683_vm4 = vmor %vm681_vm3, %vm682_vm15  ;;  %899 = vmatpush.msrb.mxu1 %v4743_v63  ;;  %v4745_v7 = vld [vmem:[%s6661_s2 + $0x108] sm:$0xff]  ;;  %946 = vmatpush.msrb.mxu3 %v4750_v5 }
 0x74e   :  { %v690_v15 = vmul.f32 %v675_v12, %v5506_v20  ;;  %v678_v16 = vsub.f32 1.0, %v677_v11  ;;  %v4749_v10 = vld [vmem:[%s6661_s2 + $0x148] sm:$0xff]  ;;  %v4740_v11 = vld [vmem:[%s6661_s2 + $0xc0] sm:$0xff]  ;;  %924 = vmatpush.msra.mxu2 %v4745_v7  ;;  %v4776_v7 = vld [vmem:[%s6661_s2 + $0x170] sm:$0xff] }
 0x74f   :  { %900 = vmatpush.msrb.mxu1 %v4742_v3  ;;  %v4744_v12 = vld [vmem:[%s6661_s2 + $0x100] sm:$0xff]  ;;  %947 = vmatpush.msrb.mxu3 %v4749_v10  ;;  %v4775_v10 = vld [vmem:[%s6661_s2 + $0x168] sm:$0xff] }
 0x750   :  { %v693_v18 = vmul.f32 %v692_v8, %v690_v15  ;;  %v679_v19 = vmul.f32 %v5113_v6, %v678_v16  ;;  %v4748_v15 = vld [vmem:[%s6661_s2 + $0x140] sm:$0xff]  ;;  %925 = vmatpush.msra.mxu2 %v4744_v12 }
 0x751   :  { %948 = vmatpush.msrb.mxu3 %v4748_v15 }
 0x752   :  { %v696_v21 = vadd.f32 %v695_v14, %v693_v18  ;;  %v680_v22 = vadd.f32 %v5113_v6, %v679_v19 }
 0x754   :  { %4735 = vmatmul.msk.f32.vlgmr.msra.gmra.mxu3 %vm55_vm0, %v696_v21  ;;  %v684_v25 = vsel %vm683_vm4, %v5113_v6, %v680_v22  ;;  %v4741_v6 = vld [vmem:[%s6661_s2 + $0xc8] sm:$0xff] }
 0x755   :  { %v689_v26 = vsel %vm686_vm5, %v688_v23, %v684_v25  ;;  %901 = vmatpush.msrb.mxu1 %v4741_v6  ;;  %1155 = vmatpush.msra.mxu3 %v4773_v28  ;;  %v4769_v28 = vld [vmem:[%s6661_s2 + $0xf8] sm:$0xff] }
 0x756   :  { %v691_v60 = vmul.f32 %v689_v26, %v5512_v24  ;;  %v5084_v24 = vld [vmem:[%s6665_s6] ss:$0 sm:$0xff] }
 0x757   :  { %902 = vmatpush.msrb.mxu1 %v4740_v11  ;;  %1156 = vmatpush.msra.mxu3 %v4772_v29  ;;  %v4774_v11 = vld [vmem:[%s6661_s2 + $0x160] sm:$0xff]  ;;  %v4768_v29 = vld [vmem:[%s6661_s2 + $0xf0] sm:$0xff] }
 0x758   :  { %v694_v27 = vmul.f32 %v692_v8, %v691_v60 }
 0x75a   :  { %v697_v20 = vadd.f32 %v695_v14, %v694_v27 }
 0x75c   :  { %4736 = vmatmul.msk.f32.gmra.mxu3 %vm55_vm0, %v697_v20 }
 0x7d7   :  { %v730_v31 = vpop.f32.mrf.mxu3 }
 0x7d8   :  { %v731_v32 = vadd.f32 %v5084_v24, %v730_v31 }
 0x7da   :  { %v736_v33 = vmax.f32 %v731_v32, 0.0 }
 0x7dc   :  { %4737 = vmatmul.msk.f32.vlgmr.msrb.gmra.mxu0 %vm747_vm6, %v736_v33  ;;  %v4770_v33 = vld [vmem:[%s6661_s2 + $0x120] sm:$0xff] }
 0x7df   :  { %v733_v34 = vpop.f32.mrf.mxu3 }
 0x7e0   :  { %v734_v35 = vadd.f32 %v5084_v24, %v733_v34  ;;  %v4771_v24 = vld [vmem:[%s6661_s2 + $0x128] sm:$0xff] }
 0x7e1   :  { %1157 = vmatpush.msra.mxu3 %v4771_v24  ;;  %v4766_v24 = vld [vmem:[%s6661_s2 + $0xe0] sm:$0xff] }
 0x7e2   :  { %v737_v36 = vmax.f32 %v734_v35, 0.0 }
 0x7e3   :  { %1158 = vmatpush.msra.mxu3 %v4770_v33 }
 0x7e4   :  { %4738 = vmatmul.msk.f32.gmra.mxu0 %vm747_vm6, %v737_v36 }
 0x859   :  { %v771_v39 = vpop.f32.mrf.mxu0 }
 0x85a   :  { %v772_v40 = vadd.f32 %v771_v39, %v746_v38 }
 0x85c   :  { %v777_v41 = vadd.f32 %v772_v40, %v696_v21 }
 0x85e   :  { %v779_v42 = vsel %vm55_vm0, %v777_v41, 0.0 }
 0x85f   :  { %780 = vadd.xlane.f32.xlu0 %v779_v42 }
 0x861   :  { %v774_v43 = vpop.f32.mrf.mxu0 }
 0x862   :  { %v775_v44 = vadd.f32 %v774_v43, %v746_v38 }
 0x864   :  { %v778_v45 = vadd.f32 %v775_v44, %v697_v20 }
 0x866   :  { %v782_v46 = vsel %vm55_vm0, %v778_v45, 0.0 }
 0x867   :  { %783 = vadd.xlane.f32.xlu2 %v782_v46  ;;  %v855_v46 = vperm.slane %v5567_v37, 1 }
 0x8d2   :  { %v781_v47 = vpop.xlane.xlu0 %780 }
 0x8d3   :  { %v785_v48 = vmul.f32 %v781_v47, %v5503_v9 }
 0x8d5   :  { %v5573_v49 = vsub.f32 %v777_v41, %v785_v48 }
 0x8d7   :  { %v789_v50 = vmul.f32 %v5573_v49, %v5573_v49 }
 0x8d9   :  { %v791_v51 = vsel %vm55_vm0, %v789_v50, 0.0 }
 0x8da   :  { %792 = vadd.xlane.f32.xlu1 %v791_v51  ;;  %v784_v52 = vpop.xlane.xlu2 %783  ;;  %v858_v51 = vperm.slane %v5567_v37, 2 }
 0x8db   :  { %v786_v53 = vmul.f32 %v784_v52, %v5503_v9 }
 0x8dd   :  { %v5579_v54 = vsub.f32 %v778_v45, %v786_v53 }
 0x8df   :  { %v790_v55 = vmul.f32 %v5579_v54, %v5579_v54 }
 0x8e1   :  { %v794_v56 = vsel %vm55_vm0, %v790_v55, 0.0 }
 0x8e2   :  { %795 = vadd.xlane.f32.xlu0 %v794_v56 }
 0x94d   :  { %v793_v57 = vpop.xlane.xlu1 %792 }
 0x94e   :  { %v797_v58 = vmul.f32 0.032258064, %v793_v57 }
 0x950   :  { %5114 = vrsqrt.f32 %v797_v58  ;;  %vm806_vm7 = vcmp.eq.f32.partialorder %v797_v58, inf  ;;  %v809_v22 = vand.u32 2147483648, %v797_v58  ;;  %vm808_vm8 = vcmp.eq.f32.partialorder %v797_v58, 0.0 }
 0x955   :  { %v796_v59 = vpop.xlane.xlu0 %795 }
 0x956   :  { %v5115_v61 = vpop.eup %5114  ;;  %v798_v62 = vmul.f32 0.032258064, %v796_v59 }
 0x957   :  { %v800_v2 = vmul.f32 %v5115_v61, %v797_v58 }
 0x958   :  { %5116 = vrsqrt.f32 %v798_v62  ;;  %vm818_vm9 = vcmp.eq.f32.partialorder %v798_v62, inf  ;;  %v821_v31 = vand.u32 2147483648, %v798_v62  ;;  %vm820_vm10 = vcmp.eq.f32.partialorder %v798_v62, 0.0 }
 0x959   :  { %v801_v8 = vmul.f32 %v5115_v61, %v800_v2 }
 0x95b   :  { %v802_v14 = vmul.f32 0.5, %v801_v8 }
 0x95d   :  { %v803_v16 = vsub.f32 1.5, %v802_v14 }
 0x95e   :  { %v5117_v17 = vpop.eup %5116 }
 0x95f   :  { %v804_v18 = vmul.f32 %v5115_v61, %v803_v16  ;;  %v812_v19 = vmul.f32 %v5117_v17, %v798_v62 }
 0x961   :  { %v805_v13 = vmul.f32 %v804_v18, %v797_v58  ;;  %v813_v21 = vmul.f32 %v5117_v17, %v812_v19 }
 0x963   :  { %v807_v23 = vsel %vm806_vm7, %v797_v58, %v805_v13  ;;  %v814_v25 = vmul.f32 0.5, %v813_v21 }
 0x964   :  { %v810_v26 = vsel %vm808_vm8, %v809_v22, %v807_v23 }
 0x965   :  { %v823_v60 = vadd.f32 0.001, %v810_v26  ;;  %v815_v27 = vsub.f32 1.5, %v814_v25 }
 0x967   :  { %5118 = vrcp.f32 %v823_v60  ;;  %v816_v20 = vmul.f32 %v5117_v17, %v815_v27  ;;  %v836_v40 = vand.u32 2147483648, %v823_v60  ;;  %v834_v42 = vand.u32 2147483647, %v823_v60 }
 0x968   :  { %vm830_vm12 = vweird.f32 %v823_v60 }
 0x969   :  { %v817_v30 = vmul.f32 %v816_v20, %v798_v62  ;;  %v837_v45 = vor.u32 1.1754944e-38, %v836_v40  ;;  %vm835_vm14 = vcmp.eq.f32.partialorder %v834_v42, 8.507059e+37 }
 0x96b   :  { %v819_v32 = vsel %vm818_vm9, %v798_v62, %v817_v30  ;;  %v4767_v30 = vld [vmem:[%s6661_s2 + $0xe8] sm:$0xff] }
 0x96c   :  { %v822_v34 = vsel %vm820_vm10, %v821_v31, %v819_v32  ;;  %v4753_v32 = vld [vmem:[%s6662_s3 + $0x28] sm:$0xff] }
 0x96d   :  { %v5119_v35 = vpop.eup %5118  ;;  %v824_v36 = vadd.f32 0.001, %v822_v34 }
 0x96e   :  { %v826_v38 = vmul.f32 %v5119_v35, %v823_v60  ;;  %vm831_vm11 = vweird.f32 %v5119_v35 }
 0x96f   :  { %5120 = vrcp.f32 %v824_v36  ;;  %vm832_vm13 = vmor %vm830_vm12, %vm831_vm11  ;;  %v850_v55 = vand.u32 2147483648, %v824_v36  ;;  %v848_v58 = vand.u32 2147483647, %v824_v36  ;;  %vm844_vm3 = vweird.f32 %v824_v36 }
 0x970   :  { %v827_v39 = vsub.f32 1.0, %v826_v38 }
 0x971   :  { %v851_v62 = vor.u32 1.1754944e-38, %v850_v55  ;;  %vm849_vm5 = vcmp.eq.f32.partialorder %v848_v58, 8.507059e+37 }
 0x972   :  { %v828_v41 = vmul.f32 %v5119_v35, %v827_v39 }
 0x974   :  { %v829_v43 = vadd.f32 %v5119_v35, %v828_v41 }
 0x975   :  { %v5121_v44 = vpop.eup %5120 }
 0x976   :  { %v840_v47 = vmul.f32 %v5121_v44, %v824_v36  ;;  %v833_v48 = vsel %vm832_vm13, %v5119_v35, %v829_v43  ;;  %vm845_vm15 = vweird.f32 %v5121_v44 }
 0x977   :  { %v838_v50 = vsel %vm835_vm14, %v837_v45, %v833_v48  ;;  %vm846_vm4 = vmor %vm844_vm3, %vm845_vm15 }
 0x978   :  { %v853_v52 = vmul.f32 %v838_v50, %v5573_v49  ;;  %v841_v53 = vsub.f32 1.0, %v840_v47 }
 0x97a   :  { %v856_v56 = vmul.f32 %v855_v46, %v853_v52  ;;  %v842_v57 = vmul.f32 %v5121_v44, %v841_v53 }
 0x97c   :  { %v5635_v59 = vadd.f32 %v858_v51, %v856_v56  ;;  %v843_v61 = vadd.f32 %v5121_v44, %v842_v57 }
 0x97e   :  { %4754 = vmatmul.msk.f32.vlgmr.msrb.gmra.mxu1 %vm55_vm0, %v5635_v59  ;;  %4756 = vmatmul.msk.f32.vlgmr.msra.gmra.mxu2 %vm55_vm0, %v5635_v59  ;;  %v847_v37 = vsel %vm846_vm4, %v5121_v44, %v843_v61 }
 0x97f   :  { %4758 = vmatmul.msk.f32.vlgmr.msrb.gmra.mxu3 %vm55_vm0, %v5635_v59  ;;  %v852_v49 = vsel %vm849_vm5, %v851_v62, %v847_v37  ;;  %v4752_v62 = vld [vmem:[%s6662_s3 + $0x20] sm:$0xff] }
 0x980   :  { %v854_v63 = vmul.f32 %v852_v49, %v5579_v54  ;;  %1302 = vmatpush.msrb.mxu3 %v4753_v32 }
 0x982   :  { %v857_v0 = vmul.f32 %v855_v46, %v854_v63  ;;  %1303 = vmatpush.msrb.mxu3 %v4752_v62 }
 0x984   :  { %v5644_v1 = vadd.f32 %v858_v51, %v857_v0 }
 0x986   :  { %4755 = vmatmul.msk.f32.gmra.mxu1 %vm55_vm0, %v5644_v1  ;;  %4757 = vmatmul.msk.f32.gmra.mxu2 %vm55_vm0, %v5644_v1 }
 0x987   :  { %4759 = vmatmul.msk.f32.gmra.mxu3 %vm55_vm0, %v5644_v1 }
 0x98f   :  { %4782 = vmatmul.msk.f32.vlgmr.msra.gmra.mxu3 %vm55_vm0, %v5635_v59 }
 0x990   :  { %1421 = vmatpush.msra.mxu3 %v4753_v32 }
 0x992   :  { %1422 = vmatpush.msra.mxu3 %v4752_v62  ;;  %v5770_v62 = vld [vmem:[%s6663_s4 + $0x4] sm:$0x7] }
 0x997   :  { %4783 = vmatmul.msk.f32.gmra.mxu3 %vm55_vm0, %v5644_v1 }
 0x9fb   :  { %v904_v54 = vpop.f32.mrf.mxu1 }
 0xa01   :  { %v927_v2 = vpop.f32.mrf.mxu2 }
 0xa02   :  { %v950_v3 = vpop.f32.mrf.mxu3  ;;  %4760 = vmatpush.xpose.msk.msra.mxu1 %vm131_vm1, %v927_v2 }
 0xa03   :  { %1024 = vmatpush.msrb.mxu2 %v950_v3  ;;  %v907_v8 = vpop.f32.mrf.mxu1 }
 0xa05   :  { %4761 = vmatmul.msk.f32.vlgmr.msra.gmra.mxu1 %vm131_vm1, %v904_v54  ;;  %1132 = vmatpush.msra.mxu2 %v4769_v28 }
 0xa07   :  { %1133 = vmatpush.msra.mxu2 %v4768_v29 }
 0xa09   :  { %v930_v5 = vpop.f32.mrf.mxu2  ;;  %1134 = vmatpush.msra.mxu2 %v4767_v30 }
 0xa0a   :  { %v953_v6 = vpop.f32.mrf.mxu3  ;;  %4763 = vmatpush.xpose.msk.msra.mxu0 %vm131_vm1, %v930_v5 }
 0xa0b   :  { %1097 = vmatpush.msrb.mxu1 %v953_v6  ;;  %1135 = vmatpush.msra.mxu2 %v4766_v24 }
 0xa0d   :  { %4764 = vmatmul.msk.f32.vlgmr.msra.gmra.mxu0 %vm131_vm1, %v907_v8 }
 0xa0e   :  { %1178 = vmatpush.msrb.mxu0 %v4777_v4 }
 0xa10   :  { %1179 = vmatpush.msrb.mxu0 %v4776_v7 }
 0xa12   :  { %1180 = vmatpush.msrb.mxu0 %v4775_v10  ;;  %v1160_v12 = vpop.f32.mrf.mxu3 }
 0xa13   :  { %4786 = vmatpush.xpose.msk.msra.mxu1 %vm131_vm1, %v1160_v12 }
 0xa14   :  { %1181 = vmatpush.msrb.mxu0 %v4774_v11 }
 0xa15   :  { %4784 = vmatmul.msk.f32.vlgmr.msrb.gmra.mxu0 %vm55_vm0, %v5635_v59 }
 0xa1a   :  { %v1163_v14 = vpop.f32.mrf.mxu3 }
 0xa1b   :  { %4791 = vmatpush.xpose.msk.msra.mxu0 %vm131_vm1, %v1163_v14 }
 0xa1d   :  { %4785 = vmatmul.msk.f32.gmra.mxu0 %vm55_vm0, %v5644_v1 }
 0xa82   :  { %v979_v15 = vpop.f32.mrf.mxu1 }
 0xa83   :  { %v982_v16 = vsel %vm158_vm2, %v979_v15, -inf }
 0xa84   :  { %983 = vmax.xlane.f32.xlu1 %v982_v16 }
 0xa8a   :  { %v1052_v17 = vpop.f32.mrf.mxu0 }
 0xa8b   :  { %v1055_v18 = vsel %vm158_vm2, %v1052_v17, -inf }
 0xa8c   :  { %1056 = vmax.xlane.f32.xlu0 %v1055_v18  ;;  %v4779_v18 = vld [vmem:[%s6662_s3 + $0x38] sm:$0xff] }
 0xa92   :  { %v1183_v61 = vpop.f32.mrf.mxu0 }
 0xa9a   :  { %v1186_v0 = vpop.f32.mrf.mxu0 }
 0xaf7   :  { %v984_v19 = vpop.xlane.xlu1 %983 }
 0xaf8   :  { %v985_v13 = vsub.f32 %v979_v15, %v984_v19 }
 0xafa   :  { %v986_v21 = vmul.f32 1.442695, %v985_v13 }
 0xafc   :  { %5122 = vpow2.f32 %v986_v21 }
 0xaff   :  { %v1057_v22 = vpop.xlane.xlu0 %1056 }
 0xb00   :  { %v1058_v23 = vsub.f32 %v1052_v17, %v1057_v22 }
 0xb02   :  { %v5123_v25 = vpop.eup %5122  ;;  %v1059_v26 = vmul.f32 1.442695, %v1058_v23 }
 0xb03   :  { %v988_v60 = vsel %vm158_vm2, %v5123_v25, 0.0 }
 0xb04   :  { %5124 = vpow2.f32 %v1059_v26  ;;  %989 = vadd.xlane.f32.xlu2 %v988_v60 }
 0xb0a   :  { %v5125_v27 = vpop.eup %5124 }
 0xb0b   :  { %v1061_v20 = vsel %vm158_vm2, %v5125_v27, 0.0 }
 0xb0c   :  { %1062 = vadd.xlane.f32.xlu1 %v1061_v20 }
 0xb77   :  { %v990_v31 = vpop.xlane.xlu2 %989 }
 0xb78   :  { %5126 = vrcp.f32 %v990_v31  ;;  %v1002_v38 = vand.u32 2147483648, %v990_v31  ;;  %v1000_v40 = vand.u32 2147483647, %v990_v31  ;;  %vm996_vm8 = vweird.f32 %v990_v31 }
 0xb7a   :  { %v1003_v43 = vor.u32 1.1754944e-38, %v1002_v38  ;;  %vm1001_vm10 = vcmp.eq.f32.partialorder %v1000_v40, 8.507059e+37 }
 0xb7e   :  { %v5127_v33 = vpop.eup %5126 }
 0xb7f   :  { %v992_v34 = vmul.f32 %v5127_v33, %v990_v31  ;;  %v1063_v35 = vpop.xlane.xlu1 %1062  ;;  %vm997_vm7 = vweird.f32 %v5127_v33 }
 0xb80   :  { %5128 = vrcp.f32 %v1063_v35  ;;  %vm998_vm9 = vmor %vm996_vm8, %vm997_vm7  ;;  %v1075_v50 = vand.u32 2147483648, %v1063_v35  ;;  %v1073_v52 = vand.u32 2147483647, %v1063_v35  ;;  %vm1069_vm12 = vweird.f32 %v1063_v35 }
 0xb81   :  { %v993_v36 = vsub.f32 1.0, %v992_v34 }
 0xb82   :  { %v1076_v55 = vor.u32 1.1754944e-38, %v1075_v50  ;;  %vm1074_vm14 = vcmp.eq.f32.partialorder %v1073_v52, 8.507059e+37  ;;  %v4816_v52 = vld [vmem:[%s6661_s2 + $0x188] sm:$0xff] }
 0xb83   :  { %v994_v39 = vmul.f32 %v5127_v33, %v993_v36 }
 0xb85   :  { %v995_v41 = vadd.f32 %v5127_v33, %v994_v39 }
 0xb86   :  { %v5129_v42 = vpop.eup %5128 }
 0xb87   :  { %v999_v44 = vsel %vm998_vm9, %v5127_v33, %v995_v41  ;;  %v1065_v45 = vmul.f32 %v5129_v42, %v1063_v35  ;;  %vm1070_vm11 = vweird.f32 %v5129_v42 }
 0xb88   :  { %v1004_v46 = vsel %vm1001_vm10, %v1003_v43, %v999_v44  ;;  %vm1071_vm13 = vmor %vm1069_vm12, %vm1070_vm11  ;;  %v4822_v43 = vld [vmem:[%s6661_s2 + $0x1d8] sm:$0xff]  ;;  %v4821_v44 = vld [vmem:[%s6661_s2 + $0x1d0] sm:$0xff] }
 0xb89   :  { %v1066_v47 = vsub.f32 1.0, %v1065_v45  ;;  %v1005_v48 = vmul.f32 %v5123_v25, %v1004_v46  ;;  %v4820_v45 = vld [vmem:[%s6661_s2 + $0x1c8] sm:$0xff]  ;;  %v4819_v46 = vld [vmem:[%s6661_s2 + $0x1c0] sm:$0xff] }
 0xb8b   :  { %v1067_v51 = vmul.f32 %v5129_v42, %v1066_v47  ;;  %4762 = vmatmul.msk.f32.vlgmr.msrb.gmra.mxu2 %vm158_vm2, %v1005_v48  ;;  %v5737_v47 = vld [vmem:[%s6660_s1] sm:$0xff]  ;;  %v4818_v48 = vld [vmem:[%s6661_s2 + $0x198] sm:$0xff] }
 0xb8c   :  { %1279 = vmatpush.msrb.mxu2 %v4779_v18 }
 0xb8d   :  { %v1068_v53 = vadd.f32 %v5129_v42, %v1067_v51  ;;  %v4817_v51 = vld [vmem:[%s6661_s2 + $0x190] sm:$0xff] }
 0xb8f   :  { %v1072_v56 = vsel %vm1071_vm13, %v5129_v42, %v1068_v53  ;;  %v4778_v42 = vld [vmem:[%s6662_s3 + $0x30] sm:$0xff]  ;;  %v4815_v53 = vld [vmem:[%s6661_s2 + $0x180] sm:$0xff] }
 0xb90   :  { %v1077_v57 = vsel %vm1074_vm14, %v1076_v55, %v1072_v56  ;;  %1280 = vmatpush.msrb.mxu2 %v4778_v42 }
 0xb91   :  { %v1078_v58 = vmul.f32 %v5125_v27, %v1077_v57 }
 0xb93   :  { %4765 = vmatmul.msk.f32.vlgmr.msrb.gmra.mxu1 %vm158_vm2, %v1078_v58  ;;  %4780 = vmatmul.msk.f32.vlgmr.msra.gmra.mxu2 %vm55_vm0, %v5635_v59  ;;  %v5760_v58 = vld [vmem:[%s6660_s1 + $0x8] sm:$0xff] }
 0xb94   :  { %1257 = vmatpush.msrb.mxu1 %v1183_v61  ;;  %1398 = vmatpush.msra.mxu2 %v4779_v18 }
 0xb96   :  { %1399 = vmatpush.msra.mxu2 %v4778_v42 }
 0xb9b   :  { %4781 = vmatmul.msk.f32.gmra.mxu2 %vm55_vm0, %v5644_v1 }
 0xc0e   :  { %v1026_v37 = vpop.f32.mrf.mxu2 }
 0xc0f   :  { %4790 = vmatmul.msk.f32.vlgmr.msrb.gmra.mxu3 %vm131_vm1, %v1026_v37  ;;  %v1427_v37 = vperm.slane %v5770_v62, 0 }
 0xc10   :  { %v1099_v49 = vpop.f32.mrf.mxu1  ;;  %1743 = vmatpush.msrb.mxu3 %v4822_v43 }
 0xc12   :  { %1744 = vmatpush.msrb.mxu3 %v4821_v44 }
 0xc14   :  { %1745 = vmatpush.msrb.mxu3 %v4820_v45 }
 0xc16   :  { %v1137_v63 = vpop.f32.mrf.mxu2  ;;  %1746 = vmatpush.msrb.mxu3 %v4819_v46 }
 0xc17   :  { %4787 = vmatmul.msk.f32.vlgmr.msra.gmra.mxu1 %vm131_vm1, %v1137_v63  ;;  %4795 = vmatmul.msk.f32.vlgmr.msra.gmra.mxu3 %vm131_vm1, %v1099_v49 }
 0xc18   :  { %1376 = vmatpush.msra.mxu1 %v1186_v0 }
 0xc1e   :  { %v1140_v2 = vpop.f32.mrf.mxu2 }
 0xc1f   :  { %4792 = vmatmul.msk.f32.vlgmr.msra.gmra.mxu0 %vm131_vm1, %v1140_v2  ;;  %4831 = vmatmul.msk.f32.vlgmr.msrb.gmra.mxu3 %vm55_vm0, %v5737_v47 }
 0xc27   :  { %4832 = vmatmul.msk.f32.gmra.mxu3 %vm55_vm0, %v5760_v58 }
 0xc92   :  { %v1305_v56 = vpop.f32.mrf.mxu3 }
 0xc94   :  { %v1212_v54 = vpop.f32.mrf.mxu1 }
 0xc95   :  { %v1215_v3 = vsel %vm158_vm2, %v1212_v54, -inf }
 0xc96   :  { %1216 = vmax.xlane.f32.xlu2 %v1215_v3 }
 0xc9a   :  { %v1424_v57 = vpop.f32.mrf.mxu3 }
 0xc9c   :  { %v1331_v4 = vpop.f32.mrf.mxu0 }
 0xc9d   :  { %v1334_v5 = vsel %vm158_vm2, %v1331_v4, -inf }
 0xc9e   :  { %1335 = vmax.xlane.f32.xlu0 %v1334_v5 }
 0xca2   :  { %v1748_v61 = vpop.f32.mrf.mxu3 }
 0xd09   :  { %v1217_v6 = vpop.xlane.xlu2 %1216 }
 0xd0a   :  { %v1218_v7 = vsub.f32 %v1212_v54, %v1217_v6 }
 0xd0c   :  { %v1219_v8 = vmul.f32 1.442695, %v1218_v7 }
 0xd0e   :  { %5130 = vpow2.f32 %v1219_v8 }
 0xd11   :  { %v1336_v10 = vpop.xlane.xlu0 %1335 }
 0xd12   :  { %v1337_v11 = vsub.f32 %v1331_v4, %v1336_v10 }
 0xd14   :  { %v5131_v12 = vpop.eup %5130  ;;  %v1338_v14 = vmul.f32 1.442695, %v1337_v11 }
 0xd15   :  { %v1221_v15 = vsel %vm158_vm2, %v5131_v12, 0.0 }
 0xd16   :  { %5132 = vpow2.f32 %v1338_v14  ;;  %1222 = vadd.xlane.f32.xlu1 %v1221_v15 }
 0xd1c   :  { %v5133_v16 = vpop.eup %5132 }
 0xd1d   :  { %v1340_v17 = vsel %vm158_vm2, %v5133_v16, 0.0 }
 0xd1e   :  { %1341 = vadd.xlane.f32.xlu2 %v1340_v17 }
 0xd89   :  { %v1223_v19 = vpop.xlane.xlu1 %1222 }
 0xd8a   :  { %5134 = vrcp.f32 %v1223_v19  ;;  %v1235_v25 = vand.u32 2147483648, %v1223_v19  ;;  %v1233_v60 = vand.u32 2147483647, %v1223_v19  ;;  %vm1229_vm3 = vweird.f32 %v1223_v19 }
 0xd8c   :  { %v1236_v28 = vor.u32 1.1754944e-38, %v1235_v25  ;;  %vm1234_vm5 = vcmp.eq.f32.partialorder %v1233_v60, 8.507059e+37 }
 0xd90   :  { %v5135_v13 = vpop.eup %5134 }
 0xd91   :  { %v1225_v21 = vmul.f32 %v5135_v13, %v1223_v19  ;;  %v1342_v22 = vpop.xlane.xlu2 %1341  ;;  %vm1230_vm15 = vweird.f32 %v5135_v13 }
 0xd92   :  { %5136 = vrcp.f32 %v1342_v22  ;;  %vm1231_vm4 = vmor %vm1229_vm3, %vm1230_vm15  ;;  %v1354_v33 = vand.u32 2147483648, %v1342_v22  ;;  %v1352_v35 = vand.u32 2147483647, %v1342_v22  ;;  %vm1348_vm8 = vweird.f32 %v1342_v22 }
 0xd93   :  { %v1226_v23 = vsub.f32 1.0, %v1225_v21 }
 0xd94   :  { %v1355_v38 = vor.u32 1.1754944e-38, %v1354_v33  ;;  %vm1353_vm10 = vcmp.eq.f32.partialorder %v1352_v35, 8.507059e+37 }
 0xd95   :  { %v1227_v26 = vmul.f32 %v5135_v13, %v1226_v23  ;;  %v4799_v23 = vld [vmem:[%s6664_s5 + $0x30] sm:$0xff] }
 0xd97   :  { %v1228_v27 = vadd.f32 %v5135_v13, %v1227_v26  ;;  %v4798_v26 = vld [vmem:[%s6664_s5 + $0x28] sm:$0xff] }
 0xd98   :  { %v5137_v20 = vpop.eup %5136 }
 0xd99   :  { %v1232_v29 = vsel %vm1231_vm4, %v5135_v13, %v1228_v27  ;;  %v1344_v30 = vmul.f32 %v5137_v20, %v1342_v22  ;;  %vm1349_vm7 = vweird.f32 %v5137_v20  ;;  %v4800_v22 = vld [vmem:[%s6664_s5 + $0x38] sm:$0xff]  ;;  %v4797_v27 = vld [vmem:[%s6664_s5 + $0x20] sm:$0xff] }
 0xd9a   :  { %v1237_v24 = vsel %vm1234_vm5, %v1236_v28, %v1232_v29  ;;  %vm1350_vm9 = vmor %vm1348_vm8, %vm1349_vm7  ;;  %1544 = vmatpush.msrb.mxu0 %v4800_v22  ;;  %v1511_v22 = vperm.slane %v5770_v62, 2 }
 0xd9b   :  { %v1345_v31 = vsub.f32 1.0, %v1344_v30  ;;  %v1238_v32 = vmul.f32 %v5131_v12, %v1237_v24 }
 0xd9c   :  { %1545 = vmatpush.msrb.mxu0 %v4799_v23 }
 0xd9d   :  { %v1346_v34 = vmul.f32 %v5137_v20, %v1345_v31  ;;  %4788 = vmatmul.msk.f32.vlgmr.msrb.gmra.mxu1 %vm158_vm2, %v1238_v32 }
 0xd9e   :  { %1546 = vmatpush.msrb.mxu0 %v4798_v26 }
 0xd9f   :  { %v1347_v36 = vadd.f32 %v5137_v20, %v1346_v34 }
 0xda0   :  { %1547 = vmatpush.msrb.mxu0 %v4797_v27 }
 0xda1   :  { %v1351_v39 = vsel %vm1350_vm9, %v5137_v20, %v1347_v36 }
 0xda2   :  { %v1356_v40 = vsel %vm1353_vm10, %v1355_v38, %v1351_v39 }
 0xda3   :  { %v1357_v41 = vmul.f32 %v5133_v16, %v1356_v40 }
 0xda5   :  { %4793 = vmatmul.msk.f32.vlgmr.msra.gmra.mxu1 %vm158_vm2, %v1357_v41 }
 0xe1a   :  { %v1259_v50 = vpop.f32.mrf.mxu1 }
 0xe1b   :  { %4789 = vmatmul.msk.f32.vlgmr.msrb.gmra.mxu2 %vm131_vm1, %v1259_v50  ;;  %v4826_v50 = vld [vmem:[%s6661_s2 + $0x218] sm:$0xff] }
 0xe1c   :  { %1720 = vmatpush.msrb.mxu2 %v4818_v48  ;;  %1766 = vmatpush.msra.mxu0 %v4826_v50 }
 0xe1e   :  { %1721 = vmatpush.msrb.mxu2 %v4817_v51  ;;  %v4825_v51 = vld [vmem:[%s6661_s2 + $0x210] sm:$0xff] }
 0xe1f   :  { %1767 = vmatpush.msra.mxu0 %v4825_v51 }
 0xe20   :  { %1722 = vmatpush.msrb.mxu2 %v4816_v52 }
 0xe22   :  { %v1378_v55 = vpop.f32.mrf.mxu1  ;;  %1723 = vmatpush.msrb.mxu2 %v4815_v53  ;;  %v4824_v53 = vld [vmem:[%s6661_s2 + $0x208] sm:$0xff] }
 0xe23   :  { %4794 = vmatmul.msk.f32.vlgmr.msra.gmra.mxu2 %vm131_vm1, %v1378_v55  ;;  %1768 = vmatpush.msra.mxu0 %v4824_v53 }
 0xe24   :  { %4835 = vmatpush.xpose.msk.msra.mxu2 %vm131_vm1, %v1748_v61 }
 0xe2b   :  { %4829 = vmatmul.msk.f32.vlgmr.msrb.gmra.mxu2 %vm55_vm0, %v5737_v47 }
 0xe33   :  { %4830 = vmatmul.msk.f32.gmra.mxu2 %vm55_vm0, %v5760_v58 }
 0xe9e   :  { %v1282_v49 = vpop.f32.mrf.mxu2 }
 0xe9f   :  { %v1306_v63 = vadd.f32 %v1305_v56, %v1282_v49 }
 0xea1   :  { %v1428_v0 = vadd.f32 %v1427_v37, %v1306_v63 }
 0xea3   :  { %v1430_v2 = vadd.f32 %v1428_v0, %v5635_v59 }
 0xea5   :  { %v1432_v54 = vsel %vm55_vm0, %v1430_v2, 0.0 }
 0xea6   :  { %1433 = vadd.xlane.f32.xlu0 %v1432_v54  ;;  %v1401_v3 = vpop.f32.mrf.mxu2 }
 0xea7   :  { %v1425_v4 = vadd.f32 %v1424_v57, %v1401_v3  ;;  %v4823_v57 = vld [vmem:[%s6661_s2 + $0x200] sm:$0xff]  ;;  %v4811_v3 = vld [vmem:[%s6666_s7 + $0x78] sm:$0xff] }
 0xea8   :  { %1769 = vmatpush.msra.mxu0 %v4823_v57  ;;  %1581 = vmatpush.msrb.mxu1 %v4811_v3  ;;  %v4827_v3 = vld [vmem:[%s6662_s3 + $0x40] sm:$0xff] }
 0xea9   :  { %v1429_v5 = vadd.f32 %v1427_v37, %v1425_v4  ;;  %v4810_v4 = vld [vmem:[%s6666_s7 + $0x70] sm:$0xff] }
 0xeaa   :  { %1582 = vmatpush.msrb.mxu1 %v4810_v4  ;;  %v4843_v4 = vld [vmem:[%s6661_s2 + $0x1b0] sm:$0xff] }
 0xeab   :  { %v1431_v6 = vadd.f32 %v1429_v5, %v5644_v1 }
 0xead   :  { %v1435_v7 = vsel %vm55_vm0, %v1431_v6, 0.0 }
 0xeae   :  { %1436 = vadd.xlane.f32.xlu1 %v1435_v7  ;;  %v1725_v8 = vpop.f32.mrf.mxu2 }
 0xeaf   :  { %4836 = vmatmul.msk.f32.vlgmr.msra.gmra.mxu2 %vm131_vm1, %v1725_v8 }
 0xeb6   :  { %v5790_v19 = vpop.f32.mrf.mxu2 }
 0xf19   :  { %v1434_v10 = vpop.xlane.xlu0 %1433 }
 0xf1a   :  { %v1438_v11 = vmul.f32 %v1434_v10, %v5503_v9 }
 0xf1c   :  { %v5779_v12 = vsub.f32 %v1430_v2, %v1438_v11  ;;  %v4808_v11 = vld [vmem:[%s6666_s7 + $0x60] sm:$0xff] }
 0xf1e   :  { %v1442_v59 = vmul.f32 %v5779_v12, %v5779_v12 }
 0xf20   :  { %v1444_v14 = vsel %vm55_vm0, %v1442_v59, 0.0 }
 0xf21   :  { %1445 = vadd.xlane.f32.xlu2 %v1444_v14  ;;  %v1437_v15 = vpop.xlane.xlu1 %1436  ;;  %v4807_v14 = vld [vmem:[%s6666_s7 + $0x58] sm:$0xff] }
 0xf22   :  { %v1439_v1 = vmul.f32 %v1437_v15, %v5503_v9 }
 0xf24   :  { %v5785_v16 = vsub.f32 %v1431_v6, %v1439_v1  ;;  %v4809_v6 = vld [vmem:[%s6666_s7 + $0x68] sm:$0xff] }
 0xf25   :  { %1583 = vmatpush.msrb.mxu1 %v4809_v6 }
 0xf26   :  { %v1443_v17 = vmul.f32 %v5785_v16, %v5785_v16 }
 0xf27   :  { %1584 = vmatpush.msrb.mxu1 %v4808_v11 }
 0xf28   :  { %v1447_v18 = vsel %vm55_vm0, %v1443_v17, 0.0  ;;  %v1508_v17 = vperm.slane %v5770_v62, 1 }
 0xf29   :  { %1448 = vadd.xlane.f32.xlu0 %v1447_v18  ;;  %1585 = vmatpush.msrb.mxu1 %v4807_v14 }
 0xf32   :  { %v1800_v13 = vpop.f32.mrf.mxu2 }
 0xf33   :  { %v1803_v21 = vsel %vm158_vm2, %v1800_v13, -inf }
 0xf34   :  { %1804 = vmax.xlane.f32.xlu1 %v1803_v21 }
 0xf94   :  { %v1446_v25 = vpop.xlane.xlu2 %1445 }
 0xf95   :  { %v1450_v60 = vmul.f32 0.032258064, %v1446_v25 }
 0xf97   :  { %5138 = vrsqrt.f32 %v1450_v60  ;;  %vm1459_vm11 = vcmp.eq.f32.partialorder %v1450_v60, inf  ;;  %v1462_v41 = vand.u32 2147483648, %v1450_v60  ;;  %vm1461_vm12 = vcmp.eq.f32.partialorder %v1450_v60, 0.0 }
 0xf9c   :  { %v1449_v20 = vpop.xlane.xlu0 %1448 }
 0xf9d   :  { %v5139_v28 = vpop.eup %5138  ;;  %v1451_v29 = vmul.f32 0.032258064, %v1449_v20 }
 0xf9e   :  { %v1453_v30 = vmul.f32 %v5139_v28, %v1450_v60 }
 0xf9f   :  { %5140 = vrsqrt.f32 %v1451_v29  ;;  %vm1471_vm13 = vcmp.eq.f32.partialorder %v1451_v29, inf  ;;  %v1474_v56 = vand.u32 2147483648, %v1451_v29  ;;  %vm1473_vm14 = vcmp.eq.f32.partialorder %v1451_v29, 0.0 }
 0xfa0   :  { %v1454_v24 = vmul.f32 %v5139_v28, %v1453_v30 }
 0xfa2   :  { %v1455_v31 = vmul.f32 0.5, %v1454_v24 }
 0xfa4   :  { %v1456_v32 = vsub.f32 1.5, %v1455_v31 }
 0xfa5   :  { %v5141_v33 = vpop.eup %5140 }
 0xfa6   :  { %v1457_v34 = vmul.f32 %v5139_v28, %v1456_v32  ;;  %v1465_v35 = vmul.f32 %v5141_v33, %v1451_v29 }
 0xfa7   :  { %v1805_v36 = vpop.xlane.xlu1 %1804 }
 0xfa8   :  { %v1458_v38 = vmul.f32 %v1457_v34, %v1450_v60  ;;  %v1466_v39 = vmul.f32 %v5141_v33, %v1465_v35  ;;  %v1806_v40 = vsub.f32 %v1800_v13, %v1805_v36  ;;  %v4804_v34 = vld [vmem:[%s6666_s7 + $0x40] sm:$0xff]  ;;  %v1751_v36 = vpop.f32.mrf.mxu3 }
 0xfaa   :  { %v1460_v42 = vsel %vm1459_vm11, %v1450_v60, %v1458_v38  ;;  %v1467_v43 = vmul.f32 0.5, %v1466_v39  ;;  %v1807_v44 = vmul.f32 1.442695, %v1806_v40 }
 0xfab   :  { %v1463_v45 = vsel %vm1461_vm12, %v1462_v41, %v1460_v42  ;;  %v5085_v41 = vld [vmem:[%s6665_s6 + $0x1] ss:$0 sm:$0xff] }
 0xfac   :  { %v1476_v46 = vadd.f32 0.001, %v1463_v45  ;;  %v1468_v48 = vsub.f32 1.5, %v1467_v43  ;;  %5142 = vpow2.f32 %v1807_v44 }
 0xfae   :  { %5144 = vrcp.f32 %v1476_v46  ;;  %v1469_v52 = vmul.f32 %v5141_v33, %v1468_v48  ;;  %v1489_v7 = vand.u32 2147483648, %v1476_v46  ;;  %v1487_v10 = vand.u32 2147483647, %v1476_v46  ;;  %v4806_v33 = vld [vmem:[%s6666_s7 + $0x50] sm:$0xff] }
 0xfaf   :  { %vm1483_vm3 = vweird.f32 %v1476_v46  ;;  %1586 = vmatpush.msrb.mxu1 %v4806_v33 }
 0xfb0   :  { %v1470_v55 = vmul.f32 %v1469_v52, %v1451_v29  ;;  %v1490_v1 = vor.u32 1.1754944e-38, %v1489_v7  ;;  %vm1488_vm5 = vcmp.eq.f32.partialorder %v1487_v10, 8.507059e+37  ;;  %v4841_v7 = vld [vmem:[%s6661_s2 + $0x1a0] sm:$0xff] }
 0xfb2   :  { %v5817_v61 = vpop.eup %5142  ;;  %v1472_v37 = vsel %vm1471_vm13, %v1451_v29, %v1470_v55 }
 0xfb3   :  { %v1475_v49 = vsel %vm1473_vm14, %v1474_v56, %v1472_v37  ;;  %v1809_v63 = vsel %vm158_vm2, %v5817_v61, 0.0 }
 0xfb4   :  { %v5145_v0 = vpop.eup %5144  ;;  %v1477_v2 = vadd.f32 0.001, %v1475_v49  ;;  %1810 = vadd.xlane.f32.xlu2 %v1809_v63  ;;  %v4848_v63 = vld [vmem:[%s6661_s2 + $0x1f8] sm:$0xff] }
 0xfb5   :  { %v1479_v54 = vmul.f32 %v5145_v0, %v1476_v46  ;;  %vm1484_vm15 = vweird.f32 %v5145_v0 }
 0xfb6   :  { %5146 = vrcp.f32 %v1477_v2  ;;  %vm1485_vm4 = vmor %vm1483_vm3, %vm1484_vm15  ;;  %v1503_v26 = vand.u32 2147483648, %v1477_v2  ;;  %v1501_v20 = vand.u32 2147483647, %v1477_v2  ;;  %vm1497_vm8 = vweird.f32 %v1477_v2 }
 0xfb7   :  { %v1480_v5 = vsub.f32 1.0, %v1479_v54  ;;  %v4844_v54 = vld [vmem:[%s6661_s2 + $0x1b8] sm:$0xff] }
 0xfb8   :  { %v1504_v30 = vor.u32 1.1754944e-38, %v1503_v26  ;;  %vm1502_vm10 = vcmp.eq.f32.partialorder %v1501_v20, 8.507059e+37 }
 0xfb9   :  { %v1481_v8 = vmul.f32 %v5145_v0, %v1480_v5  ;;  %v4842_v5 = vld [vmem:[%s6661_s2 + $0x1a8] sm:$0xff] }
 0xfbb   :  { %v1482_v59 = vadd.f32 %v5145_v0, %v1481_v8 }
 0xfbc   :  { %v5147_v15 = vpop.eup %5146 }
 0xfbd   :  { %v1486_v18 = vsel %vm1485_vm4, %v5145_v0, %v1482_v59  ;;  %v1493_v13 = vmul.f32 %v5147_v15, %v1477_v2  ;;  %vm1498_vm7 = vweird.f32 %v5147_v15  ;;  %v4847_v0 = vld [vmem:[%s6661_s2 + $0x1f0] sm:$0xff]  ;;  %v4845_v2 = vld [vmem:[%s6661_s2 + $0x1e0] sm:$0xff] }
 0xfbe   :  { %v1491_v21 = vsel %vm1488_vm5, %v1490_v1, %v1486_v18  ;;  %vm1499_vm9 = vmor %vm1497_vm8, %vm1498_vm7  ;;  %v4852_v1 = vld [vmem:[%s6661_s2 + $0x238] sm:$0xff]  ;;  %v4850_v18 = vld [vmem:[%s6661_s2 + $0x228] sm:$0xff] }
 0xfbf   :  { %v1506_v23 = vmul.f32 %v1491_v21, %v5779_v12  ;;  %v1494_v25 = vsub.f32 1.0, %v1493_v13  ;;  %v4849_v13 = vld [vmem:[%s6661_s2 + $0x220] sm:$0xff] }
 0xfc1   :  { %v1509_v60 = vmul.f32 %v1508_v17, %v1506_v23  ;;  %v1495_v27 = vmul.f32 %v5147_v15, %v1494_v25 }
 0xfc3   :  { %v5839_v28 = vadd.f32 %v1511_v22, %v1509_v60  ;;  %v1496_v29 = vadd.f32 %v5147_v15, %v1495_v27 }
 0xfc5   :  { %4802 = vmatmul.msk.f32.vlgmr.msrb.gmra.mxu0 %vm55_vm0, %v5839_v28  ;;  %v1500_v24 = vsel %vm1499_vm9, %v5147_v15, %v1496_v29 }
 0xfc6   :  { %v1505_v62 = vsel %vm1502_vm10, %v1504_v30, %v1500_v24  ;;  %1976 = vmatpush.msrb.mxu0 %v4848_v63 }
 0xfc7   :  { %v1507_v12 = vmul.f32 %v1505_v62, %v5785_v16  ;;  %v4805_v16 = vld [vmem:[%s6666_s7 + $0x48] sm:$0xff] }
 0xfc8   :  { %1587 = vmatpush.msrb.mxu1 %v4805_v16  ;;  %1977 = vmatpush.msrb.mxu0 %v4847_v0 }
 0xfc9   :  { %v1510_v31 = vmul.f32 %v1508_v17, %v1507_v12  ;;  %v4851_v17 = vld [vmem:[%s6661_s2 + $0x230] sm:$0xff] }
 0xfca   :  { %1588 = vmatpush.msrb.mxu1 %v4804_v34 }
 0xfcb   :  { %v5844_v32 = vadd.f32 %v1511_v22, %v1510_v31 }
 0xfcc   :  { %4838 = vmatpush.xpose.msk.msra.mxu1 %vm131_vm1, %v1751_v36 }
 0xfcd   :  { %4803 = vmatmul.msk.f32.gmra.mxu0 %vm55_vm0, %v5844_v32 }
 0xfd5   :  { %4833 = vmatmul.msk.f32.vlgmr.msra.gmra.mxu0 %vm55_vm0, %v5737_v47 }
 0xfdd   :  { %4834 = vmatmul.msk.f32.gmra.mxu0 %vm55_vm0, %v5760_v58 }
0x1027   :  { %v1811_v35 = vpop.xlane.xlu2 %1810 }
0x1028   :  { %5148 = vrcp.f32 %v1811_v35  ;;  %vm1817_vm11 = vweird.f32 %v1811_v35  ;;  %v1823_v46 = vand.u32 2147483648, %v1811_v35  ;;  %v1821_v50 = vand.u32 2147483647, %v1811_v35 }
0x102a   :  { %v1824_v51 = vor.u32 1.1754944e-38, %v1823_v46  ;;  %vm1822_vm14 = vcmp.eq.f32.partialorder %v1821_v50, 8.507059e+37 }
0x102e   :  { %v5149_v38 = vpop.eup %5148 }
0x102f   :  { %v1813_v39 = vmul.f32 %v5149_v38, %v1811_v35  ;;  %vm1818_vm12 = vweird.f32 %v5149_v38 }
0x1030   :  { %vm1819_vm13 = vmor %vm1817_vm11, %vm1818_vm12 }
0x1031   :  { %v1814_v40 = vsub.f32 1.0, %v1813_v39 }
0x1033   :  { %v1815_v43 = vmul.f32 %v5149_v38, %v1814_v40 }
0x1035   :  { %v1816_v48 = vadd.f32 %v5149_v38, %v1815_v43 }
0x1037   :  { %v1820_v53 = vsel %vm1819_vm13, %v5149_v38, %v1816_v48 }
0x1038   :  { %v1825_v57 = vsel %vm1822_vm14, %v1824_v51, %v1820_v53 }
0x1039   :  { %v1826_v37 = vmul.f32 %v5817_v61, %v1825_v57  ;;  %v4846_v61 = vld [vmem:[%s6661_s2 + $0x1e8] sm:$0xff]  ;;  %v5944_v57 = vld [vmem:[%s6667_s8 + $0x4] sm:$0x7] }
0x103a   :  { %1978 = vmatpush.msrb.mxu0 %v4846_v61 }
0x103c   :  { %1979 = vmatpush.msrb.mxu0 %v4845_v2 }
0x103d   :  { %4857 = vmatmul.msk.f32.vlgmr.msrb.gmra.mxu0 %vm55_vm0, %v5737_v47 }
0x1042   :  { %v1549_v42 = vpop.f32.mrf.mxu0 }
0x1043   :  { %v1550_v44 = vadd.f32 %v5085_v41, %v1549_v42 }
0x1045   :  { %v1555_v45 = vmax.f32 %v1550_v44, 0.0  ;;  %4858 = vmatmul.msk.f32.gmra.mxu0 %vm55_vm0, %v5760_v58 }
0x1047   :  { %4812 = vmatmul.msk.f32.vlgmr.msrb.gmra.mxu1 %vm747_vm6, %v1555_v45 }
0x1048   :  { %1999 = vmatpush.msrb.mxu1 %v4852_v1 }
0x104a   :  { %v1552_v52 = vpop.f32.mrf.mxu0  ;;  %2000 = vmatpush.msrb.mxu1 %v4851_v17 }
0x104b   :  { %v1553_v55 = vadd.f32 %v5085_v41, %v1552_v52 }
0x104c   :  { %2001 = vmatpush.msrb.mxu1 %v4850_v18 }
0x104d   :  { %v1556_v56 = vmax.f32 %v1553_v55, 0.0 }
0x104e   :  { %2002 = vmatpush.msrb.mxu1 %v4849_v13 }
0x104f   :  { %4813 = vmatmul.msk.f32.gmra.mxu1 %vm747_vm6, %v1556_v56 }
0x1052   :  { %v1771_v49 = vpop.f32.mrf.mxu0 }
0x1053   :  { %1845 = vmatpush.msra.mxu3 %v1771_v49 }
0x1054   :  { %4837 = vmatmul.msk.f32.vlgmr.msra.gmra.mxu3 %vm158_vm2, %v1826_v37  ;;  %v1566_v37 = vperm.slane %v5944_v57, 0 }
0x1055   :  { %1953 = vmatpush.msrb.mxu3 %v4844_v54 }
0x1057   :  { %4839 = vmatmul.msk.f32.vlgmr.msra.gmra.mxu1 %vm131_vm1, %v5790_v19  ;;  %v4828_v19 = vld [vmem:[%s6662_s3 + $0x48] sm:$0xff]  ;;  %1954 = vmatpush.msrb.mxu3 %v4843_v4 }
0x1058   :  { %2123 = vmatpush.msra.mxu0 %v4828_v19 }
0x1059   :  { %1955 = vmatpush.msrb.mxu3 %v4842_v5 }
0x105a   :  { %2124 = vmatpush.msra.mxu0 %v4827_v3  ;;  %v1774_v6 = vpop.f32.mrf.mxu0 }
0x105b   :  { %1918 = vmatpush.msrb.mxu2 %v1774_v6  ;;  %1956 = vmatpush.msrb.mxu3 %v4841_v7 }
0x105c   :  { %2242 = vmatpush.msrb.mxu0 %v4828_v19  ;;  %4855 = vmatmul.msk.f32.vlgmr.msrb.gmra.mxu3 %vm55_vm0, %v5737_v47 }
0x105e   :  { %2243 = vmatpush.msrb.mxu0 %v4827_v3 }
0x105f   :  { %4859 = vmatmul.msk.f32.vlgmr.msrb.gmra.mxu1 %vm55_vm0, %v5737_v47 }
0x1064   :  { %4856 = vmatmul.msk.f32.gmra.mxu3 %vm55_vm0, %v5760_v58 }
0x1067   :  { %4860 = vmatmul.msk.f32.gmra.mxu1 %vm55_vm0, %v5760_v58 }
0x10ba   :  { %v1981_v15 = vpop.f32.mrf.mxu0 }
0x10bb   :  { %4861 = vmatpush.xpose.msk.msra.mxu2 %vm131_vm1, %v1981_v15 }
0x10c2   :  { %v1984_v21 = vpop.f32.mrf.mxu0 }
0x10c3   :  { %4866 = vmatpush.xpose.msk.msra.mxu1 %vm131_vm1, %v1984_v21 }
0x10c4   :  { %v5907_v8 = vpop.f32.mrf.mxu1 }
0x10c5   :  { %v1591_v63 = vadd.f32 %v5907_v8, %v1566_v37 }
0x10c7   :  { %v1596_v61 = vadd.f32 %v1591_v63, %v5839_v28 }
0x10c9   :  { %v1598_v2 = vsel %vm55_vm0, %v1596_v61, 0.0 }
0x10cc   :  { %v5911_v10 = vpop.f32.mrf.mxu1 }
0x10d4   :  { %v1873_v11 = vpop.f32.mrf.mxu1 }
0x10d5   :  { %v1876_v59 = vsel %vm158_vm2, %v1873_v11, -inf }
0x10d6   :  { %1877 = vmax.xlane.f32.xlu0 %v1876_v59 }
0x10d7   :  { %v1847_v14 = vpop.f32.mrf.mxu3 }
0x10d8   :  { %4865 = vmatmul.msk.f32.vlgmr.msra.gmra.mxu0 %vm131_vm1, %v1847_v14 }
0x10dc   :  { %v2004_v29 = vpop.f32.mrf.mxu1 }
0x10df   :  { %v1958_v22 = vpop.f32.mrf.mxu3 }
0x10e4   :  { %v2007_v30 = vpop.f32.mrf.mxu1 }
0x10e7   :  { %v1961_v26 = vpop.f32.mrf.mxu3 }
0x10e8   :  { %4867 = vmatmul.msk.f32.vlgmr.msra.gmra.mxu1 %vm131_vm1, %v1961_v26 }
0x1149   :  { %v1878_v23 = vpop.xlane.xlu0 %1877 }
0x114a   :  { %v1879_v25 = vsub.f32 %v1873_v11, %v1878_v23 }
0x114c   :  { %v1880_v60 = vmul.f32 1.442695, %v1879_v25 }
0x114e   :  { %5150 = vpow2.f32 %v1880_v60 }
0x1154   :  { %v5151_v27 = vpop.eup %5150 }
0x1155   :  { %v1882_v20 = vsel %vm158_vm2, %v5151_v27, 0.0 }
0x1156   :  { %1883 = vadd.xlane.f32.xlu1 %v1882_v20 }
0x1165   :  { %v2152_v62 = vpop.f32.mrf.mxu1 }
0x1166   :  { %v2155_v12 = vsel %vm158_vm2, %v2152_v62, -inf }
0x1167   :  { %2156 = vmax.xlane.f32.xlu1 %v2155_v12  ;;  %v4854_v12 = vld [vmem:[%s6662_s3 + $0x58] sm:$0xff] }
0x1168   :  { %2100 = vmatpush.msra.mxu3 %v4854_v12 }
0x11c9   :  { %v1884_v24 = vpop.xlane.xlu1 %1883 }
0x11ca   :  { %5152 = vrcp.f32 %v1884_v24  ;;  %v1896_v34 = vand.u32 2147483648, %v1884_v24  ;;  %v1894_v36 = vand.u32 2147483647, %v1884_v24  ;;  %vm1890_vm3 = vweird.f32 %v1884_v24 }
0x11cc   :  { %v1897_v39 = vor.u32 1.1754944e-38, %v1896_v34  ;;  %vm1895_vm5 = vcmp.eq.f32.partialorder %v1894_v36, 8.507059e+37  ;;  %v4879_v34 = vld [vmem:[%s6661_s2 + $0x298] sm:$0xff]  ;;  %v4877_v36 = vld [vmem:[%s6661_s2 + $0x288] sm:$0xff] }
0x11d0   :  { %v5153_v31 = vpop.eup %5152 }
0x11d1   :  { %v1886_v33 = vmul.f32 %v5153_v31, %v1884_v24  ;;  %vm1891_vm15 = vweird.f32 %v5153_v31 }
0x11d2   :  { %vm1892_vm4 = vmor %vm1890_vm3, %vm1891_vm15 }
0x11d3   :  { %v1887_v16 = vsub.f32 1.0, %v1886_v33 }
0x11d5   :  { %v1888_v35 = vmul.f32 %v5153_v31, %v1887_v16 }
0x11d7   :  { %v1889_v38 = vadd.f32 %v5153_v31, %v1888_v35  ;;  %v4878_v35 = vld [vmem:[%s6661_s2 + $0x290] sm:$0xff] }
0x11d9   :  { %v1893_v40 = vsel %vm1892_vm4, %v5153_v31, %v1889_v38  ;;  %v4853_v31 = vld [vmem:[%s6662_s3 + $0x50] sm:$0xff] }
0x11da   :  { %v1898_v41 = vsel %vm1895_vm5, %v1897_v39, %v1893_v40  ;;  %v2157_v43 = vpop.xlane.xlu1 %2156  ;;  %2101 = vmatpush.msra.mxu3 %v4853_v31  ;;  %v4876_v39 = vld [vmem:[%s6661_s2 + $0x280] sm:$0xff] }
0x11db   :  { %v1899_v42 = vmul.f32 %v5151_v27, %v1898_v41  ;;  %v2158_v44 = vsub.f32 %v2152_v62, %v2157_v43 }
0x11dc   :  { %2219 = vmatpush.msrb.mxu3 %v4854_v12 }
0x11dd   :  { %4840 = vmatmul.msk.f32.vlgmr.msrb.gmra.mxu2 %vm158_vm2, %v1899_v42  ;;  %v2159_v46 = vmul.f32 1.442695, %v2158_v44 }
0x11de   :  { %2078 = vmatpush.msrb.mxu2 %v2004_v29  ;;  %2220 = vmatpush.msrb.mxu3 %v4853_v31 }
0x11df   :  { %5154 = vpow2.f32 %v2159_v46 }
0x11e5   :  { %4862 = vmatmul.msk.f32.vlgmr.msra.gmra.mxu2 %vm131_vm1, %v1958_v22  ;;  %v5155_v51 = vpop.eup %5154 }
0x11e6   :  { %2197 = vmatpush.msra.mxu2 %v2007_v30  ;;  %v2161_v52 = vsel %vm158_vm2, %v5155_v51, 0.0 }
0x1260   :  { %v1920_v45 = vpop.f32.mrf.mxu2 }
0x1261   :  { %4870 = vmatmul.msk.f32.vlgmr.msrb.gmra.mxu0 %vm131_vm1, %v1920_v45  ;;  %v4883_v45 = vld [vmem:[%s6661_s2 + $0x2d8] sm:$0xff] }
0x1268   :  { %v2033_v48 = vpop.f32.mrf.mxu2 }
0x1269   :  { %v2036_v50 = vsel %vm158_vm2, %v2033_v48, -inf }
0x126a   :  { %2037 = vmax.xlane.f32.xlu2 %v2036_v50 }
0x1272   :  { %2162 = vadd.xlane.f32.xlu2 %v2161_v52 }
0x12dd   :  { %v2038_v53 = vpop.xlane.xlu2 %2037 }
0x12de   :  { %v2039_v55 = vsub.f32 %v2033_v48, %v2038_v53 }
0x12e0   :  { %v2040_v56 = vmul.f32 1.442695, %v2039_v55  ;;  %v4881_v55 = vld [vmem:[%s6661_s2 + $0x2c8] sm:$0xff] }
0x12e2   :  { %5156 = vpow2.f32 %v2040_v56 }
0x12e5   :  { %v2163_v19 = vpop.xlane.xlu2 %2162 }
0x12e6   :  { %5158 = vrcp.f32 %v2163_v19  ;;  %vm2169_vm8 = vweird.f32 %v2163_v19  ;;  %v2175_v21 = vand.u32 2147483648, %v2163_v19  ;;  %v2173_v26 = vand.u32 2147483647, %v2163_v19 }
0x12e8   :  { %v5157_v49 = vpop.eup %5156  ;;  %v2176_v29 = vor.u32 1.1754944e-38, %v2175_v21  ;;  %vm2174_vm14 = vcmp.eq.f32.partialorder %v2173_v26, 8.507059e+37 }
0x12e9   :  { %v2042_v0 = vsel %vm158_vm2, %v5157_v49, 0.0 }
0x12ea   :  { %2043 = vadd.xlane.f32.xlu0 %v2042_v0 }
0x12ec   :  { %v5159_v3 = vpop.eup %5158 }
0x12ed   :  { %v2165_v4 = vmul.f32 %v5159_v3, %v2163_v19  ;;  %vm2170_vm9 = vweird.f32 %v5159_v3 }
0x12ee   :  { %vm2171_vm13 = vmor %vm2169_vm8, %vm2170_vm9 }
0x12ef   :  { %v2166_v6 = vsub.f32 1.0, %v2165_v4 }
0x12f1   :  { %v2167_v28 = vmul.f32 %v5159_v3, %v2166_v6  ;;  %v1674_v6 = vperm.slane %v5944_v57, 1 }
0x12f2   :  { %1599 = vadd.xlane.f32.xlu0 %v1598_v2 }
0x12f3   :  { %v2168_v25 = vadd.f32 %v5159_v3, %v2167_v28 }
0x12f5   :  { %v2172_v30 = vsel %vm2171_vm13, %v5159_v3, %v2168_v25 }
0x12f6   :  { %v2177_v24 = vsel %vm2174_vm14, %v2176_v29, %v2172_v30 }
0x12f7   :  { %v2178_v62 = vmul.f32 %v5155_v51, %v2177_v24  ;;  %v4882_v51 = vld [vmem:[%s6661_s2 + $0x2d0] sm:$0xff] }
0x135d   :  { %v2044_v54 = vpop.xlane.xlu0 %2043 }
0x135e   :  { %5160 = vrcp.f32 %v2044_v54  ;;  %v2056_v14 = vand.u32 2147483648, %v2044_v54  ;;  %v2054_v17 = vand.u32 2147483647, %v2044_v54  ;;  %vm2050_vm10 = vweird.f32 %v2044_v54 }
0x1360   :  { %v2057_v22 = vor.u32 1.1754944e-38, %v2056_v14  ;;  %vm2055_vm12 = vcmp.eq.f32.partialorder %v2054_v17, 8.507059e+37  ;;  %v2126_v17 = vpop.f32.mrf.mxu0 }
0x1364   :  { %v5161_v5 = vpop.eup %5160 }
0x1365   :  { %v2046_v7 = vmul.f32 %v5161_v5, %v2044_v54  ;;  %v1600_v11 = vpop.xlane.xlu0 %1599  ;;  %vm2051_vm7 = vweird.f32 %v5161_v5 }
0x1366   :  { %v1604_v8 = vmul.f32 %v1600_v11, %v5503_v9  ;;  %vm2052_vm11 = vmor %vm2050_vm10, %vm2051_vm7 }
0x1367   :  { %v2047_v59 = vsub.f32 1.0, %v2046_v7 }
0x1368   :  { %v5954_v15 = vsub.f32 %v1596_v61, %v1604_v8  ;;  %v1677_v8 = vperm.slane %v5944_v57, 2  ;;  %v2245_v26 = vpop.f32.mrf.mxu0 }
0x1369   :  { %v2048_v1 = vmul.f32 %v5161_v5, %v2047_v59 }
0x136a   :  { %v1608_v18 = vmul.f32 %v5954_v15, %v5954_v15 }
0x136b   :  { %v2049_v13 = vadd.f32 %v5161_v5, %v2048_v1  ;;  %v6009_v1 = vld [vmem:[%s6663_s4 + $0x8] sm:$0x7] }
0x136c   :  { %v1610_v23 = vsel %vm55_vm0, %v1608_v18, 0.0 }
0x136d   :  { %v2053_v60 = vsel %vm2052_vm11, %v5161_v5, %v2049_v13  ;;  %1611 = vadd.xlane.f32.xlu2 %v1610_v23  ;;  %v1594_v23 = vadd.f32 %v5911_v10, %v1566_v37 }
0x136e   :  { %v2058_v27 = vsel %vm2055_vm12, %v2057_v22, %v2053_v60 }
0x136f   :  { %v2059_v20 = vmul.f32 %v5157_v49, %v2058_v27  ;;  %v4880_v49 = vld [vmem:[%s6661_s2 + $0x2c0] sm:$0xff]  ;;  %v1597_v29 = vadd.f32 %v1594_v23, %v5844_v32 }
0x1371   :  { %4863 = vmatmul.msk.f32.vlgmr.msrb.gmra.mxu2 %vm158_vm2, %v2059_v20 }
0x1372   :  { %2402 = vmatpush.msrb.mxu2 %v4879_v34 }
0x1374   :  { %2403 = vmatpush.msrb.mxu2 %v4878_v35 }
0x1376   :  { %2404 = vmatpush.msrb.mxu2 %v4877_v36 }
0x1378   :  { %2405 = vmatpush.msrb.mxu2 %v4876_v39 }
0x1379   :  { %4868 = vmatmul.msk.f32.vlgmr.msra.gmra.mxu2 %vm158_vm2, %v2178_v62  ;;  %v1601_v62 = vsel %vm55_vm0, %v1597_v29, 0.0 }
0x13e0   :  { %v1612_v33 = vpop.xlane.xlu2 %1611 }
0x13e1   :  { %v1616_v16 = vmul.f32 0.032258064, %v1612_v33 }
0x13e3   :  { %5162 = vrsqrt.f32 %v1616_v16  ;;  %vm1625_vm15 = vcmp.eq.f32.partialorder %v1616_v16, inf  ;;  %v1628_v50 = vand.u32 2147483648, %v1616_v16  ;;  %vm1627_vm3 = vcmp.eq.f32.partialorder %v1616_v16, 0.0 }
0x13e9   :  { %v5163_v38 = vpop.eup %5162 }
0x13ea   :  { %v1619_v40 = vmul.f32 %v5163_v38, %v1616_v16 }
0x13ec   :  { %v1620_v41 = vmul.f32 %v5163_v38, %v1619_v40 }
0x13ee   :  { %v1621_v42 = vmul.f32 0.5, %v1620_v41 }
0x13f0   :  { %v1622_v43 = vsub.f32 1.5, %v1621_v42 }
0x13f2   :  { %v1623_v44 = vmul.f32 %v5163_v38, %v1622_v43 }
0x13f4   :  { %v1624_v46 = vmul.f32 %v1623_v44, %v1616_v16  ;;  %v2080_v48 = vpop.f32.mrf.mxu2 }
0x13f5   :  { %4864 = vmatmul.msk.f32.vlgmr.msra.gmra.mxu3 %vm131_vm1, %v2080_v48 }
0x13f6   :  { %v1626_v52 = vsel %vm1625_vm15, %v1616_v16, %v1624_v46  ;;  %2425 = vmatpush.msra.mxu3 %v4883_v45 }
0x13f7   :  { %v1629_v53 = vsel %vm1627_vm3, %v1628_v50, %v1626_v52 }
0x13f8   :  { %v1642_v56 = vadd.f32 0.001, %v1629_v53  ;;  %2426 = vmatpush.msra.mxu3 %v4882_v51  ;;  %v4875_v53 = vld [vmem:[%s6661_s2 + $0x258] sm:$0xff] }
0x13f9   :  { %2373 = vmatpush.msrb.mxu1 %v4875_v53 }
0x13fa   :  { %5164 = vrcp.f32 %v1642_v56  ;;  %2427 = vmatpush.msra.mxu3 %v4881_v55  ;;  %v1655_v19 = vand.u32 2147483648, %v1642_v56  ;;  %v1653_v3 = vand.u32 2147483647, %v1642_v56  ;;  %vm1649_vm5 = vweird.f32 %v1642_v56 }
0x13fc   :  { %v2199_v63 = vpop.f32.mrf.mxu2  ;;  %2428 = vmatpush.msra.mxu3 %v4880_v49  ;;  %v1656_v5 = vor.u32 1.1754944e-38, %v1655_v19  ;;  %vm1654_vm8 = vcmp.eq.f32.partialorder %v1653_v3, 8.507059e+37  ;;  %v4873_v49 = vld [vmem:[%s6661_s2 + $0x248] sm:$0xff] }
0x13fd   :  { %4869 = vmatmul.msk.f32.vlgmr.msrb.gmra.mxu3 %vm131_vm1, %v2199_v63 }
0x1400   :  { %v5165_v0 = vpop.eup %5164 }
0x1401   :  { %v1645_v61 = vmul.f32 %v5165_v0, %v1642_v56  ;;  %vm1650_vm4 = vweird.f32 %v5165_v0  ;;  %v4874_v56 = vld [vmem:[%s6661_s2 + $0x250] sm:$0xff] }
0x1402   :  { %vm1651_vm7 = vmor %vm1649_vm5, %vm1650_vm4  ;;  %2374 = vmatpush.msrb.mxu1 %v4874_v56 }
0x1403   :  { %v1646_v2 = vsub.f32 1.0, %v1645_v61 }
0x1404   :  { %2375 = vmatpush.msrb.mxu1 %v4873_v49 }
0x1405   :  { %v1647_v54 = vmul.f32 %v5165_v0, %v1646_v2 }
0x1407   :  { %v1648_v4 = vadd.f32 %v5165_v0, %v1647_v54 }
0x1409   :  { %v1652_v7 = vsel %vm1651_vm7, %v5165_v0, %v1648_v4  ;;  %v4872_v0 = vld [vmem:[%s6661_s2 + $0x240] sm:$0xff] }
0x140a   :  { %v1657_v11 = vsel %vm1654_vm8, %v1656_v5, %v1652_v7  ;;  %2376 = vmatpush.msrb.mxu1 %v4872_v0 }
0x140b   :  { %v1672_v59 = vmul.f32 %v1657_v11, %v5954_v15  ;;  %v2248_v15 = vperm.slane %v6009_v1, 0 }
0x140d   :  { %v1675_v14 = vmul.f32 %v1674_v6, %v1672_v59 }
0x140f   :  { %v6000_v28 = vadd.f32 %v1677_v8, %v1675_v14 }
0x1411   :  { %4888 = vmatmul.msk.f32.vlgmr.msrb.gmra.mxu2 %vm55_vm0, %v6000_v28  ;;  %4890 = vmatmul.msk.f32.vlgmr.msra.gmra.mxu3 %vm55_vm0, %v6000_v28 }
0x1478   :  { %v2103_v18 = vpop.f32.mrf.mxu3 }
0x1479   :  { %v2127_v13 = vadd.f32 %v2126_v17, %v2103_v18 }
0x147b   :  { %v2249_v21 = vadd.f32 %v2248_v15, %v2127_v13 }
0x147d   :  { %v2251_v22 = vadd.f32 %v2249_v21, %v5737_v47 }
0x147f   :  { %v2253_v25 = vsel %vm55_vm0, %v2251_v22, 0.0 }
0x1480   :  { %v2222_v60 = vpop.f32.mrf.mxu3  ;;  %2254 = vadd.xlane.f32.xlu1 %v2253_v25  ;;  %v4901_v25 = vld [vmem:[%s6661_s2 + $0x278] sm:$0xff] }
0x1481   :  { %v2246_v27 = vadd.f32 %v2245_v26, %v2222_v60  ;;  %v4900_v26 = vld [vmem:[%s6661_s2 + $0x270] sm:$0xff]  ;;  %2612 = vmatpush.msrb.mxu3 %v4901_v25  ;;  %v4907_v25 = vld [vmem:[%s6661_s2 + $0x2e8] sm:$0xff] }
0x1483   :  { %v2250_v20 = vadd.f32 %v2248_v15, %v2246_v27  ;;  %2613 = vmatpush.msrb.mxu3 %v4900_v26  ;;  %v4906_v26 = vld [vmem:[%s6661_s2 + $0x2e0] sm:$0xff] }
0x1485   :  { %v2252_v30 = vadd.f32 %v2250_v20, %v5760_v58  ;;  %v4899_v20 = vld [vmem:[%s6661_s2 + $0x268] sm:$0xff] }
0x1486   :  { %2614 = vmatpush.msrb.mxu3 %v4899_v20 }
0x1487   :  { %v2256_v24 = vsel %vm55_vm0, %v2252_v30, 0.0 }
0x1488   :  { %2257 = vadd.xlane.f32.xlu2 %v2256_v24  ;;  %1602 = vadd.xlane.f32.xlu1 %v1601_v62 }
0x1494   :  { %v2407_v47 = vpop.f32.mrf.mxu2  ;;  %v2430_v12 = vpop.f32.mrf.mxu3 }
0x1495   :  { %4892 = vmatpush.xpose.msk.msra.mxu0 %vm131_vm1, %v2407_v47  ;;  %v4898_v47 = vld [vmem:[%s6661_s2 + $0x260] sm:$0xff] }
0x1496   :  { %2615 = vmatpush.msrb.mxu3 %v4898_v47 }
0x1499   :  { %2504 = vmatpush.msrb.mxu0 %v2430_v12 }
0x14f3   :  { %v2255_v10 = vpop.xlane.xlu1 %2254 }
0x14f4   :  { %v2259_v37 = vmul.f32 %v2255_v10, %v5503_v9 }
0x14f6   :  { %v6023_v31 = vsub.f32 %v2251_v22, %v2259_v37 }
0x14f8   :  { %v2263_v32 = vmul.f32 %v6023_v31, %v6023_v31 }
0x14fa   :  { %v2265_v58 = vsel %vm55_vm0, %v2263_v32, 0.0 }
0x14fb   :  { %v2258_v33 = vpop.xlane.xlu2 %2257  ;;  %2266 = vadd.xlane.f32.xlu0 %v2265_v58  ;;  %v1603_v16 = vpop.xlane.xlu1 %1602 }
0x14fc   :  { %v2260_v34 = vmul.f32 %v2258_v33, %v5503_v9  ;;  %v1605_v35 = vmul.f32 %v1603_v16, %v5503_v9 }
0x14fe   :  { %v6030_v36 = vsub.f32 %v2252_v30, %v2260_v34  ;;  %v6032_v38 = vsub.f32 %v1597_v29, %v1605_v35 }
0x1500   :  { %v2264_v39 = vmul.f32 %v6030_v36, %v6030_v36  ;;  %v1609_v40 = vmul.f32 %v6032_v38, %v6032_v38 }
0x1502   :  { %v2268_v41 = vsel %vm55_vm0, %v2264_v39, 0.0  ;;  %v1613_v42 = vsel %vm55_vm0, %v1609_v40, 0.0 }
0x1503   :  { %2269 = vadd.xlane.f32.xlu1 %v2268_v41  ;;  %1614 = vadd.xlane.f32.xlu0 %v1613_v42 }
0x156e   :  { %v2267_v43 = vpop.xlane.xlu0 %2266 }
0x156f   :  { %v2271_v44 = vmul.f32 0.032258064, %v2267_v43 }
0x1571   :  { %5166 = vrsqrt.f32 %v2271_v44  ;;  %vm2280_vm9 = vcmp.eq.f32.partialorder %v2271_v44, inf  ;;  %v2283_v11 = vand.u32 2147483648, %v2271_v44  ;;  %vm2282_vm10 = vcmp.eq.f32.partialorder %v2271_v44, 0.0 }
0x1576   :  { %v1615_v45 = vpop.xlane.xlu0 %1614  ;;  %v2270_v46 = vpop.xlane.xlu1 %2269 }
0x1577   :  { %v5167_v48 = vpop.eup %5166  ;;  %v1617_v50 = vmul.f32 0.032258064, %v1615_v45  ;;  %v2272_v51 = vmul.f32 0.032258064, %v2270_v46  ;;  %v2329_v45 = vperm.slane %v6009_v1, 1 }
0x1578   :  { %v2274_v52 = vmul.f32 %v5167_v48, %v2271_v44 }
0x1579   :  { %5168 = vrsqrt.f32 %v1617_v50  ;;  %vm1637_vm11 = vcmp.eq.f32.partialorder %v1617_v50, inf  ;;  %v1640_v29 = vand.u32 2147483648, %v1617_v50  ;;  %vm1639_vm12 = vcmp.eq.f32.partialorder %v1617_v50, 0.0 }
0x157a   :  { %v2275_v55 = vmul.f32 %v5167_v48, %v2274_v52  ;;  %5170 = vrsqrt.f32 %v2272_v51  ;;  %vm2292_vm13 = vcmp.eq.f32.partialorder %v2272_v51, inf  ;;  %v2295_v62 = vand.u32 2147483648, %v2272_v51 }
0x157b   :  { %vm2294_vm14 = vcmp.eq.f32.partialorder %v2272_v51, 0.0  ;;  %v2332_v52 = vperm.slane %v6009_v1, 2 }
0x157c   :  { %v2276_v63 = vmul.f32 0.5, %v2275_v55 }
0x157e   :  { %v2277_v61 = vsub.f32 1.5, %v2276_v63 }
0x157f   :  { %v5169_v2 = vpop.eup %5168 }
0x1580   :  { %v5171_v19 = vpop.eup %5170  ;;  %v2278_v54 = vmul.f32 %v5167_v48, %v2277_v61  ;;  %v1631_v3 = vmul.f32 %v5169_v2, %v1617_v50 }
0x1581   :  { %v2286_v4 = vmul.f32 %v5171_v19, %v2272_v51 }
0x1582   :  { %v2279_v5 = vmul.f32 %v2278_v54, %v2271_v44  ;;  %v1632_v7 = vmul.f32 %v5169_v2, %v1631_v3 }
0x1583   :  { %v2287_v59 = vmul.f32 %v5171_v19, %v2286_v4 }
0x1584   :  { %v2281_v14 = vsel %vm2280_vm9, %v2271_v44, %v2279_v5  ;;  %v1633_v15 = vmul.f32 0.5, %v1632_v7 }
0x1585   :  { %v2284_v17 = vsel %vm2282_vm10, %v2283_v11, %v2281_v14  ;;  %v2288_v18 = vmul.f32 0.5, %v2287_v59 }
0x1586   :  { %v2297_v13 = vadd.f32 0.001, %v2284_v17  ;;  %v1634_v21 = vsub.f32 1.5, %v1633_v15 }
0x1587   :  { %v2289_v22 = vsub.f32 1.5, %v2288_v18 }
0x1588   :  { %5172 = vrcp.f32 %v2297_v13  ;;  %v1635_v23 = vmul.f32 %v5169_v2, %v1634_v21  ;;  %v2310_v35 = vand.u32 2147483648, %v2297_v13  ;;  %v2308_v40 = vand.u32 2147483647, %v2297_v13 }
0x1589   :  { %v2290_v60 = vmul.f32 %v5171_v19, %v2289_v22  ;;  %vm2304_vm3 = vweird.f32 %v2297_v13 }
0x158a   :  { %v1636_v27 = vmul.f32 %v1635_v23, %v1617_v50  ;;  %v2311_v43 = vor.u32 1.1754944e-38, %v2310_v35  ;;  %vm2309_vm5 = vcmp.eq.f32.partialorder %v2308_v40, 8.507059e+37  ;;  %v4903_v35 = vld [vmem:[%s6661_s2 + $0x2a8] sm:$0xff] }
0x158b   :  { %v2291_v30 = vmul.f32 %v2290_v60, %v2272_v51 }
0x158c   :  { %v1638_v24 = vsel %vm1637_vm11, %v1617_v50, %v1636_v27 }
0x158d   :  { %v1641_v12 = vsel %vm1639_vm12, %v1640_v29, %v1638_v24  ;;  %v2293_v10 = vsel %vm2292_vm13, %v2272_v51, %v2291_v30 }
0x158e   :  { %v5173_v37 = vpop.eup %5172  ;;  %v1643_v32 = vadd.f32 0.001, %v1641_v12  ;;  %v2296_v58 = vsel %vm2294_vm14, %v2295_v62, %v2293_v10 }
0x158f   :  { %v2300_v33 = vmul.f32 %v5173_v37, %v2297_v13  ;;  %v2298_v16 = vadd.f32 0.001, %v2296_v58  ;;  %vm2305_vm15 = vweird.f32 %v5173_v37 }
0x1590   :  { %5174 = vrcp.f32 %v1643_v32  ;;  %vm2306_vm4 = vmor %vm2304_vm3, %vm2305_vm15  ;;  %v1669_v56 = vand.u32 2147483648, %v1643_v32  ;;  %v1667_v63 = vand.u32 2147483647, %v1643_v32  ;;  %vm1663_vm9 = vweird.f32 %v1643_v32 }
0x1591   :  { %v2301_v34 = vsub.f32 1.0, %v2300_v33  ;;  %5176 = vrcp.f32 %v2298_v16  ;;  %v2324_v2 = vand.u32 2147483648, %v2298_v16  ;;  %v2322_v54 = vand.u32 2147483647, %v2298_v16 }
0x1592   :  { %v1670_v5 = vor.u32 1.1754944e-38, %v1669_v56  ;;  %vm2318_vm10 = vweird.f32 %v2298_v16  ;;  %vm1668_vm13 = vcmp.eq.f32.partialorder %v1667_v63, 8.507059e+37  ;;  %v4885_v56 = vld [vmem:[%s6662_s3 + $0x68] sm:$0xff] }
0x1593   :  { %v2302_v39 = vmul.f32 %v5173_v37, %v2301_v34  ;;  %v2325_v1 = vor.u32 1.1754944e-38, %v2324_v2  ;;  %vm2323_vm14 = vcmp.eq.f32.partialorder %v2322_v54, 8.507059e+37  ;;  %v4904_v34 = vld [vmem:[%s6661_s2 + $0x2b0] sm:$0xff] }
0x1595   :  { %v2303_v41 = vadd.f32 %v5173_v37, %v2302_v39  ;;  %v4902_v39 = vld [vmem:[%s6661_s2 + $0x2a0] sm:$0xff] }
0x1596   :  { %v5175_v42 = vpop.eup %5174 }
0x1597   :  { %v5177_v44 = vpop.eup %5176  ;;  %v1659_v46 = vmul.f32 %v5175_v42, %v1643_v32  ;;  %v2307_v48 = vsel %vm2306_vm4, %v5173_v37, %v2303_v41  ;;  %vm1664_vm7 = vweird.f32 %v5175_v42 }
0x1598   :  { %v2312_v50 = vsel %vm2309_vm5, %v2311_v43, %v2307_v48  ;;  %v2314_v51 = vmul.f32 %v5177_v44, %v2298_v16  ;;  %vm2319_vm8 = vweird.f32 %v5177_v44  ;;  %vm1665_vm11 = vmor %vm1663_vm9, %vm1664_vm7  ;;  %v4905_v16 = vld [vmem:[%s6661_s2 + $0x2b8] sm:$0xff] }
0x1599   :  { %v1660_v53 = vsub.f32 1.0, %v1659_v46  ;;  %v2327_v55 = vmul.f32 %v2312_v50, %v6023_v31  ;;  %vm2320_vm12 = vmor %vm2318_vm10, %vm2319_vm8 }
0x159a   :  { %v2315_v49 = vsub.f32 1.0, %v2314_v51 }
0x159b   :  { %v1661_v0 = vmul.f32 %v5175_v42, %v1660_v53  ;;  %v2330_v61 = vmul.f32 %v2329_v45, %v2327_v55 }
0x159c   :  { %v2316_v19 = vmul.f32 %v5177_v44, %v2315_v49 }
0x159d   :  { %v6067_v3 = vadd.f32 %v2332_v52, %v2330_v61  ;;  %v1662_v4 = vadd.f32 %v5175_v42, %v1661_v0 }
0x159e   :  { %v2317_v7 = vadd.f32 %v5177_v44, %v2316_v19 }
0x159f   :  { %4886 = vmatmul.msk.f32.vlgmr.msrb.gmra.mxu1 %vm55_vm0, %v6067_v3  ;;  %v1666_v31 = vsel %vm1665_vm11, %v5175_v42, %v1662_v4 }
0x15a0   :  { %v2321_v11 = vsel %vm2320_vm12, %v5177_v44, %v2317_v7  ;;  %v1671_v59 = vsel %vm1668_vm13, %v1670_v5, %v1666_v31  ;;  %v4884_v31 = vld [vmem:[%s6662_s3 + $0x60] sm:$0xff] }
0x15a1   :  { %v2326_v14 = vsel %vm2323_vm14, %v2325_v1, %v2321_v11  ;;  %v1673_v15 = vmul.f32 %v1671_v59, %v6032_v38  ;;  %v4908_v38 = vld [vmem:[%s6661_s2 + $0x2f0] sm:$0xff] }
0x15a2   :  { %v2328_v17 = vmul.f32 %v2326_v14, %v6030_v36 }
0x15a3   :  { %v1676_v18 = vmul.f32 %v1674_v6, %v1673_v15  ;;  %v4909_v6 = vld [vmem:[%s6661_s2 + $0x2f8] sm:$0xff] }
0x15a4   :  { %v2331_v13 = vmul.f32 %v2329_v45, %v2328_v17 }
0x15a5   :  { %v6077_v21 = vadd.f32 %v1677_v8, %v1676_v18 }
0x15a6   :  { %v6079_v22 = vadd.f32 %v2332_v52, %v2331_v13 }
0x15a7   :  { %4889 = vmatmul.msk.f32.gmra.mxu2 %vm55_vm0, %v6077_v21  ;;  %4891 = vmatmul.msk.f32.gmra.mxu3 %vm55_vm0, %v6077_v21 }
0x15a8   :  { %4887 = vmatmul.msk.f32.gmra.mxu1 %vm55_vm0, %v6079_v22 }
0x15af   :  { %4912 = vmatmul.msk.f32.vlgmr.msrb.gmra.mxu3 %vm55_vm0, %v6067_v3 }
0x15b7   :  { %4913 = vmatmul.msk.f32.gmra.mxu3 %vm55_vm0, %v6079_v22 }
0x161c   :  { %v2378_v57 = vpop.f32.mrf.mxu1 }
0x161d   :  { %4893 = vmatmul.msk.f32.vlgmr.msra.gmra.mxu0 %vm131_vm1, %v2378_v57 }
0x161e   :  { %2635 = vmatpush.msra.mxu0 %v4905_v16 }
0x1620   :  { %2636 = vmatpush.msra.mxu0 %v4904_v34 }
0x1622   :  { %2637 = vmatpush.msra.mxu0 %v4903_v35 }
0x1624   :  { %2638 = vmatpush.msra.mxu0 %v4902_v39 }
0x1625   :  { %v2381_v23 = vpop.f32.mrf.mxu1 }
0x162a   :  { %v2410_v8 = vpop.f32.mrf.mxu2  ;;  %v2433_v36 = vpop.f32.mrf.mxu3 }
0x162b   :  { %4895 = vmatpush.xpose.msk.msra.mxu1 %vm131_vm1, %v2410_v8  ;;  %2577 = vmatpush.msra.mxu2 %v2433_v36 }
0x162e   :  { %4896 = vmatmul.msk.f32.vlgmr.msra.gmra.mxu1 %vm131_vm1, %v2381_v23 }
0x162f   :  { %2658 = vmatpush.msrb.mxu1 %v4909_v6 }
0x1631   :  { %2659 = vmatpush.msrb.mxu1 %v4908_v38 }
0x1632   :  { %v2617_v15 = vpop.f32.mrf.mxu3 }
0x1633   :  { %2660 = vmatpush.msrb.mxu1 %v4907_v25 }
0x1635   :  { %2661 = vmatpush.msrb.mxu1 %v4906_v26 }
0x1636   :  { %4916 = vmatmul.msk.f32.vlgmr.msrb.gmra.mxu1 %vm55_vm0, %v6000_v28 }
0x163a   :  { %v2620_v13 = vpop.f32.mrf.mxu3 }
0x163e   :  { %4917 = vmatmul.msk.f32.gmra.mxu1 %vm55_vm0, %v6077_v21 }
0x169a   :  { %v2459_v60 = vpop.f32.mrf.mxu0 }
0x169b   :  { %v2462_v27 = vsel %vm158_vm2, %v2459_v60, -inf }
0x169c   :  { %2463 = vmax.xlane.f32.xlu2 %v2462_v27 }
0x16ab   :  { %v2532_v20 = vpop.f32.mrf.mxu1 }
0x16ac   :  { %v2535_v29 = vsel %vm158_vm2, %v2532_v20, -inf }
0x16ad   :  { %2536 = vmax.xlane.f32.xlu1 %v2535_v29 }
0x16b3   :  { %v2663_v59 = vpop.f32.mrf.mxu1 }
0x16bb   :  { %v2666_v17 = vpop.f32.mrf.mxu1 }
0x170f   :  { %v2464_v30 = vpop.xlane.xlu2 %2463 }
0x1710   :  { %v2465_v24 = vsub.f32 %v2459_v60, %v2464_v30 }
0x1712   :  { %v2466_v62 = vmul.f32 1.442695, %v2465_v24 }
0x1714   :  { %5178 = vpow2.f32 %v2466_v62 }
0x171a   :  { %v5179_v47 = vpop.eup %5178 }
0x171b   :  { %v2468_v12 = vsel %vm158_vm2, %v5179_v47, 0.0 }
0x171c   :  { %2469 = vadd.xlane.f32.xlu0 %v2468_v12 }
0x1720   :  { %v2537_v10 = vpop.xlane.xlu1 %2536 }
0x1721   :  { %v2538_v37 = vsub.f32 %v2532_v20, %v2537_v10 }
0x1723   :  { %v2539_v32 = vmul.f32 1.442695, %v2538_v37 }
0x1725   :  { %5180 = vpow2.f32 %v2539_v32 }
0x172b   :  { %v5181_v58 = vpop.eup %5180 }
0x172c   :  { %v2541_v33 = vsel %vm158_vm2, %v5181_v58, 0.0 }
0x172d   :  { %2542 = vadd.xlane.f32.xlu2 %v2541_v33 }
0x178f   :  { %v2470_v40 = vpop.xlane.xlu0 %2469 }
0x1790   :  { %5182 = vrcp.f32 %v2470_v40  ;;  %v2482_v44 = vand.u32 2147483648, %v2470_v40  ;;  %v2480_v46 = vand.u32 2147483647, %v2470_v40  ;;  %vm2476_vm3 = vweird.f32 %v2470_v40 }
0x1792   :  { %v2483_v50 = vor.u32 1.1754944e-38, %v2482_v44  ;;  %vm2481_vm5 = vcmp.eq.f32.partialorder %v2480_v46, 8.507059e+37 }
0x1796   :  { %v5183_v41 = vpop.eup %5182 }
0x1797   :  { %v2472_v42 = vmul.f32 %v5183_v41, %v2470_v40  ;;  %vm2477_vm15 = vweird.f32 %v5183_v41 }
0x1798   :  { %vm2478_vm4 = vmor %vm2476_vm3, %vm2477_vm15 }
0x1799   :  { %v2473_v43 = vsub.f32 1.0, %v2472_v42 }
0x179b   :  { %v2474_v45 = vmul.f32 %v5183_v41, %v2473_v43 }
0x179d   :  { %v2475_v48 = vadd.f32 %v5183_v41, %v2474_v45 }
0x179f   :  { %v2479_v51 = vsel %vm2478_vm4, %v5183_v41, %v2475_v48 }
0x17a0   :  { %v2484_v52 = vsel %vm2481_vm5, %v2483_v50, %v2479_v51  ;;  %v2543_v53 = vpop.xlane.xlu2 %2542 }
0x17a1   :  { %5184 = vrcp.f32 %v2543_v53  ;;  %v2485_v55 = vmul.f32 %v5179_v47, %v2484_v52  ;;  %v2555_v61 = vand.u32 2147483648, %v2543_v53  ;;  %v2553_v19 = vand.u32 2147483647, %v2543_v53  ;;  %v4911_v47 = vld [vmem:[%s6662_s3 + $0x78] sm:$0xff] }
0x17a2   :  { %vm2549_vm8 = vweird.f32 %v2543_v53  ;;  %2759 = vmatpush.msra.mxu3 %v4911_v47 }
0x17a3   :  { %4894 = vmatmul.msk.f32.vlgmr.msrb.gmra.mxu0 %vm158_vm2, %v2485_v55  ;;  %v2556_v4 = vor.u32 1.1754944e-38, %v2555_v61  ;;  %vm2554_vm10 = vcmp.eq.f32.partialorder %v2553_v19, 8.507059e+37  ;;  %v6161_v61 = vld [vmem:[%s6663_s4 + $0xc] sm:$0x7] }
0x17a4   :  { %2782 = vmatpush.msrb.mxu0 %v4885_v56 }
0x17a6   :  { %2783 = vmatpush.msrb.mxu0 %v4884_v31 }
0x17a7   :  { %v5185_v49 = vpop.eup %5184 }
0x17a8   :  { %v2545_v63 = vmul.f32 %v5185_v49, %v2543_v53  ;;  %vm2550_vm7 = vweird.f32 %v5185_v49 }
0x17a9   :  { %vm2551_vm9 = vmor %vm2549_vm8, %vm2550_vm7 }
0x17aa   :  { %v2546_v0 = vsub.f32 1.0, %v2545_v63 }
0x17ab   :  { %4914 = vmatmul.msk.f32.vlgmr.msra.gmra.mxu0 %vm55_vm0, %v6000_v28 }
0x17ac   :  { %v2547_v2 = vmul.f32 %v5185_v49, %v2546_v0  ;;  %2901 = vmatpush.msra.mxu0 %v4885_v56 }
0x17ae   :  { %v2548_v54 = vadd.f32 %v5185_v49, %v2547_v2  ;;  %2902 = vmatpush.msra.mxu0 %v4884_v31  ;;  %v2907_v2 = vperm.slane %v6161_v61, 0 }
0x17b0   :  { %v2552_v5 = vsel %vm2551_vm9, %v5185_v49, %v2548_v54  ;;  %v4910_v49 = vld [vmem:[%s6662_s3 + $0x70] sm:$0xff] }
0x17b1   :  { %v2557_v7 = vsel %vm2554_vm10, %v2556_v4, %v2552_v5  ;;  %2760 = vmatpush.msra.mxu3 %v4910_v49 }
0x17b2   :  { %v2558_v1 = vmul.f32 %v5181_v58, %v2557_v7 }
0x17b3   :  { %4915 = vmatmul.msk.f32.gmra.mxu0 %vm55_vm0, %v6077_v21  ;;  %2878 = vmatpush.msrb.mxu3 %v4911_v47 }
0x17b4   :  { %4897 = vmatmul.msk.f32.vlgmr.msra.gmra.mxu2 %vm158_vm2, %v2558_v1 }
0x17b5   :  { %2879 = vmatpush.msrb.mxu3 %v4910_v49 }
0x1820   :  { %v2506_v11 = vpop.f32.mrf.mxu0 }
0x1821   :  { %4922 = vmatmul.msk.f32.vlgmr.msrb.gmra.mxu0 %vm131_vm1, %v2506_v11 }
0x1828   :  { %v2640_v14 = vpop.f32.mrf.mxu0 }
0x1829   :  { %4918 = vmatpush.xpose.msk.msrb.mxu2 %vm131_vm1, %v2640_v14 }
0x182c   :  { %4919 = vmatmul.msk.f32.vlgmr.msrb.gmra.mxu2 %vm131_vm1, %v2617_v15 }
0x182d   :  { %2737 = vmatpush.msra.mxu2 %v2663_v59 }
0x182f   :  { %2856 = vmatpush.msrb.mxu2 %v2666_v17 }
0x1830   :  { %v2643_v18 = vpop.f32.mrf.mxu0 }
0x1831   :  { %4923 = vmatpush.xpose.msk.msra.mxu1 %vm131_vm1, %v2643_v18 }
0x1834   :  { %4924 = vmatmul.msk.f32.vlgmr.msra.gmra.mxu1 %vm131_vm1, %v2620_v13 }
0x1837   :  { %v2579_v57 = vpop.f32.mrf.mxu2 }
0x1838   :  { %4927 = vmatmul.msk.f32.vlgmr.msra.gmra.mxu0 %vm131_vm1, %v2579_v57 }
0x189e   :  { %v2785_v19 = vpop.f32.mrf.mxu0 }
0x18af   :  { %v2692_v6 = vpop.f32.mrf.mxu2 }
0x18b0   :  { %v2695_v8 = vsel %vm158_vm2, %v2692_v6, -inf }
0x18b1   :  { %v2811_v36 = vpop.f32.mrf.mxu1  ;;  %2696 = vmax.xlane.f32.xlu0 %v2695_v8 }
0x18b2   :  { %v2814_v38 = vsel %vm158_vm2, %v2811_v36, -inf }
0x18b3   :  { %2815 = vmax.xlane.f32.xlu2 %v2814_v38 }
0x18b5   :  { %v2904_v31 = vpop.f32.mrf.mxu0 }
0x1924   :  { %v2697_v23 = vpop.xlane.xlu0 %2696 }
0x1925   :  { %v2698_v25 = vsub.f32 %v2692_v6, %v2697_v23 }
0x1926   :  { %v2816_v26 = vpop.xlane.xlu2 %2815 }
0x1927   :  { %v2699_v60 = vmul.f32 1.442695, %v2698_v25  ;;  %v2817_v27 = vsub.f32 %v2811_v36, %v2816_v26 }
0x1929   :  { %5186 = vpow2.f32 %v2699_v60  ;;  %v2818_v20 = vmul.f32 1.442695, %v2817_v27  ;;  %v4932_v60 = vld [vmem:[%s6664_s5 + $0x58] sm:$0xff]  ;;  %v4931_v27 = vld [vmem:[%s6664_s5 + $0x50] sm:$0xff] }
0x192a   :  { %3024 = vmatpush.msrb.mxu1 %v4932_v60 }
0x192b   :  { %5188 = vpow2.f32 %v2818_v20  ;;  %v4930_v20 = vld [vmem:[%s6664_s5 + $0x48] sm:$0xff] }
0x192c   :  { %3025 = vmatpush.msrb.mxu1 %v4931_v27  ;;  %v4938_v27 = vld [vmem:[%s6666_s7 + $0x90] sm:$0xff] }
0x192e   :  { %3026 = vmatpush.msrb.mxu1 %v4930_v20  ;;  %v4937_v20 = vld [vmem:[%s6666_s7 + $0x88] sm:$0xff] }
0x192f   :  { %v5187_v29 = vpop.eup %5186 }
0x1930   :  { %v2701_v30 = vsel %vm158_vm2, %v5187_v29, 0.0 }
0x1931   :  { %v5189_v24 = vpop.eup %5188  ;;  %2702 = vadd.xlane.f32.xlu1 %v2701_v30 }
0x1932   :  { %v2820_v62 = vsel %vm158_vm2, %v5189_v24, 0.0 }
0x1933   :  { %2821 = vadd.xlane.f32.xlu0 %v2820_v62 }
0x19a4   :  { %v2703_v12 = vpop.xlane.xlu1 %2702 }
0x19a5   :  { %5190 = vrcp.f32 %v2703_v12  ;;  %v2715_v34 = vand.u32 2147483648, %v2703_v12  ;;  %v2713_v39 = vand.u32 2147483647, %v2703_v12  ;;  %vm2709_vm12 = vweird.f32 %v2703_v12 }
0x19a6   :  { %v2822_v10 = vpop.xlane.xlu0 %2821 }
0x19a7   :  { %5192 = vrcp.f32 %v2822_v10  ;;  %v2716_v43 = vor.u32 1.1754944e-38, %v2715_v34  ;;  %vm2714_vm14 = vcmp.eq.f32.partialorder %v2713_v39, 8.507059e+37  ;;  %v2834_v48 = vand.u32 2147483648, %v2822_v10 }
0x19a8   :  { %vm2828_vm3 = vweird.f32 %v2822_v10  ;;  %v2832_v51 = vand.u32 2147483647, %v2822_v10 }
0x19a9   :  { %v2835_v53 = vor.u32 1.1754944e-38, %v2834_v48  ;;  %v4941_v48 = vld [vmem:[%s6666_s7 + $0xa8] sm:$0xff] }
0x19aa   :  { %vm2833_vm5 = vcmp.eq.f32.partialorder %v2832_v51, 8.507059e+37 }
0x19ab   :  { %v5191_v37 = vpop.eup %5190 }
0x19ac   :  { %v2705_v32 = vmul.f32 %v5191_v37, %v2703_v12  ;;  %vm2710_vm11 = vweird.f32 %v5191_v37 }
0x19ad   :  { %v5193_v58 = vpop.eup %5192  ;;  %vm2711_vm13 = vmor %vm2709_vm12, %vm2710_vm11 }
0x19ae   :  { %v2706_v33 = vsub.f32 1.0, %v2705_v32  ;;  %v2824_v16 = vmul.f32 %v5193_v58, %v2822_v10  ;;  %vm2829_vm15 = vweird.f32 %v5193_v58 }
0x19af   :  { %vm2830_vm4 = vmor %vm2828_vm3, %vm2829_vm15 }
0x19b0   :  { %v2707_v35 = vmul.f32 %v5191_v37, %v2706_v33  ;;  %v2825_v40 = vsub.f32 1.0, %v2824_v16 }
0x19b2   :  { %v2708_v41 = vadd.f32 %v5191_v37, %v2707_v35  ;;  %v2826_v42 = vmul.f32 %v5193_v58, %v2825_v40 }
0x19b4   :  { %v2712_v44 = vsel %vm2711_vm13, %v5191_v37, %v2708_v41  ;;  %v2827_v45 = vadd.f32 %v5193_v58, %v2826_v42 }
0x19b5   :  { %v2717_v46 = vsel %vm2714_vm14, %v2716_v43, %v2712_v44  ;;  %v4943_v44 = vld [vmem:[%s6666_s7 + $0xb8] sm:$0xff] }
0x19b6   :  { %v2718_v50 = vmul.f32 %v5187_v29, %v2717_v46  ;;  %v2831_v52 = vsel %vm2830_vm4, %v5193_v58, %v2827_v45  ;;  %v4929_v29 = vld [vmem:[%s6664_s5 + $0x40] sm:$0xff]  ;;  %v4942_v45 = vld [vmem:[%s6666_s7 + $0xb0] sm:$0xff] }
0x19b7   :  { %v2836_v55 = vsel %vm2833_vm5, %v2835_v53, %v2831_v52  ;;  %3027 = vmatpush.msrb.mxu1 %v4929_v29  ;;  %v4940_v52 = vld [vmem:[%s6666_s7 + $0xa0] sm:$0xff] }
0x19b8   :  { %4920 = vmatmul.msk.f32.vlgmr.msra.gmra.mxu2 %vm158_vm2, %v2718_v50  ;;  %v2837_v56 = vmul.f32 %v5189_v24, %v2836_v55  ;;  %v4936_v29 = vld [vmem:[%s6666_s7 + $0x80] sm:$0xff] }
0x19b9   :  { %3061 = vmatpush.msra.mxu2 %v4943_v44 }
0x19bb   :  { %3062 = vmatpush.msra.mxu2 %v4942_v45 }
0x19bd   :  { %3063 = vmatpush.msra.mxu2 %v4941_v48 }
0x19bf   :  { %3064 = vmatpush.msra.mxu2 %v4940_v52 }
0x19c0   :  { %4925 = vmatmul.msk.f32.vlgmr.msrb.gmra.mxu2 %vm158_vm2, %v2837_v56  ;;  %v4939_v56 = vld [vmem:[%s6666_s7 + $0x98] sm:$0xff] }
0x19c1   :  { %3065 = vmatpush.msra.mxu2 %v4939_v56 }
0x19c3   :  { %3066 = vmatpush.msra.mxu2 %v4938_v27 }
0x19c5   :  { %3067 = vmatpush.msra.mxu2 %v4937_v20 }
0x19c7   :  { %3068 = vmatpush.msra.mxu2 %v4936_v29  ;;  %v4980_v29 = vld [vmem:[%s6661_s2 + $0x378] sm:$0xff] }
0x1a3b   :  { %v2739_v63 = vpop.f32.mrf.mxu2 }
0x1a3c   :  { %4921 = vmatmul.msk.f32.vlgmr.msra.gmra.mxu3 %vm131_vm1, %v2739_v63 }
0x1a43   :  { %v2858_v0 = vpop.f32.mrf.mxu2 }
0x1a44   :  { %4926 = vmatmul.msk.f32.vlgmr.msrb.gmra.mxu3 %vm131_vm1, %v2858_v0 }
0x1abf   :  { %v2762_v54 = vpop.f32.mrf.mxu3 }
0x1ac0   :  { %v2786_v4 = vadd.f32 %v2785_v19, %v2762_v54 }
0x1ac2   :  { %v2908_v5 = vadd.f32 %v2907_v2, %v2786_v4 }
0x1ac4   :  { %v2910_v7 = vadd.f32 %v2908_v5, %v6067_v3 }
0x1ac6   :  { %v2912_v1 = vsel %vm55_vm0, %v2910_v7, 0.0 }
0x1ac7   :  { %2913 = vadd.xlane.f32.xlu1 %v2912_v1  ;;  %v2881_v11 = vpop.f32.mrf.mxu3 }
0x1ac8   :  { %v2905_v59 = vadd.f32 %v2904_v31, %v2881_v11  ;;  %v2988_v31 = vperm.slane %v6161_v61, 1 }
0x1aca   :  { %v2909_v14 = vadd.f32 %v2907_v2, %v2905_v59 }
0x1acc   :  { %v2911_v15 = vadd.f32 %v2909_v14, %v6079_v22 }
0x1ace   :  { %v2915_v17 = vsel %vm55_vm0, %v2911_v15, 0.0 }
0x1acf   :  { %2916 = vadd.xlane.f32.xlu0 %v2915_v17 }
0x1b3a   :  { %v2914_v18 = vpop.xlane.xlu1 %2913 }
0x1b3b   :  { %v2918_v13 = vmul.f32 %v2914_v18, %v5503_v9 }
0x1b3d   :  { %v6169_v57 = vsub.f32 %v2910_v7, %v2918_v13 }
0x1b3f   :  { %v2922_v3 = vmul.f32 %v6169_v57, %v6169_v57 }
0x1b41   :  { %v2924_v6 = vsel %vm55_vm0, %v2922_v3, 0.0 }
0x1b42   :  { %2925 = vadd.xlane.f32.xlu2 %v2924_v6  ;;  %v2917_v8 = vpop.xlane.xlu0 %2916 }
0x1b43   :  { %v2919_v36 = vmul.f32 %v2917_v8, %v5503_v9 }
0x1b45   :  { %v6175_v38 = vsub.f32 %v2911_v15, %v2919_v36  ;;  %v2991_v15 = vperm.slane %v6161_v61, 2 }
0x1b47   :  { %v2923_v22 = vmul.f32 %v6175_v38, %v6175_v38 }
0x1b49   :  { %v2927_v23 = vsel %vm55_vm0, %v2923_v22, 0.0 }
0x1b4a   :  { %2928 = vadd.xlane.f32.xlu1 %v2927_v23 }
0x1bb5   :  { %v2926_v25 = vpop.xlane.xlu2 %2925 }
0x1bb6   :  { %v2930_v26 = vmul.f32 0.032258064, %v2926_v25 }
0x1bb8   :  { %5194 = vrsqrt.f32 %v2930_v26  ;;  %vm2939_vm7 = vcmp.eq.f32.partialorder %v2930_v26, inf  ;;  %v2942_v35 = vand.u32 2147483648, %v2930_v26  ;;  %vm2941_vm8 = vcmp.eq.f32.partialorder %v2930_v26, 0.0 }
0x1bbd   :  { %v2929_v30 = vpop.xlane.xlu1 %2928 }
0x1bbe   :  { %v5195_v24 = vpop.eup %5194  ;;  %v2931_v62 = vmul.f32 0.032258064, %v2929_v30 }
0x1bbf   :  { %v2933_v47 = vmul.f32 %v5195_v24, %v2930_v26 }
0x1bc0   :  { %5196 = vrsqrt.f32 %v2931_v62  ;;  %vm2951_vm9 = vcmp.eq.f32.partialorder %v2931_v62, inf  ;;  %v2954_v51 = vand.u32 2147483648, %v2931_v62  ;;  %vm2953_vm10 = vcmp.eq.f32.partialorder %v2931_v62, 0.0 }
0x1bc1   :  { %v2934_v12 = vmul.f32 %v5195_v24, %v2933_v47 }
0x1bc3   :  { %v2935_v10 = vmul.f32 0.5, %v2934_v12 }
0x1bc5   :  { %v2936_v37 = vsub.f32 1.5, %v2935_v10 }
0x1bc6   :  { %v5197_v32 = vpop.eup %5196 }
0x1bc7   :  { %v2937_v58 = vmul.f32 %v5195_v24, %v2936_v37  ;;  %v2945_v33 = vmul.f32 %v5197_v32, %v2931_v62  ;;  %v6230_v37 = vld [vmem:[%s6667_s8 + $0x8] sm:$0x7] }
0x1bc9   :  { %v2938_v16 = vmul.f32 %v2937_v58, %v2930_v26  ;;  %v2946_v34 = vmul.f32 %v5197_v32, %v2945_v33 }
0x1bcb   :  { %v2940_v39 = vsel %vm2939_vm7, %v2930_v26, %v2938_v16  ;;  %v2947_v40 = vmul.f32 0.5, %v2946_v34 }
0x1bcc   :  { %v2943_v41 = vsel %vm2941_vm8, %v2942_v35, %v2940_v39 }
0x1bcd   :  { %v2956_v42 = vadd.f32 0.001, %v2943_v41  ;;  %v2948_v43 = vsub.f32 1.5, %v2947_v40 }
0x1bcf   :  { %5198 = vrcp.f32 %v2956_v42  ;;  %v2949_v46 = vmul.f32 %v5197_v32, %v2948_v43  ;;  %v2969_v19 = vand.u32 2147483648, %v2956_v42  ;;  %v2967_v4 = vand.u32 2147483647, %v2956_v42 }
0x1bd0   :  { %vm2963_vm12 = vweird.f32 %v2956_v42  ;;  %v3046_v32 = vperm.slane %v6230_v37, 0 }
0x1bd1   :  { %v2950_v50 = vmul.f32 %v2949_v46, %v2931_v62  ;;  %v2970_v1 = vor.u32 1.1754944e-38, %v2969_v19  ;;  %vm2968_vm14 = vcmp.eq.f32.partialorder %v2967_v4, 8.507059e+37  ;;  %v4954_v19 = vld [vmem:[%s6661_s2 + $0x358] sm:$0xff] }
0x1bd2   :  { %3221 = vmatpush.msrb.mxu0 %v4954_v19 }
0x1bd3   :  { %v2952_v53 = vsel %vm2951_vm9, %v2931_v62, %v2950_v50 }
0x1bd4   :  { %v2955_v55 = vsel %vm2953_vm10, %v2954_v51, %v2952_v53 }
0x1bd5   :  { %v5199_v49 = vpop.eup %5198  ;;  %v2957_v63 = vadd.f32 0.001, %v2955_v55 }
0x1bd6   :  { %v2959_v0 = vmul.f32 %v5199_v49, %v2956_v42  ;;  %vm2964_vm11 = vweird.f32 %v5199_v49 }
0x1bd7   :  { %5200 = vrcp.f32 %v2957_v63  ;;  %vm2965_vm13 = vmor %vm2963_vm12, %vm2964_vm11  ;;  %v2983_v13 = vand.u32 2147483648, %v2957_v63  ;;  %v2981_v8 = vand.u32 2147483647, %v2957_v63  ;;  %vm2977_vm3 = vweird.f32 %v2957_v63 }
0x1bd8   :  { %v2960_v2 = vsub.f32 1.0, %v2959_v0 }
0x1bd9   :  { %v2984_v23 = vor.u32 1.1754944e-38, %v2983_v13  ;;  %vm2982_vm5 = vcmp.eq.f32.partialorder %v2981_v8, 8.507059e+37  ;;  %v4955_v13 = vld [vmem:[%s6661_s2 + $0x380] sm:$0xff] }
0x1bda   :  { %v2961_v54 = vmul.f32 %v5199_v49, %v2960_v2  ;;  %v4950_v2 = vld [vmem:[%s6661_s2 + $0x318] sm:$0xff] }
0x1bdb   :  { %3198 = vmatpush.msra.mxu3 %v4950_v2 }
0x1bdc   :  { %v2962_v5 = vadd.f32 %v5199_v49, %v2961_v54  ;;  %v4958_v54 = vld [vmem:[%s6661_s2 + $0x398] sm:$0xff] }
0x1bdd   :  { %v5201_v7 = vpop.eup %5200  ;;  %3244 = vmatpush.msra.mxu1 %v4958_v54 }
0x1bde   :  { %v2966_v11 = vsel %vm2965_vm13, %v5199_v49, %v2962_v5  ;;  %v2973_v59 = vmul.f32 %v5201_v7, %v2957_v63  ;;  %vm2978_vm15 = vweird.f32 %v5201_v7  ;;  %v4949_v5 = vld [vmem:[%s6661_s2 + $0x310] sm:$0xff] }
0x1bdf   :  { %v2971_v14 = vsel %vm2968_vm14, %v2970_v1, %v2966_v11  ;;  %vm2979_vm4 = vmor %vm2977_vm3, %vm2978_vm15  ;;  %v4957_v1 = vld [vmem:[%s6661_s2 + $0x390] sm:$0xff]  ;;  %v4952_v11 = vld [vmem:[%s6661_s2 + $0x348] sm:$0xff]  ;;  %3199 = vmatpush.msra.mxu3 %v4949_v5 }
0x1be0   :  { %v2986_v17 = vmul.f32 %v2971_v14, %v6169_v57  ;;  %v2974_v18 = vsub.f32 1.0, %v2973_v59  ;;  %v4956_v14 = vld [vmem:[%s6661_s2 + $0x388] sm:$0xff]  ;;  %3245 = vmatpush.msra.mxu1 %v4957_v1 }
0x1be2   :  { %v2989_v3 = vmul.f32 %v2988_v31, %v2986_v17  ;;  %v2975_v6 = vmul.f32 %v5201_v7, %v2974_v18  ;;  %v4951_v17 = vld [vmem:[%s6661_s2 + $0x340] sm:$0xff]  ;;  %3246 = vmatpush.msra.mxu1 %v4956_v14  ;;  %v4983_v14 = vld [vmem:[%s6661_s2 + $0x3b0] sm:$0xff] }
0x1be4   :  { %v2992_v36 = vadd.f32 %v2991_v15, %v2989_v3  ;;  %v2976_v22 = vadd.f32 %v5201_v7, %v2975_v6  ;;  %3247 = vmatpush.msra.mxu1 %v4955_v13 }
0x1be6   :  { %4934 = vmatmul.msk.f32.vlgmr.msrb.gmra.mxu1 %vm55_vm0, %v2992_v36  ;;  %v2980_v25 = vsel %vm2979_vm4, %v5201_v7, %v2976_v22  ;;  %v4953_v7 = vld [vmem:[%s6661_s2 + $0x350] sm:$0xff] }
0x1be7   :  { %v2985_v26 = vsel %vm2982_vm5, %v2984_v23, %v2980_v25  ;;  %3222 = vmatpush.msrb.mxu0 %v4953_v7  ;;  %3454 = vmatpush.msrb.mxu1 %v4980_v29 }
0x1be8   :  { %v2987_v61 = vmul.f32 %v2985_v26, %v6175_v38  ;;  %v5086_v38 = vld [vmem:[%s6665_s6 + $0x2] ss:$0 sm:$0xff] }
0x1be9   :  { %3223 = vmatpush.msrb.mxu0 %v4952_v11 }
0x1bea   :  { %v2990_v60 = vmul.f32 %v2988_v31, %v2987_v61  ;;  %v4948_v31 = vld [vmem:[%s6661_s2 + $0x308] sm:$0xff] }
0x1beb   :  { %3200 = vmatpush.msra.mxu3 %v4948_v31  ;;  %3224 = vmatpush.msrb.mxu0 %v4951_v17  ;;  %v4984_v31 = vld [vmem:[%s6661_s2 + $0x3b8] sm:$0xff]  ;;  %v4981_v17 = vld [vmem:[%s6661_s2 + $0x3a0] sm:$0xff] }
0x1bec   :  { %v2993_v57 = vadd.f32 %v2991_v15, %v2990_v60  ;;  %v4947_v15 = vld [vmem:[%s6661_s2 + $0x300] sm:$0xff] }
0x1bed   :  { %3201 = vmatpush.msra.mxu3 %v4947_v15  ;;  %v4982_v15 = vld [vmem:[%s6661_s2 + $0x3a8] sm:$0xff] }
0x1bee   :  { %4935 = vmatmul.msk.f32.gmra.mxu1 %vm55_vm0, %v2993_v57 }
0x1c63   :  { %v3029_v30 = vpop.f32.mrf.mxu1 }
0x1c64   :  { %v3030_v24 = vadd.f32 %v5086_v38, %v3029_v30 }
0x1c66   :  { %v3035_v62 = vmax.f32 %v3030_v24, 0.0  ;;  %v4978_v24 = vld [vmem:[%s6661_s2 + $0x368] sm:$0xff] }
0x1c68   :  { %4944 = vmatmul.msk.f32.vlgmr.msra.gmra.mxu2 %vm747_vm6, %v3035_v62 }
0x1c6b   :  { %v3032_v47 = vpop.f32.mrf.mxu1 }
0x1c6c   :  { %v3033_v12 = vadd.f32 %v5086_v38, %v3032_v47  ;;  %v4979_v38 = vld [vmem:[%s6661_s2 + $0x370] sm:$0xff] }
0x1c6d   :  { %3455 = vmatpush.msrb.mxu1 %v4979_v38 }
0x1c6e   :  { %v3036_v10 = vmax.f32 %v3033_v12, 0.0  ;;  %v4977_v12 = vld [vmem:[%s6661_s2 + $0x360] sm:$0xff] }
0x1c6f   :  { %3456 = vmatpush.msrb.mxu1 %v4978_v24  ;;  %v4975_v24 = vld [vmem:[%s6661_s2 + $0x330] sm:$0xff] }
0x1c70   :  { %4945 = vmatmul.msk.f32.gmra.mxu2 %vm747_vm6, %v3036_v10 }
0x1c71   :  { %3457 = vmatpush.msrb.mxu1 %v4977_v12 }
0x1ceb   :  { %v3070_v58 = vpop.f32.mrf.mxu2 }
0x1cec   :  { %v3071_v33 = vadd.f32 %v3070_v58, %v3046_v32 }
0x1cee   :  { %v3076_v16 = vadd.f32 %v3071_v33, %v2992_v36 }
0x1cf0   :  { %v3078_v34 = vsel %vm55_vm0, %v3076_v16, 0.0 }
0x1cf1   :  { %3079 = vadd.xlane.f32.xlu2 %v3078_v34 }
0x1cf3   :  { %v3073_v35 = vpop.f32.mrf.mxu2 }
0x1cf4   :  { %v3074_v39 = vadd.f32 %v3073_v35, %v3046_v32 }
0x1cf6   :  { %v3077_v40 = vadd.f32 %v3074_v39, %v2993_v57 }
0x1cf8   :  { %v3081_v41 = vsel %vm55_vm0, %v3077_v40, 0.0 }
0x1cf9   :  { %3082 = vadd.xlane.f32.xlu1 %v3081_v41 }
0x1d64   :  { %v3080_v42 = vpop.xlane.xlu2 %3079 }
0x1d65   :  { %v3084_v43 = vmul.f32 %v3080_v42, %v5503_v9 }
0x1d67   :  { %v6236_v44 = vsub.f32 %v3076_v16, %v3084_v43  ;;  %v3154_v43 = vperm.slane %v6230_v37, 1 }
0x1d69   :  { %v3088_v45 = vmul.f32 %v6236_v44, %v6236_v44 }
0x1d6b   :  { %v3090_v46 = vsel %vm55_vm0, %v3088_v45, 0.0 }
0x1d6c   :  { %v3083_v48 = vpop.xlane.xlu1 %3082  ;;  %3091 = vadd.xlane.f32.xlu0 %v3090_v46 }
0x1d6d   :  { %v3085_v50 = vmul.f32 %v3083_v48, %v5503_v9 }
0x1d6f   :  { %v6242_v51 = vsub.f32 %v3077_v40, %v3085_v50  ;;  %v3157_v50 = vperm.slane %v6230_v37, 2 }
0x1d71   :  { %v3089_v52 = vmul.f32 %v6242_v51, %v6242_v51 }
0x1d73   :  { %v3093_v53 = vsel %vm55_vm0, %v3089_v52, 0.0 }
0x1d74   :  { %3094 = vadd.xlane.f32.xlu2 %v3093_v53 }
0x1ddf   :  { %v3092_v55 = vpop.xlane.xlu0 %3091 }
0x1de0   :  { %v3096_v56 = vmul.f32 0.032258064, %v3092_v55 }
0x1de2   :  { %5202 = vrsqrt.f32 %v3096_v56  ;;  %vm3105_vm7 = vcmp.eq.f32.partialorder %v3096_v56, inf  ;;  %v3108_v25 = vand.u32 2147483648, %v3096_v56  ;;  %vm3107_vm8 = vcmp.eq.f32.partialorder %v3096_v56, 0.0 }
0x1de7   :  { %v3095_v49 = vpop.xlane.xlu2 %3094 }
0x1de8   :  { %v5203_v63 = vpop.eup %5202  ;;  %v3097_v0 = vmul.f32 0.032258064, %v3095_v49 }
0x1de9   :  { %v3099_v4 = vmul.f32 %v5203_v63, %v3096_v56 }
0x1dea   :  { %5204 = vrsqrt.f32 %v3097_v0  ;;  %vm3117_vm9 = vcmp.eq.f32.partialorder %v3097_v0, inf  ;;  %v3120_v62 = vand.u32 2147483648, %v3097_v0  ;;  %vm3119_vm10 = vcmp.eq.f32.partialorder %v3097_v0, 0.0 }
0x1deb   :  { %v3100_v59 = vmul.f32 %v5203_v63, %v3099_v4 }
0x1ded   :  { %v3101_v18 = vmul.f32 0.5, %v3100_v59 }
0x1def   :  { %v3102_v3 = vsub.f32 1.5, %v3101_v18 }
0x1df0   :  { %v5205_v6 = vpop.eup %5204 }
0x1df1   :  { %v3103_v8 = vmul.f32 %v5203_v63, %v3102_v3  ;;  %v3111_v36 = vmul.f32 %v5205_v6, %v3097_v0 }
0x1df3   :  { %v3104_v22 = vmul.f32 %v3103_v8, %v3096_v56  ;;  %v3112_v23 = vmul.f32 %v5205_v6, %v3111_v36 }
0x1df5   :  { %v3106_v26 = vsel %vm3105_vm7, %v3096_v56, %v3104_v22  ;;  %v3113_v61 = vmul.f32 0.5, %v3112_v23 }
0x1df6   :  { %v3109_v60 = vsel %vm3107_vm8, %v3108_v25, %v3106_v26 }
0x1df7   :  { %v3122_v57 = vadd.f32 0.001, %v3109_v60  ;;  %v3114_v27 = vsub.f32 1.5, %v3113_v61 }
0x1df9   :  { %5206 = vrcp.f32 %v3122_v57  ;;  %v3115_v20 = vmul.f32 %v5205_v6, %v3114_v27  ;;  %v3135_v34 = vand.u32 2147483648, %v3122_v57  ;;  %v3133_v39 = vand.u32 2147483647, %v3122_v57 }
0x1dfa   :  { %vm3129_vm12 = vweird.f32 %v3122_v57 }
0x1dfb   :  { %v3116_v30 = vmul.f32 %v3115_v20, %v3097_v0  ;;  %v3136_v42 = vor.u32 1.1754944e-38, %v3135_v34  ;;  %vm3134_vm14 = vcmp.eq.f32.partialorder %v3133_v39, 8.507059e+37 }
0x1dfd   :  { %v3118_v47 = vsel %vm3117_vm9, %v3097_v0, %v3116_v30  ;;  %v4976_v30 = vld [vmem:[%s6661_s2 + $0x338] sm:$0xff] }
0x1dfe   :  { %v3121_v10 = vsel %vm3119_vm10, %v3120_v62, %v3118_v47  ;;  %v4974_v62 = vld [vmem:[%s6661_s2 + $0x328] sm:$0xff]  ;;  %v4973_v47 = vld [vmem:[%s6661_s2 + $0x320] sm:$0xff] }
0x1dff   :  { %v5207_v32 = vpop.eup %5206  ;;  %v3123_v58 = vadd.f32 0.001, %v3121_v10  ;;  %v4960_v10 = vld [vmem:[%s6662_s3 + $0x88] sm:$0xff] }
0x1e00   :  { %v3125_v33 = vmul.f32 %v5207_v32, %v3122_v57  ;;  %vm3130_vm11 = vweird.f32 %v5207_v32 }
0x1e01   :  { %5208 = vrcp.f32 %v3123_v58  ;;  %vm3131_vm13 = vmor %vm3129_vm12, %vm3130_vm11  ;;  %v3149_v55 = vand.u32 2147483648, %v3123_v58  ;;  %v3147_v63 = vand.u32 2147483647, %v3123_v58  ;;  %vm3143_vm3 = vweird.f32 %v3123_v58 }
0x1e02   :  { %v3126_v16 = vsub.f32 1.0, %v3125_v33 }
0x1e03   :  { %v3150_v19 = vor.u32 1.1754944e-38, %v3149_v55  ;;  %vm3148_vm5 = vcmp.eq.f32.partialorder %v3147_v63, 8.507059e+37 }
0x1e04   :  { %v3127_v35 = vmul.f32 %v5207_v32, %v3126_v16 }
0x1e06   :  { %v3128_v40 = vadd.f32 %v5207_v32, %v3127_v35 }
0x1e07   :  { %v5209_v41 = vpop.eup %5208 }
0x1e08   :  { %v3139_v45 = vmul.f32 %v5209_v41, %v3123_v58  ;;  %v3132_v46 = vsel %vm3131_vm13, %v5207_v32, %v3128_v40  ;;  %vm3144_vm15 = vweird.f32 %v5209_v41 }
0x1e09   :  { %v3137_v48 = vsel %vm3134_vm14, %v3136_v42, %v3132_v46  ;;  %vm3145_vm4 = vmor %vm3143_vm3, %vm3144_vm15 }
0x1e0a   :  { %v3152_v52 = vmul.f32 %v3137_v48, %v6236_v44  ;;  %v3140_v53 = vsub.f32 1.0, %v3139_v45 }
0x1e0c   :  { %v3155_v56 = vmul.f32 %v3154_v43, %v3152_v52  ;;  %v3141_v49 = vmul.f32 %v5209_v41, %v3140_v53 }
0x1e0e   :  { %v6298_v0 = vadd.f32 %v3157_v50, %v3155_v56  ;;  %v3142_v2 = vadd.f32 %v5209_v41, %v3141_v49 }
0x1e10   :  { %4961 = vmatmul.msk.f32.vlgmr.msra.gmra.mxu3 %vm55_vm0, %v6298_v0  ;;  %4963 = vmatmul.msk.f32.vlgmr.msrb.gmra.mxu0 %vm55_vm0, %v6298_v0  ;;  %v3146_v37 = vsel %vm3145_vm4, %v5209_v41, %v3142_v2 }
0x1e11   :  { %4965 = vmatmul.msk.f32.vlgmr.msra.gmra.mxu1 %vm55_vm0, %v6298_v0  ;;  %v3151_v44 = vsel %vm3148_vm5, %v3150_v19, %v3146_v37 }
0x1e12   :  { %v3153_v54 = vmul.f32 %v3151_v44, %v6242_v51  ;;  %3601 = vmatpush.msra.mxu1 %v4960_v10  ;;  %v4959_v44 = vld [vmem:[%s6662_s3 + $0x80] sm:$0xff] }
0x1e14   :  { %v3156_v4 = vmul.f32 %v3154_v43, %v3153_v54  ;;  %3602 = vmatpush.msra.mxu1 %v4959_v44 }
0x1e16   :  { %v6307_v5 = vadd.f32 %v3157_v50, %v3156_v4 }
0x1e18   :  { %4962 = vmatmul.msk.f32.gmra.mxu3 %vm55_vm0, %v6307_v5  ;;  %4964 = vmatmul.msk.f32.gmra.mxu0 %vm55_vm0, %v6307_v5 }
0x1e19   :  { %4966 = vmatmul.msk.f32.gmra.mxu1 %vm55_vm0, %v6307_v5 }
0x1e21   :  { %4989 = vmatmul.msk.f32.vlgmr.msrb.gmra.mxu1 %vm55_vm0, %v6298_v0 }
0x1e22   :  { %3720 = vmatpush.msrb.mxu1 %v4960_v10 }
0x1e24   :  { %3721 = vmatpush.msrb.mxu1 %v4959_v44 }
0x1e29   :  { %4990 = vmatmul.msk.f32.gmra.mxu1 %vm55_vm0, %v6307_v5 }
0x1e8d   :  { %v3226_v7 = vpop.f32.mrf.mxu0 }
0x1e8e   :  { %v3249_v51 = vpop.f32.mrf.mxu1  ;;  %4967 = vmatpush.xpose.msk.msrb.mxu3 %vm131_vm1, %v3226_v7 }
0x1e8f   :  { %3323 = vmatpush.msra.mxu0 %v3249_v51 }
0x1e91   :  { %3431 = vmatpush.msrb.mxu0 %v4976_v30 }
0x1e93   :  { %v3203_v1 = vpop.f32.mrf.mxu3  ;;  %3432 = vmatpush.msrb.mxu0 %v4975_v24 }
0x1e94   :  { %4968 = vmatmul.msk.f32.vlgmr.msrb.gmra.mxu3 %vm131_vm1, %v3203_v1 }
0x1e95   :  { %v3229_v11 = vpop.f32.mrf.mxu0  ;;  %3433 = vmatpush.msrb.mxu0 %v4974_v62 }
0x1e96   :  { %v3252_v59 = vpop.f32.mrf.mxu1  ;;  %4970 = vmatpush.xpose.msk.msrb.mxu2 %vm131_vm1, %v3229_v11 }
0x1e97   :  { %3396 = vmatpush.msra.mxu3 %v3252_v59  ;;  %3434 = vmatpush.msrb.mxu0 %v4973_v47 }
0x1e9a   :  { %3477 = vmatpush.msra.mxu2 %v4984_v31 }
0x1e9b   :  { %v3206_v18 = vpop.f32.mrf.mxu3 }
0x1e9c   :  { %3478 = vmatpush.msra.mxu2 %v4983_v14 }
0x1e9d   :  { %4971 = vmatmul.msk.f32.vlgmr.msrb.gmra.mxu2 %vm131_vm1, %v3206_v18 }
0x1e9e   :  { %3479 = vmatpush.msra.mxu2 %v4982_v15  ;;  %v3459_v13 = vpop.f32.mrf.mxu1 }
0x1e9f   :  { %4993 = vmatpush.xpose.msk.msrb.mxu3 %vm131_vm1, %v3459_v13 }
0x1ea0   :  { %3480 = vmatpush.msra.mxu2 %v4981_v17 }
0x1ea5   :  { %4991 = vmatmul.msk.f32.vlgmr.msra.gmra.mxu2 %vm55_vm0, %v6298_v0 }
0x1ea6   :  { %v3462_v3 = vpop.f32.mrf.mxu1 }
0x1ea7   :  { %4998 = vmatpush.xpose.msk.msrb.mxu2 %vm131_vm1, %v3462_v3 }
0x1ead   :  { %4992 = vmatmul.msk.f32.gmra.mxu2 %vm55_vm0, %v6307_v5 }
0x1f17   :  { %v3278_v6 = vpop.f32.mrf.mxu3 }
0x1f18   :  { %v3281_v8 = vsel %vm158_vm2, %v3278_v6, -inf }
0x1f19   :  { %3282 = vmax.xlane.f32.xlu0 %v3281_v8 }
0x1f20   :  { %v3351_v36 = vpop.f32.mrf.mxu2 }
0x1f21   :  { %v3354_v22 = vsel %vm158_vm2, %v3351_v36, -inf }
0x1f22   :  { %3355 = vmax.xlane.f32.xlu2 %v3354_v22 }
0x1f28   :  { %v3482_v37 = vpop.f32.mrf.mxu2 }
0x1f30   :  { %v3485_v7 = vpop.f32.mrf.mxu2 }
0x1f8c   :  { %v3283_v23 = vpop.xlane.xlu0 %3282 }
0x1f8d   :  { %v3284_v25 = vsub.f32 %v3278_v6, %v3283_v23 }
0x1f8f   :  { %v3285_v26 = vmul.f32 1.442695, %v3284_v25 }
0x1f91   :  { %5210 = vpow2.f32 %v3285_v26 }
0x1f95   :  { %v3356_v61 = vpop.xlane.xlu2 %3355 }
0x1f96   :  { %v3357_v60 = vsub.f32 %v3351_v36, %v3356_v61 }
0x1f97   :  { %v5211_v57 = vpop.eup %5210 }
0x1f98   :  { %v3358_v27 = vmul.f32 1.442695, %v3357_v60  ;;  %v3287_v20 = vsel %vm158_vm2, %v5211_v57, 0.0 }
0x1f99   :  { %3288 = vadd.xlane.f32.xlu1 %v3287_v20 }
0x1f9a   :  { %5212 = vpow2.f32 %v3358_v27 }
0x1fa0   :  { %v5213_v29 = vpop.eup %5212 }
0x1fa1   :  { %v3360_v38 = vsel %vm158_vm2, %v5213_v29, 0.0 }
0x1fa2   :  { %3361 = vadd.xlane.f32.xlu0 %v3360_v38  ;;  %v4986_v38 = vld [vmem:[%s6662_s3 + $0x98] sm:$0xff] }
0x200c   :  { %v3289_v12 = vpop.xlane.xlu1 %3288 }
0x200d   :  { %5214 = vrcp.f32 %v3289_v12  ;;  %v3301_v34 = vand.u32 2147483648, %v3289_v12  ;;  %v3299_v39 = vand.u32 2147483647, %v3289_v12  ;;  %vm3295_vm8 = vweird.f32 %v3289_v12 }
0x200f   :  { %v3302_v42 = vor.u32 1.1754944e-38, %v3301_v34  ;;  %vm3300_vm10 = vcmp.eq.f32.partialorder %v3299_v39, 8.507059e+37  ;;  %v5010_v39 = vld [vmem:[%s6661_s2 + $0x410] sm:$0xff] }
0x2013   :  { %v5215_v32 = vpop.eup %5214 }
0x2014   :  { %v3291_v58 = vmul.f32 %v5215_v32, %v3289_v12  ;;  %vm3296_vm7 = vweird.f32 %v5215_v32 }
0x2015   :  { %v3362_v33 = vpop.xlane.xlu0 %3361  ;;  %vm3297_vm9 = vmor %vm3295_vm8, %vm3296_vm7 }
0x2016   :  { %5216 = vrcp.f32 %v3362_v33  ;;  %v3292_v16 = vsub.f32 1.0, %v3291_v58  ;;  %v3374_v52 = vand.u32 2147483648, %v3362_v33  ;;  %v3372_v55 = vand.u32 2147483647, %v3362_v33 }
0x2017   :  { %vm3368_vm12 = vweird.f32 %v3362_v33 }
0x2018   :  { %v3293_v35 = vmul.f32 %v5215_v32, %v3292_v16  ;;  %v3375_v49 = vor.u32 1.1754944e-38, %v3374_v52  ;;  %vm3373_vm14 = vcmp.eq.f32.partialorder %v3372_v55, 8.507059e+37  ;;  %v5007_v52 = vld [vmem:[%s6661_s2 + $0x3d8] sm:$0xff]  ;;  %v5005_v55 = vld [vmem:[%s6661_s2 + $0x3c8] sm:$0xff] }
0x2019   :  { %3851 = vmatpush.msra.mxu2 %v5007_v52 }
0x201a   :  { %v3294_v40 = vadd.f32 %v5215_v32, %v3293_v35 }
0x201c   :  { %v5217_v41 = vpop.eup %5216  ;;  %v3298_v43 = vsel %vm3297_vm9, %v5215_v32, %v3294_v40 }
0x201d   :  { %v3364_v45 = vmul.f32 %v5217_v41, %v3362_v33  ;;  %v3303_v46 = vsel %vm3300_vm10, %v3302_v42, %v3298_v43  ;;  %vm3369_vm11 = vweird.f32 %v5217_v41  ;;  %v5011_v33 = vld [vmem:[%s6661_s2 + $0x418] sm:$0xff] }
0x201e   :  { %v3304_v48 = vmul.f32 %v5211_v57, %v3303_v46  ;;  %vm3370_vm13 = vmor %vm3368_vm12, %vm3369_vm11 }
0x201f   :  { %v3365_v50 = vsub.f32 1.0, %v3364_v45  ;;  %v5008_v45 = vld [vmem:[%s6661_s2 + $0x400] sm:$0xff] }
0x2020   :  { %4969 = vmatmul.msk.f32.vlgmr.msra.gmra.mxu0 %vm158_vm2, %v3304_v48 }
0x2021   :  { %v3366_v53 = vmul.f32 %v5217_v41, %v3365_v50  ;;  %3578 = vmatpush.msra.mxu0 %v4986_v38  ;;  %v4985_v50 = vld [vmem:[%s6662_s3 + $0x90] sm:$0xff] }
0x2023   :  { %v3367_v56 = vadd.f32 %v5217_v41, %v3366_v53  ;;  %3579 = vmatpush.msra.mxu0 %v4985_v50  ;;  %v5006_v53 = vld [vmem:[%s6661_s2 + $0x3d0] sm:$0xff] }
0x2024   :  { %3852 = vmatpush.msra.mxu2 %v5006_v53 }
0x2025   :  { %v3371_v63 = vsel %vm3370_vm13, %v5217_v41, %v3367_v56  ;;  %v5009_v41 = vld [vmem:[%s6661_s2 + $0x408] sm:$0xff]  ;;  %v5004_v56 = vld [vmem:[%s6661_s2 + $0x3c0] sm:$0xff] }
0x2026   :  { %v3376_v2 = vsel %vm3373_vm14, %v3375_v49, %v3371_v63  ;;  %3853 = vmatpush.msra.mxu2 %v5005_v55  ;;  %v5015_v49 = vld [vmem:[%s6661_s2 + $0x458] sm:$0xff] }
0x2027   :  { %v3377_v19 = vmul.f32 %v5213_v29, %v3376_v2  ;;  %v5014_v2 = vld [vmem:[%s6661_s2 + $0x450] sm:$0xff] }
0x2028   :  { %4987 = vmatmul.msk.f32.vlgmr.msrb.gmra.mxu0 %vm55_vm0, %v6298_v0  ;;  %3854 = vmatpush.msra.mxu2 %v5004_v56 }
0x2029   :  { %4972 = vmatmul.msk.f32.vlgmr.msra.gmra.mxu3 %vm158_vm2, %v3377_v19  ;;  %3697 = vmatpush.msrb.mxu0 %v4986_v38  ;;  %v5013_v19 = vld [vmem:[%s6661_s2 + $0x448] sm:$0xff] }
0x202a   :  { %3556 = vmatpush.msra.mxu3 %v3482_v37  ;;  %v5012_v37 = vld [vmem:[%s6661_s2 + $0x440] sm:$0xff] }
0x202b   :  { %3698 = vmatpush.msrb.mxu0 %v4985_v50 }
0x2030   :  { %4988 = vmatmul.msk.f32.gmra.mxu0 %vm55_vm0, %v6307_v5 }
0x209d   :  { %v3325_v54 = vpop.f32.mrf.mxu0 }
0x209e   :  { %4997 = vmatmul.msk.f32.vlgmr.msra.gmra.mxu1 %vm131_vm1, %v3325_v54 }
0x20a5   :  { %v3436_v4 = vpop.f32.mrf.mxu0 }
0x20a6   :  { %4994 = vmatmul.msk.f32.vlgmr.msrb.gmra.mxu3 %vm131_vm1, %v3436_v4 }
0x20a7   :  { %3675 = vmatpush.msrb.mxu3 %v3485_v7  ;;  %v6436_v7 = vld [vmem:[%s6663_s4 + $0x10] sm:$0x7] }
0x20ac   :  { %v3398_v51 = vpop.f32.mrf.mxu3 }
0x20ad   :  { %5002 = vmatmul.msk.f32.vlgmr.msrb.gmra.mxu1 %vm131_vm1, %v3398_v51  ;;  %v3439_v1 = vpop.f32.mrf.mxu0  ;;  %v3726_v51 = vperm.slane %v6436_v7, 0 }
0x20ae   :  { %4999 = vmatmul.msk.f32.vlgmr.msrb.gmra.mxu2 %vm131_vm1, %v3439_v1 }
0x211b   :  { %v3604_v1 = vpop.f32.mrf.mxu1 }
0x2129   :  { %v3511_v31 = vpop.f32.mrf.mxu3 }
0x212a   :  { %v3514_v11 = vsel %vm158_vm2, %v3511_v31, -inf }
0x212b   :  { %3515 = vmax.xlane.f32.xlu1 %v3514_v11 }
0x2131   :  { %v3630_v59 = vpop.f32.mrf.mxu2 }
0x2132   :  { %v3633_v14 = vsel %vm158_vm2, %v3630_v59, -inf }
0x2133   :  { %3634 = vmax.xlane.f32.xlu0 %v3633_v14 }
0x219e   :  { %v3516_v15 = vpop.xlane.xlu1 %3515 }
0x219f   :  { %v3517_v17 = vsub.f32 %v3511_v31, %v3516_v15 }
0x21a1   :  { %v3518_v18 = vmul.f32 1.442695, %v3517_v17  ;;  %v3723_v17 = vpop.f32.mrf.mxu1 }
0x21a3   :  { %5218 = vpow2.f32 %v3518_v18 }
0x21a6   :  { %v3635_v13 = vpop.xlane.xlu0 %3634 }
0x21a7   :  { %v3636_v3 = vsub.f32 %v3630_v59, %v3635_v13 }
0x21a9   :  { %v5219_v6 = vpop.eup %5218  ;;  %v3637_v8 = vmul.f32 1.442695, %v3636_v3 }
0x21aa   :  { %v3520_v36 = vsel %vm158_vm2, %v5219_v6, 0.0 }
0x21ab   :  { %5220 = vpow2.f32 %v3637_v8  ;;  %3521 = vadd.xlane.f32.xlu2 %v3520_v36 }
0x21b1   :  { %v5221_v22 = vpop.eup %5220 }
0x21b2   :  { %v3639_v23 = vsel %vm158_vm2, %v5221_v22, 0.0 }
0x21b3   :  { %3640 = vadd.xlane.f32.xlu1 %v3639_v23 }
0x221e   :  { %v3522_v25 = vpop.xlane.xlu2 %3521 }
0x221f   :  { %5222 = vrcp.f32 %v3522_v25  ;;  %v3534_v27 = vand.u32 2147483648, %v3522_v25  ;;  %v3532_v29 = vand.u32 2147483647, %v3522_v25  ;;  %vm3528_vm3 = vweird.f32 %v3522_v25 }
0x2221   :  { %v3535_v62 = vor.u32 1.1754944e-38, %v3534_v27  ;;  %vm3533_vm5 = vcmp.eq.f32.partialorder %v3532_v29, 8.507059e+37 }
0x2225   :  { %v5223_v26 = vpop.eup %5222 }
0x2226   :  { %v3524_v61 = vmul.f32 %v5223_v26, %v3522_v25  ;;  %v3641_v60 = vpop.xlane.xlu1 %3640  ;;  %vm3529_vm15 = vweird.f32 %v5223_v26 }
0x2227   :  { %5224 = vrcp.f32 %v3641_v60  ;;  %vm3530_vm4 = vmor %vm3528_vm3, %vm3529_vm15  ;;  %v3653_v16 = vand.u32 2147483648, %v3641_v60  ;;  %v3651_v35 = vand.u32 2147483647, %v3641_v60  ;;  %vm3647_vm8 = vweird.f32 %v3641_v60 }
0x2228   :  { %v3525_v57 = vsub.f32 1.0, %v3524_v61 }
0x2229   :  { %v3654_v42 = vor.u32 1.1754944e-38, %v3653_v16  ;;  %vm3652_vm10 = vcmp.eq.f32.partialorder %v3651_v35, 8.507059e+37 }
0x222a   :  { %v3526_v20 = vmul.f32 %v5223_v26, %v3525_v57 }
0x222c   :  { %v3527_v30 = vadd.f32 %v5223_v26, %v3526_v20 }
0x222d   :  { %v5225_v24 = vpop.eup %5224 }
0x222e   :  { %v3531_v47 = vsel %vm3530_vm4, %v5223_v26, %v3527_v30  ;;  %v3643_v12 = vmul.f32 %v5225_v24, %v3641_v60  ;;  %vm3648_vm7 = vweird.f32 %v5225_v24  ;;  %v5033_v30 = vld [vmem:[%s6661_s2 + $0x3f8] sm:$0xff] }
0x222f   :  { %v3536_v10 = vsel %vm3533_vm5, %v3535_v62, %v3531_v47  ;;  %vm3649_vm9 = vmor %vm3647_vm8, %vm3648_vm7  ;;  %v5031_v62 = vld [vmem:[%s6661_s2 + $0x3e8] sm:$0xff]  ;;  %v5030_v47 = vld [vmem:[%s6661_s2 + $0x3e0] sm:$0xff] }
0x2230   :  { %v3537_v32 = vmul.f32 %v5219_v6, %v3536_v10  ;;  %v3644_v58 = vsub.f32 1.0, %v3643_v12 }
0x2232   :  { %v3645_v34 = vmul.f32 %v5225_v24, %v3644_v58  ;;  %4995 = vmatmul.msk.f32.vlgmr.msra.gmra.mxu3 %vm158_vm2, %v3537_v32 }
0x2233   :  { %3874 = vmatpush.msra.mxu3 %v5011_v33 }
0x2234   :  { %v3646_v40 = vadd.f32 %v5225_v24, %v3645_v34 }
0x2235   :  { %3875 = vmatpush.msra.mxu3 %v5010_v39 }
0x2236   :  { %v3650_v43 = vsel %vm3649_vm9, %v5225_v24, %v3646_v40  ;;  %v5032_v24 = vld [vmem:[%s6661_s2 + $0x3f0] sm:$0xff] }
0x2237   :  { %v3655_v46 = vsel %vm3652_vm10, %v3654_v42, %v3650_v43  ;;  %3876 = vmatpush.msra.mxu3 %v5009_v41 }
0x2238   :  { %v3656_v48 = vmul.f32 %v5221_v22, %v3655_v46 }
0x2239   :  { %3877 = vmatpush.msra.mxu3 %v5008_v45 }
0x223a   :  { %5000 = vmatmul.msk.f32.vlgmr.msrb.gmra.mxu3 %vm158_vm2, %v3656_v48 }
0x2242   :  { %5020 = vmatmul.msk.f32.vlgmr.msra.gmra.mxu3 %vm55_vm0, %v6000_v28 }
0x224a   :  { %5021 = vmatmul.msk.f32.gmra.mxu3 %vm55_vm0, %v6077_v21 }
0x22b5   :  { %v3558_v63 = vpop.f32.mrf.mxu3 }
0x22b6   :  { %4996 = vmatmul.msk.f32.vlgmr.msra.gmra.mxu0 %vm131_vm1, %v3558_v63 }
0x22b7   :  { %3897 = vmatpush.msra.mxu0 %v5015_v49 }
0x22b9   :  { %3898 = vmatpush.msra.mxu0 %v5014_v2 }
0x22bb   :  { %3899 = vmatpush.msra.mxu0 %v5013_v19 }
0x22bd   :  { %v3677_v44 = vpop.f32.mrf.mxu3  ;;  %3900 = vmatpush.msra.mxu0 %v5012_v37 }
0x22be   :  { %5001 = vmatmul.msk.f32.vlgmr.msrb.gmra.mxu0 %vm131_vm1, %v3677_v44 }
0x22bf   :  { %4084 = vmatpush.msrb.mxu0 %v5033_v30 }
0x22c1   :  { %4085 = vmatpush.msrb.mxu0 %v5032_v24 }
0x22c3   :  { %4086 = vmatpush.msrb.mxu0 %v5031_v62 }
0x22c5   :  { %v3879_v54 = vpop.f32.mrf.mxu3  ;;  %4087 = vmatpush.msrb.mxu0 %v5030_v47 }
0x22c6   :  { %5022 = vmatmul.msk.f32.vlgmr.msra.gmra.mxu0 %vm55_vm0, %v6000_v28  ;;  %5024 = vmatpush.xpose.msk.msra.mxu1 %vm131_vm1, %v3879_v54 }
0x22cd   :  { %v3882_v4 = vpop.f32.mrf.mxu3 }
0x22ce   :  { %5023 = vmatmul.msk.f32.gmra.mxu0 %vm55_vm0, %v6077_v21  ;;  %5027 = vmatpush.xpose.msk.msrb.mxu2 %vm131_vm1, %v3882_v4 }
0x2333   :  { %v3581_v31 = vpop.f32.mrf.mxu0 }
0x2334   :  { %v3605_v11 = vadd.f32 %v3604_v1, %v3581_v31 }
0x2336   :  { %v3727_v59 = vadd.f32 %v3726_v51, %v3605_v11 }
0x2338   :  { %v3729_v14 = vadd.f32 %v3727_v59, %v6298_v0  ;;  %v3807_v59 = vperm.slane %v6436_v7, 1 }
0x233a   :  { %v3731_v15 = vsel %vm55_vm0, %v3729_v14, 0.0 }
0x233b   :  { %3732 = vadd.xlane.f32.xlu2 %v3731_v15  ;;  %v3700_v18 = vpop.f32.mrf.mxu0 }
0x233c   :  { %v3724_v13 = vadd.f32 %v3723_v17, %v3700_v18  ;;  %v3810_v18 = vperm.slane %v6436_v7, 2 }
0x233e   :  { %v3728_v3 = vadd.f32 %v3726_v51, %v3724_v13 }
0x2340   :  { %v3730_v6 = vadd.f32 %v3728_v3, %v6307_v5 }
0x2342   :  { %v3734_v8 = vsel %vm55_vm0, %v3730_v6, 0.0 }
0x2343   :  { %v3902_v36 = vpop.f32.mrf.mxu0  ;;  %3735 = vadd.xlane.f32.xlu1 %v3734_v8 }
0x2344   :  { %3976 = vmatpush.msrb.mxu1 %v3902_v36 }
0x234b   :  { %v3905_v22 = vpop.f32.mrf.mxu0 }
0x234c   :  { %4049 = vmatpush.msrb.mxu3 %v3905_v22 }
0x23ae   :  { %v3733_v23 = vpop.xlane.xlu2 %3732 }
0x23af   :  { %v3737_v25 = vmul.f32 %v3733_v23, %v5503_v9 }
0x23b1   :  { %v6444_v0 = vsub.f32 %v3729_v14, %v3737_v25 }
0x23b3   :  { %v3741_v26 = vmul.f32 %v6444_v0, %v6444_v0 }
0x23b5   :  { %v3743_v61 = vsel %vm55_vm0, %v3741_v26, 0.0 }
0x23b6   :  { %3744 = vadd.xlane.f32.xlu0 %v3743_v61  ;;  %v3736_v60 = vpop.xlane.xlu1 %3735 }
0x23b7   :  { %v3738_v5 = vmul.f32 %v3736_v60, %v5503_v9 }
0x23b9   :  { %v6450_v57 = vsub.f32 %v3730_v6, %v3738_v5 }
0x23bb   :  { %v3742_v27 = vmul.f32 %v6450_v57, %v6450_v57 }
0x23bd   :  { %v3746_v20 = vsel %vm55_vm0, %v3742_v27, 0.0  ;;  %v5041_v27 = vld [vmem:[%s6661_s2 + $0x478] sm:$0xff] }
0x23be   :  { %3747 = vadd.xlane.f32.xlu2 %v3746_v20  ;;  %v5040_v20 = vld [vmem:[%s6661_s2 + $0x470] sm:$0xff] }
0x2429   :  { %v3745_v29 = vpop.xlane.xlu0 %3744 }
0x242a   :  { %v3749_v38 = vmul.f32 0.032258064, %v3745_v29  ;;  %v5038_v29 = vld [vmem:[%s6661_s2 + $0x460] sm:$0xff] }
0x242c   :  { %5226 = vrsqrt.f32 %v3749_v38  ;;  %vm3758_vm11 = vcmp.eq.f32.partialorder %v3749_v38, inf  ;;  %v3761_v43 = vand.u32 2147483648, %v3749_v38  ;;  %vm3760_vm12 = vcmp.eq.f32.partialorder %v3749_v38, 0.0 }
0x2431   :  { %v3748_v12 = vpop.xlane.xlu2 %3747 }
0x2432   :  { %v5227_v10 = vpop.eup %5226  ;;  %v3750_v32 = vmul.f32 0.032258064, %v3748_v12 }
0x2433   :  { %v3752_v58 = vmul.f32 %v5227_v10, %v3749_v38 }
0x2434   :  { %5228 = vrsqrt.f32 %v3750_v32  ;;  %vm3770_vm13 = vcmp.eq.f32.partialorder %v3750_v32, inf  ;;  %v3773_v56 = vand.u32 2147483648, %v3750_v32  ;;  %vm3772_vm14 = vcmp.eq.f32.partialorder %v3750_v32, 0.0 }
0x2435   :  { %v3753_v33 = vmul.f32 %v5227_v10, %v3752_v58 }
0x2437   :  { %v3754_v16 = vmul.f32 0.5, %v3753_v33 }
0x2439   :  { %v3755_v34 = vsub.f32 1.5, %v3754_v16 }
0x243a   :  { %v5229_v35 = vpop.eup %5228 }
0x243b   :  { %v3756_v39 = vmul.f32 %v5227_v10, %v3755_v34  ;;  %v3764_v40 = vmul.f32 %v5229_v35, %v3750_v32 }
0x243d   :  { %v3757_v41 = vmul.f32 %v3756_v39, %v3749_v38  ;;  %v3765_v42 = vmul.f32 %v5229_v35, %v3764_v40 }
0x243f   :  { %v3759_v45 = vsel %vm3758_vm11, %v3749_v38, %v3757_v41  ;;  %v3766_v46 = vmul.f32 0.5, %v3765_v42  ;;  %v5037_v42 = vld [vmem:[%s6661_s2 + $0x438] sm:$0xff] }
0x2440   :  { %v3762_v48 = vsel %vm3760_vm12, %v3761_v43, %v3759_v45  ;;  %v5036_v43 = vld [vmem:[%s6661_s2 + $0x430] sm:$0xff]  ;;  %v5035_v45 = vld [vmem:[%s6661_s2 + $0x428] sm:$0xff] }
0x2441   :  { %v3775_v50 = vadd.f32 0.001, %v3762_v48  ;;  %v3767_v52 = vsub.f32 1.5, %v3766_v46  ;;  %v5034_v46 = vld [vmem:[%s6661_s2 + $0x420] sm:$0xff] }
0x2443   :  { %5230 = vrcp.f32 %v3775_v50  ;;  %v3768_v53 = vmul.f32 %v5229_v35, %v3767_v52  ;;  %v3788_v54 = vand.u32 2147483648, %v3775_v50  ;;  %v3786_v51 = vand.u32 2147483647, %v3775_v50 }
0x2444   :  { %vm3782_vm3 = vweird.f32 %v3775_v50 }
0x2445   :  { %v3769_v55 = vmul.f32 %v3768_v53, %v3750_v32  ;;  %v3789_v11 = vor.u32 1.1754944e-38, %v3788_v54  ;;  %vm3787_vm5 = vcmp.eq.f32.partialorder %v3786_v51, 8.507059e+37 }
0x2447   :  { %v3771_v49 = vsel %vm3770_vm13, %v3750_v32, %v3769_v55 }
0x2448   :  { %v3774_v63 = vsel %vm3772_vm14, %v3773_v56, %v3771_v49 }
0x2449   :  { %v5231_v2 = vpop.eup %5230  ;;  %v3776_v19 = vadd.f32 0.001, %v3774_v63 }
0x244a   :  { %v3778_v37 = vmul.f32 %v5231_v2, %v3775_v50  ;;  %vm3783_vm15 = vweird.f32 %v5231_v2 }
0x244b   :  { %5232 = vrcp.f32 %v3776_v19  ;;  %vm3784_vm4 = vmor %vm3782_vm3, %vm3783_vm15  ;;  %v3802_v6 = vand.u32 2147483648, %v3776_v19  ;;  %v3800_v22 = vand.u32 2147483647, %v3776_v19  ;;  %vm3796_vm8 = vweird.f32 %v3776_v19 }
0x244c   :  { %v3779_v44 = vsub.f32 1.0, %v3778_v37 }
0x244d   :  { %v3803_v26 = vor.u32 1.1754944e-38, %v3802_v6  ;;  %vm3801_vm10 = vcmp.eq.f32.partialorder %v3800_v22, 8.507059e+37  ;;  %v5016_v6 = vld [vmem:[%s6662_s3 + $0xa0] sm:$0xff] }
0x244e   :  { %v3780_v4 = vmul.f32 %v5231_v2, %v3779_v44 }
0x2450   :  { %v3781_v1 = vadd.f32 %v5231_v2, %v3780_v4  ;;  %v5017_v4 = vld [vmem:[%s6662_s3 + $0xa8] sm:$0xff] }
0x2451   :  { %v5233_v31 = vpop.eup %5232 }
0x2452   :  { %v3785_v14 = vsel %vm3784_vm4, %v5231_v2, %v3781_v1  ;;  %v3792_v15 = vmul.f32 %v5233_v31, %v3776_v19  ;;  %vm3797_vm7 = vweird.f32 %v5233_v31 }
0x2453   :  { %v3790_v17 = vsel %vm3787_vm5, %v3789_v11, %v3785_v14  ;;  %vm3798_vm9 = vmor %vm3796_vm8, %vm3797_vm7 }
0x2454   :  { %v3805_v13 = vmul.f32 %v3790_v17, %v6444_v0  ;;  %v3793_v3 = vsub.f32 1.0, %v3792_v15 }
0x2456   :  { %v3808_v8 = vmul.f32 %v3807_v59, %v3805_v13  ;;  %v3794_v36 = vmul.f32 %v5233_v31, %v3793_v3 }
0x2458   :  { %v6470_v23 = vadd.f32 %v3810_v18, %v3808_v8  ;;  %v3795_v25 = vadd.f32 %v5233_v31, %v3794_v36 }
0x245a   :  { %5018 = vmatmul.msk.f32.vlgmr.msra.gmra.mxu2 %vm55_vm0, %v6470_v23  ;;  %5044 = vmatmul.msk.f32.vlgmr.msrb.gmra.mxu0 %vm55_vm0, %v6470_v23  ;;  %v3799_v7 = vsel %vm3798_vm9, %v5233_v31, %v3795_v25 }
0x245b   :  { %v3804_v0 = vsel %vm3801_vm10, %v3803_v26, %v3799_v7  ;;  %4130 = vmatpush.msra.mxu2 %v5041_v27 }
0x245c   :  { %v3806_v61 = vmul.f32 %v3804_v0, %v6450_v57  ;;  %v5039_v57 = vld [vmem:[%s6661_s2 + $0x468] sm:$0xff] }
0x245d   :  { %4131 = vmatpush.msra.mxu2 %v5040_v20 }
0x245e   :  { %v3809_v60 = vmul.f32 %v3807_v59, %v3806_v61 }
0x245f   :  { %4132 = vmatpush.msra.mxu2 %v5039_v57 }
0x2460   :  { %v6477_v5 = vadd.f32 %v3810_v18, %v3809_v60 }
0x2461   :  { %4133 = vmatpush.msra.mxu2 %v5038_v29 }
0x2462   :  { %5019 = vmatmul.msk.f32.gmra.mxu2 %vm55_vm0, %v6477_v5  ;;  %5045 = vmatmul.msk.f32.gmra.mxu0 %vm55_vm0, %v6477_v5 }
0x24d7   :  { %v4089_v22 = vpop.f32.mrf.mxu0 }
0x24dd   :  { %v3856_v38 = vpop.f32.mrf.mxu2 }
0x24de   :  { %5025 = vmatmul.msk.f32.vlgmr.msra.gmra.mxu1 %vm131_vm1, %v3856_v38 }
0x24df   :  { %4107 = vmatpush.msra.mxu1 %v5037_v42  ;;  %v4092_v26 = vpop.f32.mrf.mxu0 }
0x24e1   :  { %4108 = vmatpush.msra.mxu1 %v5036_v43 }
0x24e3   :  { %4109 = vmatpush.msra.mxu1 %v5035_v45 }
0x24e5   :  { %v3859_v30 = vpop.f32.mrf.mxu2  ;;  %4110 = vmatpush.msra.mxu1 %v5034_v46 }
0x24e6   :  { %5028 = vmatmul.msk.f32.vlgmr.msrb.gmra.mxu2 %vm131_vm1, %v3859_v30 }
0x24ee   :  { %5048 = vmatmul.msk.f32.vlgmr.msra.gmra.mxu2 %vm55_vm0, %v6000_v28 }
0x24f6   :  { %5049 = vmatmul.msk.f32.gmra.mxu2 %vm55_vm0, %v6077_v21 }
0x255b   :  { %v3931_v24 = vpop.f32.mrf.mxu1 }
0x255c   :  { %v3934_v62 = vsel %vm158_vm2, %v3931_v24, -inf }
0x255d   :  { %3935 = vmax.xlane.f32.xlu0 %v3934_v62 }
0x2569   :  { %v4004_v47 = vpop.f32.mrf.mxu2 }
0x256a   :  { %v4007_v12 = vsel %vm158_vm2, %v4004_v47, -inf }
0x256b   :  { %4008 = vmax.xlane.f32.xlu2 %v4007_v12 }
0x25d0   :  { %v3936_v10 = vpop.xlane.xlu0 %3935 }
0x25d1   :  { %v3937_v32 = vsub.f32 %v3931_v24, %v3936_v10 }
0x25d3   :  { %v3938_v58 = vmul.f32 1.442695, %v3937_v32  ;;  %v5043_v32 = vld [vmem:[%s6662_s3 + $0xb8] sm:$0xff] }
0x25d4   :  { %4231 = vmatpush.msra.mxu0 %v5043_v32 }
0x25d5   :  { %5234 = vpow2.f32 %v3938_v58 }
0x25db   :  { %v5235_v33 = vpop.eup %5234 }
0x25dc   :  { %v3940_v16 = vsel %vm158_vm2, %v5235_v33, 0.0 }
0x25dd   :  { %3941 = vadd.xlane.f32.xlu1 %v3940_v16 }
0x25de   :  { %v4009_v34 = vpop.xlane.xlu2 %4008 }
0x25df   :  { %v4010_v35 = vsub.f32 %v4004_v47, %v4009_v34 }
0x25e1   :  { %v4011_v39 = vmul.f32 1.442695, %v4010_v35 }
0x25e3   :  { %5236 = vpow2.f32 %v4011_v39 }
0x25e9   :  { %v5237_v40 = vpop.eup %5236 }
0x25ea   :  { %v4013_v41 = vsel %vm158_vm2, %v5237_v40, 0.0 }
0x25eb   :  { %4014 = vadd.xlane.f32.xlu0 %v4013_v41 }
0x2650   :  { %v3942_v48 = vpop.xlane.xlu1 %3941 }
0x2651   :  { %5238 = vrcp.f32 %v3942_v48  ;;  %v3954_v55 = vand.u32 2147483648, %v3942_v48  ;;  %v3952_v49 = vand.u32 2147483647, %v3942_v48  ;;  %vm3948_vm12 = vweird.f32 %v3942_v48 }
0x2653   :  { %v3955_v19 = vor.u32 1.1754944e-38, %v3954_v55  ;;  %vm3953_vm14 = vcmp.eq.f32.partialorder %v3952_v49, 8.507059e+37 }
0x2657   :  { %v5239_v50 = vpop.eup %5238 }
0x2658   :  { %v3944_v52 = vmul.f32 %v5239_v50, %v3942_v48  ;;  %vm3949_vm11 = vweird.f32 %v5239_v50 }
0x2659   :  { %vm3950_vm13 = vmor %vm3948_vm12, %vm3949_vm11 }
0x265a   :  { %v3945_v53 = vsub.f32 1.0, %v3944_v52 }
0x265c   :  { %v3946_v56 = vmul.f32 %v5239_v50, %v3945_v53 }
0x265e   :  { %v3947_v63 = vadd.f32 %v5239_v50, %v3946_v56  ;;  %v4015_v2 = vpop.xlane.xlu0 %4014 }
0x265f   :  { %5240 = vrcp.f32 %v4015_v2  ;;  %v4027_v11 = vand.u32 2147483648, %v4015_v2  ;;  %v4025_v14 = vand.u32 2147483647, %v4015_v2  ;;  %vm4021_vm3 = vweird.f32 %v4015_v2 }
0x2660   :  { %v3951_v37 = vsel %vm3950_vm13, %v5239_v50, %v3947_v63 }
0x2661   :  { %v3956_v44 = vsel %vm3953_vm14, %v3955_v19, %v3951_v37  ;;  %v4028_v17 = vor.u32 1.1754944e-38, %v4027_v11  ;;  %vm4026_vm5 = vcmp.eq.f32.partialorder %v4025_v14, 8.507059e+37 }
0x2662   :  { %v3957_v54 = vmul.f32 %v5235_v33, %v3956_v44 }
0x2664   :  { %5026 = vmatmul.msk.f32.vlgmr.msrb.gmra.mxu1 %vm158_vm2, %v3957_v54  ;;  %v5042_v54 = vld [vmem:[%s6662_s3 + $0xb0] sm:$0xff] }
0x2665   :  { %v5241_v51 = vpop.eup %5240  ;;  %4254 = vmatpush.msrb.mxu1 %v5017_v4  ;;  %4232 = vmatpush.msra.mxu0 %v5042_v54 }
0x2666   :  { %v4017_v1 = vmul.f32 %v5241_v51, %v4015_v2  ;;  %vm4022_vm15 = vweird.f32 %v5241_v51 }
0x2667   :  { %vm4023_vm4 = vmor %vm4021_vm3, %vm4022_vm15  ;;  %4255 = vmatpush.msrb.mxu1 %v5016_v6  ;;  %4350 = vmatpush.msrb.mxu0 %v5043_v32 }
0x2668   :  { %v4018_v31 = vsub.f32 1.0, %v4017_v1  ;;  %v6552_v1 = vld [vmem:[%s6663_s4 + $0x14] sm:$0x7] }
0x2669   :  { %4351 = vmatpush.msrb.mxu0 %v5042_v54 }
0x266a   :  { %v4019_v59 = vmul.f32 %v5241_v51, %v4018_v31  ;;  %v4379_v31 = vperm.slane %v6552_v1, 0 }
0x266c   :  { %v4020_v15 = vadd.f32 %v5241_v51, %v4019_v59  ;;  %5046 = vmatmul.msk.f32.vlgmr.msra.gmra.mxu1 %vm55_vm0, %v6000_v28  ;;  %v4135_v28 = vpop.f32.mrf.mxu2 }
0x266d   :  { %4373 = vmatpush.msra.mxu1 %v5017_v4 }
0x266e   :  { %v4024_v18 = vsel %vm4023_vm4, %v5241_v51, %v4020_v15 }
0x266f   :  { %v4029_v13 = vsel %vm4026_vm5, %v4028_v17, %v4024_v18  ;;  %4374 = vmatpush.msra.mxu1 %v5016_v6 }
0x2670   :  { %v4030_v3 = vmul.f32 %v5237_v40, %v4029_v13 }
0x2672   :  { %5029 = vmatmul.msk.f32.vlgmr.msrb.gmra.mxu3 %vm158_vm2, %v4030_v3 }
0x2674   :  { %5047 = vmatmul.msk.f32.gmra.mxu1 %vm55_vm0, %v6077_v21  ;;  %v4138_v25 = vpop.f32.mrf.mxu2 }
0x26e1   :  { %v3978_v8 = vpop.f32.mrf.mxu1 }
0x26e2   :  { %5054 = vmatmul.msk.f32.vlgmr.msrb.gmra.mxu1 %vm131_vm1, %v3978_v8 }
0x26e9   :  { %v4112_v36 = vpop.f32.mrf.mxu1 }
0x26ea   :  { %5050 = vmatpush.xpose.msk.msra.mxu3 %vm131_vm1, %v4112_v36 }
0x26ed   :  { %5051 = vmatmul.msk.f32.vlgmr.msra.gmra.mxu3 %vm131_vm1, %v4089_v22 }
0x26ee   :  { %4209 = vmatpush.msrb.mxu3 %v4135_v28 }
0x26f0   :  { %4328 = vmatpush.msra.mxu3 %v4138_v25 }
0x26f1   :  { %v4115_v21 = vpop.f32.mrf.mxu1 }
0x26f2   :  { %5055 = vmatpush.xpose.msk.msrb.mxu2 %vm131_vm1, %v4115_v21 }
0x26f5   :  { %v4051_v7 = vpop.f32.mrf.mxu3  ;;  %5056 = vmatmul.msk.f32.vlgmr.msrb.gmra.mxu2 %vm131_vm1, %v4092_v26 }
0x26f6   :  { %5059 = vmatmul.msk.f32.vlgmr.msra.gmra.mxu1 %vm131_vm1, %v4051_v7 }
0x275f   :  { %v4257_v11 = vpop.f32.mrf.mxu1 }
0x2770   :  { %v4164_v0 = vpop.f32.mrf.mxu3 }
0x2771   :  { %v4167_v61 = vsel %vm158_vm2, %v4164_v0, -inf }
0x2772   :  { %4168 = vmax.xlane.f32.xlu1 %v4167_v61 }
0x2773   :  { %v4376_v13 = vpop.f32.mrf.mxu1 }
0x2778   :  { %v4283_v60 = vpop.f32.mrf.mxu2 }
0x2779   :  { %v4286_v27 = vsel %vm158_vm2, %v4283_v60, -inf }
0x277a   :  { %4287 = vmax.xlane.f32.xlu2 %v4286_v27 }
0x27e5   :  { %v4169_v20 = vpop.xlane.xlu1 %4168 }
0x27e6   :  { %v4170_v57 = vsub.f32 %v4164_v0, %v4169_v20 }
0x27e8   :  { %v4171_v29 = vmul.f32 1.442695, %v4170_v57  ;;  %v5064_v57 = vld [vmem:[%s6664_s5 + $0x78] sm:$0xff] }
0x27e9   :  { %4496 = vmatpush.msra.mxu2 %v5064_v57  ;;  %v5069_v57 = vld [vmem:[%s6666_s7 + $0xc8] sm:$0xff] }
0x27ea   :  { %5242 = vpow2.f32 %v4171_v29  ;;  %v5063_v29 = vld [vmem:[%s6664_s5 + $0x70] sm:$0xff] }
0x27eb   :  { %4497 = vmatpush.msra.mxu2 %v5063_v29  ;;  %v5068_v29 = vld [vmem:[%s6666_s7 + $0xc0] sm:$0xff] }
0x27ed   :  { %v4288_v38 = vpop.xlane.xlu2 %4287 }
0x27ee   :  { %v4289_v30 = vsub.f32 %v4283_v60, %v4288_v38  ;;  %v5062_v38 = vld [vmem:[%s6664_s5 + $0x68] sm:$0xff] }
0x27ef   :  { %4498 = vmatpush.msra.mxu2 %v5062_v38 }
0x27f0   :  { %v5243_v24 = vpop.eup %5242  ;;  %v4290_v62 = vmul.f32 1.442695, %v4289_v30  ;;  %v5061_v30 = vld [vmem:[%s6664_s5 + $0x60] sm:$0xff] }
0x27f1   :  { %v4173_v47 = vsel %vm158_vm2, %v5243_v24, 0.0  ;;  %4499 = vmatpush.msra.mxu2 %v5061_v30 }
0x27f2   :  { %5244 = vpow2.f32 %v4290_v62  ;;  %4174 = vadd.xlane.f32.xlu0 %v4173_v47 }
0x27f8   :  { %v5245_v12 = vpop.eup %5244 }
0x27f9   :  { %v4292_v10 = vsel %vm158_vm2, %v5245_v12, 0.0 }
0x27fa   :  { %4293 = vadd.xlane.f32.xlu1 %v4292_v10 }
0x2865   :  { %v4175_v58 = vpop.xlane.xlu0 %4174 }
0x2866   :  { %5246 = vrcp.f32 %v4175_v58  ;;  %v4187_v39 = vand.u32 2147483648, %v4175_v58  ;;  %v4185_v41 = vand.u32 2147483647, %v4175_v58  ;;  %vm4181_vm8 = vweird.f32 %v4175_v58 }
0x2868   :  { %v4188_v45 = vor.u32 1.1754944e-38, %v4187_v39  ;;  %vm4186_vm10 = vcmp.eq.f32.partialorder %v4185_v41, 8.507059e+37 }
0x286c   :  { %v5247_v33 = vpop.eup %5246 }
0x286d   :  { %v4177_v16 = vmul.f32 %v5247_v33, %v4175_v58  ;;  %v4294_v34 = vpop.xlane.xlu1 %4293  ;;  %vm4182_vm7 = vweird.f32 %v5247_v33 }
0x286e   :  { %5248 = vrcp.f32 %v4294_v34  ;;  %vm4183_vm9 = vmor %vm4181_vm8, %vm4182_vm7  ;;  %v4306_v55 = vand.u32 2147483648, %v4294_v34  ;;  %v4304_v49 = vand.u32 2147483647, %v4294_v34  ;;  %vm4300_vm12 = vweird.f32 %v4294_v34 }
0x286f   :  { %v4178_v35 = vsub.f32 1.0, %v4177_v16 }
0x2870   :  { %v4307_v2 = vor.u32 1.1754944e-38, %v4306_v55  ;;  %vm4305_vm14 = vcmp.eq.f32.partialorder %v4304_v49, 8.507059e+37  ;;  %v5072_v49 = vld [vmem:[%s6666_s7 + $0xe0] sm:$0xff] }
0x2871   :  { %v4179_v40 = vmul.f32 %v5247_v33, %v4178_v35 }
0x2873   :  { %v4180_v42 = vadd.f32 %v5247_v33, %v4179_v40 }
0x2874   :  { %v5249_v43 = vpop.eup %5248 }
0x2875   :  { %v4184_v46 = vsel %vm4183_vm9, %v5247_v33, %v4180_v42  ;;  %v4296_v48 = vmul.f32 %v5249_v43, %v4294_v34  ;;  %vm4301_vm11 = vweird.f32 %v5249_v43 }
0x2876   :  { %v4189_v50 = vsel %vm4186_vm10, %v4188_v45, %v4184_v46  ;;  %vm4302_vm13 = vmor %vm4300_vm12, %vm4301_vm11 }
0x2877   :  { %v4190_v52 = vmul.f32 %v5243_v24, %v4189_v50  ;;  %v4297_v53 = vsub.f32 1.0, %v4296_v48  ;;  %v5075_v48 = vld [vmem:[%s6666_s7 + $0xf8] sm:$0xff]  ;;  %v5074_v50 = vld [vmem:[%s6666_s7 + $0xf0] sm:$0xff] }
0x2879   :  { %v4298_v56 = vmul.f32 %v5249_v43, %v4297_v53  ;;  %5052 = vmatmul.msk.f32.vlgmr.msrb.gmra.mxu3 %vm158_vm2, %v4190_v52  ;;  %v5073_v53 = vld [vmem:[%s6666_s7 + $0xe8] sm:$0xff] }
0x287a   :  { %4533 = vmatpush.msrb.mxu3 %v5075_v48 }
0x287b   :  { %v4299_v63 = vadd.f32 %v5249_v43, %v4298_v56 }
0x287c   :  { %4534 = vmatpush.msrb.mxu3 %v5074_v50 }
0x287d   :  { %v4303_v19 = vsel %vm4302_vm13, %v5249_v43, %v4299_v63 }
0x287e   :  { %v4308_v37 = vsel %vm4305_vm14, %v4307_v2, %v4303_v19  ;;  %4535 = vmatpush.msrb.mxu3 %v5073_v53  ;;  %v5071_v19 = vld [vmem:[%s6666_s7 + $0xd8] sm:$0xff] }
0x287f   :  { %v4309_v44 = vmul.f32 %v5245_v12, %v4308_v37 }
0x2880   :  { %4536 = vmatpush.msrb.mxu3 %v5072_v49 }
0x2881   :  { %5057 = vmatmul.msk.f32.vlgmr.msra.gmra.mxu3 %vm158_vm2, %v4309_v44 }
0x2882   :  { %4537 = vmatpush.msrb.mxu3 %v5071_v19  ;;  %v4634_v19 = vld [vmem:[%s6668_s9 + $0x10] sm:$0xff] }
0x28fc   :  { %v4211_v4 = vpop.f32.mrf.mxu3 }
0x28fd   :  { %5053 = vmatmul.msk.f32.vlgmr.msra.gmra.mxu0 %vm131_vm1, %v4211_v4 }
0x2904   :  { %v4330_v51 = vpop.f32.mrf.mxu3 }
0x2905   :  { %5058 = vmatmul.msk.f32.vlgmr.msrb.gmra.mxu0 %vm131_vm1, %v4330_v51 }
0x297a   :  { %v4234_v59 = vpop.f32.mrf.mxu0 }
0x297b   :  { %v4258_v14 = vadd.f32 %v4257_v11, %v4234_v59 }
0x297d   :  { %v4380_v15 = vadd.f32 %v4379_v31, %v4258_v14 }
0x297f   :  { %v4382_v17 = vadd.f32 %v4380_v15, %v6470_v23 }
0x2981   :  { %v4384_v18 = vsel %vm55_vm0, %v4382_v17, 0.0 }
0x2982   :  { %4385 = vadd.xlane.f32.xlu2 %v4384_v18  ;;  %v4353_v3 = vpop.f32.mrf.mxu0 }
0x2983   :  { %v4377_v6 = vadd.f32 %v4376_v13, %v4353_v3 }
0x2985   :  { %v4381_v8 = vadd.f32 %v4379_v31, %v4377_v6  ;;  %v4463_v6 = vperm.slane %v6552_v1, 2 }
0x2987   :  { %v4383_v28 = vadd.f32 %v4381_v8, %v6477_v5 }
0x2989   :  { %v4387_v36 = vsel %vm55_vm0, %v4383_v28, 0.0 }
0x298a   :  { %4388 = vadd.xlane.f32.xlu0 %v4387_v36 }
0x29f5   :  { %v4386_v22 = vpop.xlane.xlu2 %4385 }
0x29f6   :  { %v4390_v25 = vmul.f32 %v4386_v22, %v5503_v9 }
0x29f8   :  { %v6560_v21 = vsub.f32 %v4382_v17, %v4390_v25  ;;  %v4460_v17 = vperm.slane %v6552_v1, 1 }
0x29fa   :  { %v4394_v23 = vmul.f32 %v6560_v21, %v6560_v21 }
0x29fc   :  { %v4396_v26 = vsel %vm55_vm0, %v4394_v23, 0.0 }
0x29fd   :  { %v4389_v7 = vpop.xlane.xlu0 %4388  ;;  %4397 = vadd.xlane.f32.xlu1 %v4396_v26 }
0x29fe   :  { %v4391_v0 = vmul.f32 %v4389_v7, %v5503_v9 }
0x2a00   :  { %v6566_v61 = vsub.f32 %v4383_v28, %v4391_v0 }
0x2a02   :  { %v4395_v5 = vmul.f32 %v6566_v61, %v6566_v61 }
0x2a04   :  { %v4399_v60 = vsel %vm55_vm0, %v4395_v5, 0.0 }
0x2a05   :  { %4400 = vadd.xlane.f32.xlu2 %v4399_v60 }
0x2a70   :  { %v4398_v27 = vpop.xlane.xlu1 %4397 }
0x2a71   :  { %v4402_v20 = vmul.f32 0.032258064, %v4398_v27 }
0x2a73   :  { %5250 = vrsqrt.f32 %v4402_v20  ;;  %vm4411_vm1 = vcmp.eq.f32.partialorder %v4402_v20, inf  ;;  %v4414_v40 = vand.u32 2147483648, %v4402_v20  ;;  %vm4413_vm2 = vcmp.eq.f32.partialorder %v4402_v20, 0.0 }
0x2a78   :  { %v4401_v24 = vpop.xlane.xlu2 %4400 }
0x2a79   :  { %v5251_v62 = vpop.eup %5250  ;;  %v4403_v47 = vmul.f32 0.032258064, %v4401_v24 }
0x2a7a   :  { %v4405_v12 = vmul.f32 %v5251_v62, %v4402_v20 }
0x2a7b   :  { %5252 = vrsqrt.f32 %v4403_v47  ;;  %vm4423_vm15 = vcmp.eq.f32.partialorder %v4403_v47, inf  ;;  %v4426_v56 = vand.u32 2147483648, %v4403_v47  ;;  %vm4425_vm3 = vcmp.eq.f32.partialorder %v4403_v47, 0.0 }
0x2a7c   :  { %v4406_v10 = vmul.f32 %v5251_v62, %v4405_v12 }
0x2a7e   :  { %v4407_v32 = vmul.f32 0.5, %v4406_v10  ;;  %v6621_v10 = vld [vmem:[%s6667_s8 + $0xc] sm:$0x7] }
0x2a80   :  { %v4408_v58 = vsub.f32 1.5, %v4407_v32  ;;  %v4518_v32 = vperm.slane %v6621_v10, 0 }
0x2a81   :  { %v5253_v33 = vpop.eup %5252 }
0x2a82   :  { %v4409_v16 = vmul.f32 %v5251_v62, %v4408_v58  ;;  %v4417_v34 = vmul.f32 %v5253_v33, %v4403_v47 }
0x2a84   :  { %v4410_v35 = vmul.f32 %v4409_v16, %v4402_v20  ;;  %v4418_v39 = vmul.f32 %v5253_v33, %v4417_v34 }
0x2a86   :  { %v4412_v41 = vsel %vm4411_vm1, %v4402_v20, %v4410_v35  ;;  %v4419_v42 = vmul.f32 0.5, %v4418_v39  ;;  %v5070_v20 = vld [vmem:[%s6666_s7 + $0xd0] sm:$0xff] }
0x2a87   :  { %v4415_v43 = vsel %vm4413_vm2, %v4414_v40, %v4412_v41  ;;  %4538 = vmatpush.msrb.mxu3 %v5070_v20 }
0x2a88   :  { %v4428_v45 = vadd.f32 0.001, %v4415_v43  ;;  %v4420_v46 = vsub.f32 1.5, %v4419_v42 }
0x2a89   :  { %4539 = vmatpush.msrb.mxu3 %v5069_v57 }
0x2a8a   :  { %5254 = vrcp.f32 %v4428_v45  ;;  %v4421_v52 = vmul.f32 %v5253_v33, %v4420_v46  ;;  %v4441_v51 = vand.u32 2147483648, %v4428_v45  ;;  %v4439_v11 = vand.u32 2147483647, %v4428_v45 }
0x2a8b   :  { %vm4435_vm5 = vweird.f32 %v4428_v45  ;;  %4540 = vmatpush.msrb.mxu3 %v5068_v29 }
0x2a8c   :  { %v4422_v55 = vmul.f32 %v4421_v52, %v4403_v47  ;;  %v4442_v15 = vor.u32 1.1754944e-38, %v4441_v51  ;;  %vm4440_vm8 = vcmp.eq.f32.partialorder %v4439_v11, 8.507059e+37 }
0x2a8e   :  { %v4424_v63 = vsel %vm4423_vm15, %v4403_v47, %v4422_v55 }
0x2a8f   :  { %v4427_v2 = vsel %vm4425_vm3, %v4426_v56, %v4424_v63 }
0x2a90   :  { %v5255_v37 = vpop.eup %5254  ;;  %v4429_v44 = vadd.f32 0.001, %v4427_v2  ;;  %v4635_v2 = vld [vmem:[%s6668_s9 + $0x18] sm:$0xff] }
0x2a91   :  { %v4431_v54 = vmul.f32 %v5255_v37, %v4428_v45  ;;  %vm4436_vm4 = vweird.f32 %v5255_v37  ;;  %4654 = vmatpush.msra.mxu0 %v4635_v2 }
0x2a92   :  { %5256 = vrcp.f32 %v4429_v44  ;;  %vm4437_vm7 = vmor %vm4435_vm5, %vm4436_vm4  ;;  %v4455_v36 = vand.u32 2147483648, %v4429_v44  ;;  %v4453_v23 = vand.u32 2147483647, %v4429_v44  ;;  %vm4449_vm10 = vweird.f32 %v4429_v44 }
0x2a93   :  { %v4432_v4 = vsub.f32 1.0, %v4431_v54  ;;  %4655 = vmatpush.msra.mxu0 %v4634_v19 }
0x2a94   :  { %v4456_v0 = vor.u32 1.1754944e-38, %v4455_v36  ;;  %vm4454_vm12 = vcmp.eq.f32.partialorder %v4453_v23, 8.507059e+37 }
0x2a95   :  { %v4433_v31 = vmul.f32 %v5255_v37, %v4432_v4 }
0x2a97   :  { %v4434_v59 = vadd.f32 %v5255_v37, %v4433_v31 }
0x2a98   :  { %v5257_v14 = vpop.eup %5256 }
0x2a99   :  { %v4438_v18 = vsel %vm4437_vm7, %v5255_v37, %v4434_v59  ;;  %v4445_v13 = vmul.f32 %v5257_v14, %v4429_v44  ;;  %vm4450_vm9 = vweird.f32 %v5257_v14  ;;  %v4632_v37 = vld [vmem:[%s6668_s9] sm:$0xff] }
0x2a9a   :  { %v4443_v3 = vsel %vm4440_vm8, %v4442_v15, %v4438_v18  ;;  %vm4451_vm11 = vmor %vm4449_vm10, %vm4450_vm9 }
0x2a9b   :  { %v4458_v8 = vmul.f32 %v4443_v3, %v6560_v21  ;;  %v4446_v28 = vsub.f32 1.0, %v4445_v13 }
0x2a9d   :  { %v4461_v22 = vmul.f32 %v4460_v17, %v4458_v8  ;;  %v4447_v25 = vmul.f32 %v5257_v14, %v4446_v28 }
0x2a9f   :  { %v4464_v26 = vadd.f32 %v4463_v6, %v4461_v22  ;;  %v4448_v7 = vadd.f32 %v5257_v14, %v4447_v25 }
0x2aa1   :  { %5066 = vmatmul.msk.f32.vlgmr.msra.gmra.mxu2 %vm55_vm0, %v4464_v26  ;;  %v4452_v5 = vsel %vm4451_vm11, %v5257_v14, %v4448_v7 }
0x2aa2   :  { %v4457_v60 = vsel %vm4454_vm12, %v4456_v0, %v4452_v5 }
0x2aa3   :  { %v4459_v1 = vmul.f32 %v4457_v60, %v6566_v61  ;;  %v5087_v61 = vld [vmem:[%s6665_s6 + $0x3] ss:$0 sm:$0xff] }
0x2aa5   :  { %v4462_v27 = vmul.f32 %v4460_v17, %v4459_v1 }
0x2aa7   :  { %v4465_v21 = vadd.f32 %v4463_v6, %v4462_v27 }
0x2aa9   :  { %5067 = vmatmul.msk.f32.gmra.mxu2 %vm55_vm0, %v4465_v21 }
0x2b24   :  { %v4501_v38 = vpop.f32.mrf.mxu2 }
0x2b25   :  { %v4502_v30 = vadd.f32 %v5087_v61, %v4501_v38 }
0x2b27   :  { %v4507_v24 = vmax.f32 %v4502_v30, 0.0  ;;  %v4626_v30 = vperm.slane %v6621_v10, 1 }
0x2b29   :  { %5076 = vmatmul.msk.f32.vlgmr.msrb.gmra.mxu3 %vm747_vm6, %v4507_v24 }
0x2b2c   :  { %v4504_v62 = vpop.f32.mrf.mxu2 }
0x2b2d   :  { %v4505_v47 = vadd.f32 %v5087_v61, %v4504_v62 }
0x2b2f   :  { %v4508_v12 = vmax.f32 %v4505_v47, 0.0 }
0x2b31   :  { %5077 = vmatmul.msk.f32.gmra.mxu3 %vm747_vm6, %v4508_v12  ;;  %v4629_v12 = vperm.slane %v6621_v10, 2 }
0x2bac   :  { %v4542_v58 = vpop.f32.mrf.mxu3 }
0x2bad   :  { %v4543_v33 = vadd.f32 %v4542_v58, %v4518_v32 }
0x2baf   :  { %v4548_v16 = vadd.f32 %v4543_v33, %v4464_v26 }
0x2bb1   :  { %v4550_v34 = vsel %vm55_vm0, %v4548_v16, 0.0 }
0x2bb2   :  { %4551 = vadd.xlane.f32.xlu0 %v4550_v34 }
0x2bb4   :  { %v4545_v35 = vpop.f32.mrf.mxu3 }
0x2bb5   :  { %v4546_v39 = vadd.f32 %v4545_v35, %v4518_v32 }
0x2bb7   :  { %v4549_v40 = vadd.f32 %v4546_v39, %v4465_v21 }
0x2bb9   :  { %v4553_v41 = vsel %vm55_vm0, %v4549_v40, 0.0 }
0x2bba   :  { %4554 = vadd.xlane.f32.xlu1 %v4553_v41 }
0x2c25   :  { %v4552_v42 = vpop.xlane.xlu0 %4551 }
0x2c26   :  { %v4556_v43 = vmul.f32 %v4552_v42, %v5503_v9 }
0x2c28   :  { %v6627_v45 = vsub.f32 %v4548_v16, %v4556_v43 }
0x2c2a   :  { %v4560_v46 = vmul.f32 %v6627_v45, %v6627_v45 }
0x2c2c   :  { %v4562_v48 = vsel %vm55_vm0, %v4560_v46, 0.0 }
0x2c2d   :  { %4563 = vadd.xlane.f32.xlu2 %v4562_v48  ;;  %v4555_v50 = vpop.xlane.xlu1 %4554 }
0x2c2e   :  { %v4557_v52 = vmul.f32 %v4555_v50, %v5503_v9  ;;  %v4633_v9 = vld [vmem:[%s6668_s9 + $0x8] sm:$0xff]  ;;  %s5293_s9 = smov [#allocation2]  }
0x2c2f   :  { %4656 = vmatpush.msra.mxu0 %v4633_v9  ;;  %s4671_s24 = sshll.u32 %s5293_s9, 4  ;;  %s4672_s24 = int_to_ptr.vmem [resolvable:$true] %s4671_s24 }
0x2c30   :  { %v6633_v53 = vsub.f32 %v4549_v40, %v4557_v52 }
0x2c31   :  { %4657 = vmatpush.msra.mxu0 %v4632_v37 }
0x2c32   :  { %v4561_v55 = vmul.f32 %v6633_v53, %v6633_v53 }
0x2c34   :  { %v4565_v56 = vsel %vm55_vm0, %v4561_v55, 0.0 }
0x2c35   :  { %4566 = vadd.xlane.f32.xlu0 %v4565_v56 }
0x2ca0   :  { %v4564_v49 = vpop.xlane.xlu2 %4563 }
0x2ca1   :  { %v4568_v63 = vmul.f32 0.032258064, %v4564_v49 }
0x2ca3   :  { %5258 = vrsqrt.f32 %v4568_v63  ;;  %vm4577_vm6 = vcmp.eq.f32.partialorder %v4568_v63, inf  ;;  %v4580_v3 = vand.u32 2147483648, %v4568_v63  ;;  %vm4579_vm13 = vcmp.eq.f32.partialorder %v4568_v63, 0.0 }
0x2ca8   :  { %v4567_v44 = vpop.xlane.xlu0 %4566 }
0x2ca9   :  { %v5259_v54 = vpop.eup %5258  ;;  %v4569_v4 = vmul.f32 0.032258064, %v4567_v44 }
0x2caa   :  { %v4571_v51 = vmul.f32 %v5259_v54, %v4568_v63 }
0x2cab   :  { %5260 = vrsqrt.f32 %v4569_v4  ;;  %vm4589_vm14 = vcmp.eq.f32.partialorder %v4569_v4, inf  ;;  %v4592_v26 = vand.u32 2147483648, %v4569_v4  ;;  %vm4591_vm1 = vcmp.eq.f32.partialorder %v4569_v4, 0.0 }
0x2cac   :  { %v4572_v31 = vmul.f32 %v5259_v54, %v4571_v51 }
0x2cae   :  { %v4573_v11 = vmul.f32 0.5, %v4572_v31 }
0x2cb0   :  { %v4574_v59 = vsub.f32 1.5, %v4573_v11 }
0x2cb1   :  { %v5261_v14 = vpop.eup %5260 }
0x2cb2   :  { %v4575_v15 = vmul.f32 %v5259_v54, %v4574_v59  ;;  %v4583_v17 = vmul.f32 %v5261_v14, %v4569_v4 }
0x2cb4   :  { %v4576_v18 = vmul.f32 %v4575_v15, %v4568_v63  ;;  %v4584_v13 = vmul.f32 %v5261_v14, %v4583_v17 }
0x2cb6   :  { %v4578_v6 = vsel %vm4577_vm6, %v4568_v63, %v4576_v18  ;;  %v4585_v8 = vmul.f32 0.5, %v4584_v13 }
0x2cb7   :  { %v4581_v28 = vsel %vm4579_vm13, %v4580_v3, %v4578_v6 }
0x2cb8   :  { %v4594_v36 = vadd.f32 0.001, %v4581_v28  ;;  %v4586_v22 = vsub.f32 1.5, %v4585_v8 }
0x2cba   :  { %5262 = vrcp.f32 %v4594_v36  ;;  %v4587_v25 = vmul.f32 %v5261_v14, %v4586_v22  ;;  %v4607_v21 = vand.u32 2147483648, %v4594_v36  ;;  %v4605_v57 = vand.u32 2147483647, %v4594_v36 }
0x2cbb   :  { %vm4601_vm15 = vweird.f32 %v4594_v36 }
0x2cbc   :  { %v4588_v23 = vmul.f32 %v4587_v25, %v4569_v4  ;;  %v4608_v38 = vor.u32 1.1754944e-38, %v4607_v21  ;;  %vm4606_vm4 = vcmp.eq.f32.partialorder %v4605_v57, 8.507059e+37 }
0x2cbe   :  { %v4590_v7 = vsel %vm4589_vm14, %v4569_v4, %v4588_v23 }
0x2cbf   :  { %v4593_v0 = vsel %vm4591_vm1, %v4592_v26, %v4590_v7 }
0x2cc0   :  { %v5263_v5 = vpop.eup %5262  ;;  %v4595_v60 = vadd.f32 0.001, %v4593_v0 }
0x2cc1   :  { %v4597_v1 = vmul.f32 %v5263_v5, %v4594_v36  ;;  %vm4602_vm2 = vweird.f32 %v5263_v5 }
0x2cc2   :  { %5264 = vrcp.f32 %v4595_v60  ;;  %vm4603_vm3 = vmor %vm4601_vm15, %vm4602_vm2  ;;  %v4621_v33 = vand.u32 2147483648, %v4595_v60  ;;  %v4619_v35 = vand.u32 2147483647, %v4595_v60  ;;  %vm4615_vm7 = vweird.f32 %v4595_v60 }
0x2cc3   :  { %v4598_v27 = vsub.f32 1.0, %v4597_v1 }
0x2cc4   :  { %v4622_v41 = vor.u32 1.1754944e-38, %v4621_v33  ;;  %vm4620_vm9 = vcmp.eq.f32.partialorder %v4619_v35, 8.507059e+37 }
0x2cc5   :  { %v4599_v20 = vmul.f32 %v5263_v5, %v4598_v27 }
0x2cc7   :  { %v4600_v29 = vadd.f32 %v5263_v5, %v4599_v20 }
0x2cc8   :  { %v5265_v61 = vpop.eup %5264 }
0x2cc9   :  { %v4604_v24 = vsel %vm4603_vm3, %v5263_v5, %v4600_v29  ;;  %v4611_v62 = vmul.f32 %v5265_v61, %v4595_v60  ;;  %vm4616_vm5 = vweird.f32 %v5265_v61 }
0x2cca   :  { %v4609_v47 = vsel %vm4606_vm4, %v4608_v38, %v4604_v24  ;;  %vm4617_vm8 = vmor %vm4615_vm7, %vm4616_vm5 }
0x2ccb   :  { %v4624_v32 = vmul.f32 %v4609_v47, %v6627_v45  ;;  %v4612_v58 = vsub.f32 1.0, %v4611_v62 }
0x2ccd   :  { %v4627_v16 = vmul.f32 %v4626_v30, %v4624_v32  ;;  %v4613_v34 = vmul.f32 %v5265_v61, %v4612_v58 }
0x2ccf   :  { %v4630_v39 = vadd.f32 %v4629_v12, %v4627_v16  ;;  %v4614_v40 = vadd.f32 %v5265_v61, %v4613_v34 }
0x2cd1   :  { %5078 = vmatmul.msk.f32.vlgmr.msra.gmra.mxu0 %vm55_vm0, %v4630_v39  ;;  %v4618_v42 = vsel %vm4617_vm8, %v5265_v61, %v4614_v40 }
0x2cd2   :  { %v4623_v43 = vsel %vm4620_vm9, %v4622_v41, %v4618_v42 }
0x2cd3   :  { %v4625_v10 = vmul.f32 %v4623_v43, %v6633_v53 }
0x2cd5   :  { %v4628_v46 = vmul.f32 %v4626_v30, %v4625_v10 }
0x2cd7   :  { %v4631_v45 = vadd.f32 %v4629_v12, %v4628_v46 }
0x2cd9   :  { %5079 = vmatmul.msk.f32.gmra.mxu0 %vm55_vm0, %v4631_v45 }
0x2d4e   :  { %v4659_v48 = vpop.f32.mrf.mxu0 }
0x2d4f   :  { %4665 = vst [vmem:[#allocation2] sm:$0xff] %v4659_v48 }
0x2d56   :  { %v4662_v50 = vpop.f32.mrf.mxu0 }
0x2d57   :  { %4666 = vst [vmem:[#allocation2 + $0x8] sm:$0xff] %v4662_v50 }
0x2d58   :  { %4679 = dma.vmem_to_hbm [thread:$0]  %s4672_s24, 256, %s4674_s26, [#allocation3], %s5294_s27, %s5294_s27, %s5295_s28  }
0x2d59   :  { %5290 = dma.done.wait [#allocation3], 256  }
0x2d5a   :  { %5291 = vsyncadd [#allocation3], 4294967040 }
0x2d5b   :  { %4684 = vsyncpa [#allocation3], 1 }

</bundles_post_ra>
